<compile_context>
chip_gen: v7x
topology: tpu7x:2x2x1
jax: 0.10.0
libtpu: 0.0.40
codegen_flags: <defaults>
</compile_context>

<pallas_src>
import math

import numpy as np
import jax
import jax.numpy as jnp
from jax.experimental import pallas as pl
from jax.experimental.pallas import tpu as pltpu

_EPS = 1e-5                      # torch GroupNorm default eps
_SQRT2_INV = 1.0 / math.sqrt(2.0)
_VMEM_LIMIT = 48 * 1024 * 1024   # v7x-safe (physical VMEM is 64 MiB per TC)


# ----------------------------------------------------------------------------
# In-kernel helpers
# ----------------------------------------------------------------------------
def _gelu(x):
    # exact (erf based) GELU == torch.nn.GELU(), f32 math (v5e-safe)
    return 0.5 * x * (1.0 + jax.lax.erf(x * _SQRT2_INV))


def _mm(w_bf16, x_f32):
    # bf16 operands, f32 accumulation: native MXU rate on v5e/v6e/v7x.
    return jnp.dot(w_bf16, x_f32.astype(jnp.bfloat16),
                   preferred_element_type=jnp.float32)


def _split_streams(x, k):
    # x: (C, k*Lp) stream-major (stream r holds spatial positions p ≡ r mod k)
    c, s = x.shape
    lp = s // k
    return [x[:, r * lp:(r + 1) * lp] for r in range(k)]


def _neighbor_taps(x, k, replicate):
    # Returns (left, right), each (C, k*Lp), where for stream r / index m
    # (spatial position p = k*m + r):  left = y[p-1], right = y[p+1],
    # with replicate-edge or zero padding at the two spatial ends.
    s = _split_streams(x, k)
    zero = jnp.zeros_like(s[0][:, :1])
    fill_l = s[0][:, :1] if replicate else zero
    fill_r = s[-1][:, -1:] if replicate else zero
    left = [jnp.concatenate([fill_l, s[-1][:, :-1]], axis=1)] + s[:-1]
    right = s[1:] + [jnp.concatenate([s[0][:, 1:], fill_r], axis=1)]
    return jnp.concatenate(left, axis=1), jnp.concatenate(right, axis=1)


def _conv3(x, k, w_cat, b, replicate):
    # Conv1d(k=3, pad=1) on the interleaved signal represented by k streams:
    # one fused MXU matmul, taps concatenated on the contraction axis.
    left, right = _neighbor_taps(x, k, replicate)
    op = jnp.concatenate([left, x, right], axis=0)          # (3C, k*Lp)
    return _mm(w_cat, op) + b                                # (C_out, k*Lp)


def _convt(x, k, w_even, w_odd, b):
    # ConvTranspose1d(k=4, s=2, p=1):
    #   out[2p]   = W1^T y[p]   + W3^T y[p-1]     (y[-1] = 0)
    #   out[2p+1] = W0^T y[p+1] + W2^T y[p]       (y[T]  = 0)
    # Input: k streams -> output: 2k streams (stream 2r = even of stream r,
    # stream 2r+1 = odd of stream r), stream-major along lanes.
    left, right = _neighbor_taps(x, k, replicate=False)
    even = _mm(w_even, jnp.concatenate([x, left], axis=0)) + b
    odd = _mm(w_odd, jnp.concatenate([right, x], axis=0)) + b
    ev = _split_streams(even, k)
    od = _split_streams(odd, k)
    pieces = []
    for r in range(k):
        pieces += [ev[r], od[r]]
    return jnp.concatenate(pieces, axis=1)                   # (C_out, 2k*Lp)


def _group_norm_gelu(y, gamma, beta, num_groups):
    # Per-sample GroupNorm (grid step == one batch element), exact two-pass
    # f32 statistics.  Group reduction over channels is a static sublane
    # slice-sum-broadcast loop (no MXU, no HIGHEST-precision matvec).
    c, s = y.shape
    cs = c // num_groups
    inv_count = 1.0 / float(cs * s)

    def gsum(v):                                             # v: (C, 1)
        if cs == 1:
            return v
        pieces = [jnp.broadcast_to(
            jnp.sum(v[g * cs:(g + 1) * cs, :], axis=0, keepdims=True), (cs, 1))
            for g in range(num_groups)]
        return jnp.concatenate(pieces, axis=0)

    mean = gsum(jnp.sum(y, axis=1, keepdims=True)) * inv_count
    d = y - mean
    var = gsum(jnp.sum(d * d, axis=1, keepdims=True)) * inv_count
    inv = jax.lax.rsqrt(var + _EPS)
    return _gelu(d * inv * gamma + beta)


def _make_decoder_kernel(num_blocks, group_counts):
    # group_counts: static tuple of (gn1_groups, gn2_groups) per block.
    def kernel(*refs):
        z_ref, o_ref = refs[0], refs[-1]
        prm = refs[1:-1]
        pos = [0]

        def nxt():
            r = prm[pos[0]]
            pos[0] += 1
            return r[...]

        # 1x1 projection + GELU (latent already nearest-upsampled by wrapper)
        w_p, b_p = nxt(), nxt()
        x = _gelu(_mm(w_p, z_ref[...]) + b_p)                # (C, L0) f32
        k = 1
        for blk in range(num_blocks):
            g1, g2 = group_counts[blk]
            # ConvBlock: Conv1d(k=3, pad=1, replicate) + GroupNorm + GELU
            w_c, b_c, gm1, bt1 = nxt(), nxt(), nxt(), nxt()
            x = _group_norm_gelu(_conv3(x, k, w_c, b_c, True), gm1, bt1, g1)
            # ConvTranspose1d(k=4, s=2, p=1) + GroupNorm + GELU
            w_e, w_o, b_t, gm2, bt2 = nxt(), nxt(), nxt(), nxt(), nxt()
            x = _convt(x, k, w_e, w_o, b_t)
            k *= 2
            x = _group_norm_gelu(x, gm2, bt2, g2)
        # final Conv1d(k=3, pad=1, zeros), no norm / activation
        w_f, b_f = nxt(), nxt()
        o_ref[...] = _conv3(x, k, w_f, b_f, False).astype(o_ref.dtype)

    return kernel


# ----------------------------------------------------------------------------
# Weight re-layout (plain JAX, constant-folded under jit)
# ----------------------------------------------------------------------------
def _cat3_weights(w):
    # torch Conv1d weight (C_out, C_in, 3) -> fused (C_out, 3*C_in) bf16,
    # tap order [k=0 | k=1 | k=2] matching the [left | center | right] operand.
    return jnp.concatenate([w[:, :, 0], w[:, :, 1], w[:, :, 2]],
                           axis=1).astype(jnp.bfloat16)


def _col(v):
    return v.astype(jnp.float32).reshape(-1, 1)


def _prep_params(params):
    flat = [params["proj"]["w"].astype(jnp.bfloat16), _col(params["proj"]["b"])]
    for blk in params["blocks"]:
        flat += [_cat3_weights(blk["cb_w"]), _col(blk["cb_b"]),
                 _col(blk["gn1_g"]), _col(blk["gn1_b"])]
        wt = jnp.transpose(blk["ct_w"], (2, 1, 0))           # (4, C_out, C_in)
        flat += [jnp.concatenate([wt[1], wt[3]], axis=1).astype(jnp.bfloat16),
                 jnp.concatenate([wt[0], wt[2]], axis=1).astype(jnp.bfloat16),
                 _col(blk["ct_b"]), _col(blk["gn2_g"]), _col(blk["gn2_b"])]
    flat += [_cat3_weights(params["final"]["w"]), _col(params["final"]["b"])]
    return flat


# ----------------------------------------------------------------------------
# Full decoder forward (one fused pallas_call)
# ----------------------------------------------------------------------------
def lns_decoder_forward(z, params, cfg):
    nb = cfg["num_upsampling_blocks"]
    up = cfg["target_nx_full"] // cfg["final_latent_nx"] // (2 ** nb)
    # TODO(synk): nn.Upsample with a non-integer scale factor is not supported
    # here (the default / test configurations always yield an integer factor).
    n, c_lat, l_lat = z.shape
    l0 = l_lat * up
    # Nearest upsample of the tiny pre-projection latent (torch op order);
    # this is <1 KiB of HBM traffic, everything downstream stays in VMEM.
    z_up = jnp.repeat(z.astype(jnp.float32), up, axis=-1)

    flat = _prep_params(params)
    group_counts = tuple((blk["gn1_groups"], blk["gn2_groups"])
                         for blk in params["blocks"])
    c_out = params["final"]["w"].shape[0]
    k_fin = 2 ** nb
    s_fin = k_fin * l0

    kernel = _make_decoder_kernel(nb, group_counts)
    in_specs = [pl.BlockSpec((None, c_lat, l0), lambda b: (b, 0, 0))]
    in_specs += [pl.BlockSpec(p.shape, lambda b: (0, 0)) for p in flat]

    out = pl.pallas_call(
        kernel,
        out_shape=jax.ShapeDtypeStruct((n, c_out, s_fin), jnp.float32),
        grid=(n,),
        in_specs=in_specs,
        out_specs=pl.BlockSpec((None, c_out, s_fin), lambda b: (b, 0, 0)),
        compiler_params=pltpu.CompilerParams(
            dimension_semantics=("parallel",),   # megacore / v7x 2-TC sharding
            vmem_limit_bytes=_VMEM_LIMIT),
    )(z_up, *flat)

    # De-interleave the k_fin parity streams back to spatial order.  The
    # decoder output is tiny (N, C_out, target_nx), so this XLA transpose is
    # negligible; intermediate activations never left VMEM.
    out = (out.reshape(n, c_out, k_fin, l0)
              .transpose(0, 1, 3, 2)
              .reshape(n, c_out, s_fin))
    if out.shape[-1] != cfg["target_nx_full"]:
        # F.interpolate(mode='linear', align_corners=False) fallback (JAX glue)
        out = jax.image.resize(out, out.shape[:-1] + (cfg["target_nx_full"],),
                               method="linear")
    return out


# ----------------------------------------------------------------------------
# Pure-JAX reference (correctness check).  Matmul operands are cast to bf16
# exactly like the kernel's MXU operands; all accumulation / GroupNorm / GELU
# math is f32, matching the kernel.
# ----------------------------------------------------------------------------
def _bf16(x):
    return x.astype(jnp.bfloat16)


def _ref_gelu(x):
    return jax.nn.gelu(x, approximate=False)


def _ref_group_norm(x, gamma, beta, num_groups):
    n, c, length = x.shape
    xg = x.reshape(n, num_groups, c // num_groups, length)
    mean = xg.mean(axis=(2, 3), keepdims=True)
    var = ((xg - mean) ** 2).mean(axis=(2, 3), keepdims=True)
    xn = ((xg - mean) / jnp.sqrt(var + _EPS)).reshape(n, c, length)
    return xn * gamma[None, :, None] + beta[None, :, None]


def _ref_conv3(x, w, b, pad_mode):
    n, c_in, length = x.shape
    xp = jnp.pad(x, ((0, 0), (0, 0), (1, 1)), mode=pad_mode)
    y = sum(jnp.einsum("oi,nil->nol", _bf16(w[:, :, k]),
                       _bf16(xp[..., k:k + length]),
                       preferred_element_type=jnp.float32)
            for k in range(3))
    return y + b[None, :, None]


def _ref_convt(x, w, b):
    n, c_in, length = x.shape
    c_out = w.shape[1]
    full = jnp.zeros((n, c_out, 2 * length + 2), jnp.float32)
    contrib = jnp.einsum("nil,iok->nolk", _bf16(x), _bf16(w),
                         preferred_element_type=jnp.float32)  # (N, C_out, L, 4)
    for k in range(4):
        full = full.at[:, :, k:k + 2 * length:2].add(contrib[..., k])
    return full[:, :, 1:2 * length + 1] + b[None, :, None]


def ref_forward(z, params, cfg):
    up = (cfg["target_nx_full"] // cfg["final_latent_nx"]
          // (2 ** cfg["num_upsampling_blocks"]))
    x = jnp.repeat(z, up, axis=-1)                        # upsample first (torch)
    x = _ref_gelu(jnp.einsum("oi,nil->nol", _bf16(params["proj"]["w"]),
                             _bf16(x), preferred_element_type=jnp.float32)
                  + params["proj"]["b"][None, :, None])
    for blk in params["blocks"]:
        x = _ref_gelu(_ref_group_norm(
            _ref_conv3(x, blk["cb_w"], blk["cb_b"], "edge"),
            blk["gn1_g"], blk["gn1_b"], blk["gn1_groups"]))
        x = _ref_gelu(_ref_group_norm(
            _ref_convt(x, blk["ct_w"], blk["ct_b"]),
            blk["gn2_g"], blk["gn2_b"], blk["gn2_groups"]))
    x = _ref_conv3(x, params["final"]["w"], params["final"]["b"], "constant")
    return x


# ----------------------------------------------------------------------------
# Deterministic parameter init (shapes follow LNS_Decoder.__init__)
# ----------------------------------------------------------------------------
def init_params(key, cfg):
    lat, out_ch = cfg["latent_channels"], cfg["output_channels"]
    w0, nb = cfg["initial_width_encoder"], cfg["num_upsampling_blocks"]
    keys = iter(jax.random.split(key, 4 + 8 * nb))

    def nrm(shape, fan_in):
        return jax.random.normal(next(keys), shape, jnp.float32) / np.sqrt(float(fan_in))

    cur = w0 * 2 ** (nb - 1)
    params = {"proj": {"w": nrm((cur, lat), lat), "b": nrm((cur,), 4.0)},
              "blocks": []}
    for i in range(nb):
        oc = w0 * 2 ** (nb - 1 - i - 1) if i < nb - 1 else w0
        blk = {
            "cb_w": nrm((cur, cur, 3), 3 * cur),             # Conv1d k=3 replicate
            "cb_b": nrm((cur,), 4.0),
            "gn1_g": 1.0 + 0.1 * jax.random.normal(next(keys), (cur,), jnp.float32),
            "gn1_b": 0.1 * jax.random.normal(next(keys), (cur,), jnp.float32),
            "gn1_groups": min(32, cur),
            "ct_w": nrm((cur, oc, 4), 4 * cur),              # ConvTranspose1d k=4 s=2 p=1
            "ct_b": nrm((oc,), 4.0),
            "gn2_g": 1.0 + 0.1 * jax.random.normal(next(keys), (oc,), jnp.float32),
            "gn2_b": 0.1 * jax.random.normal(next(keys), (oc,), jnp.float32),
            "gn2_groups": min(32, oc),
        }
        params["blocks"].append(blk)
        cur = oc
    params["final"] = {"w": nrm((out_ch, cur, 3), 3 * cur), "b": nrm((out_ch,), 4.0)}
    return params


# ----------------------------------------------------------------------------
if __name__ == "__main__":
    cfg = dict(latent_channels=4, output_channels=3, initial_width_encoder=32,
               num_upsampling_blocks=2, final_latent_nx=8, target_nx_full=64)
    key = jax.random.PRNGKey(0)
    kp, kz = jax.random.split(key)
    params = init_params(kp, cfg)

    batch = 2
    z = jax.random.normal(kz, (batch, cfg["latent_channels"],
                               cfg["final_latent_nx"]), jnp.float32)

    # params / cfg are closed over so group counts / shapes stay static.
    fwd = jax.jit(lambda zz: lns_decoder_forward(zz, params, cfg))
    out = jax.block_until_ready(fwd(z))

    assert out.shape == (batch, cfg["output_channels"], cfg["target_nx_full"]), out.shape
    assert out.dtype == jnp.float32

    ref_fn = jax.jit(lambda zz: ref_forward(zz, params, cfg))
    ref = jax.block_until_ready(ref_fn(z))
    np.testing.assert_allclose(np.asarray(out, np.float32),
                               np.asarray(ref, np.float32),
                               rtol=1e-2, atol=1e-2)

    print("KERNEL_OK")
</pallas_src>

<mosaic_0001>
module attributes {stable_mosaic.version = 11 : i64} {
  func.func @kernel(%arg0: i32, %arg1: memref<1x4x16xf32, #tpu.memory_space<vmem>>, %arg2: memref<64x4xbf16, #tpu.memory_space<vmem>>, %arg3: memref<64x1xf32, #tpu.memory_space<vmem>>, %arg4: memref<64x192xbf16, #tpu.memory_space<vmem>>, %arg5: memref<64x1xf32, #tpu.memory_space<vmem>>, %arg6: memref<64x1xf32, #tpu.memory_space<vmem>>, %arg7: memref<64x1xf32, #tpu.memory_space<vmem>>, %arg8: memref<32x128xbf16, #tpu.memory_space<vmem>>, %arg9: memref<32x128xbf16, #tpu.memory_space<vmem>>, %arg10: memref<32x1xf32, #tpu.memory_space<vmem>>, %arg11: memref<32x1xf32, #tpu.memory_space<vmem>>, %arg12: memref<32x1xf32, #tpu.memory_space<vmem>>, %arg13: memref<32x96xbf16, #tpu.memory_space<vmem>>, %arg14: memref<32x1xf32, #tpu.memory_space<vmem>>, %arg15: memref<32x1xf32, #tpu.memory_space<vmem>>, %arg16: memref<32x1xf32, #tpu.memory_space<vmem>>, %arg17: memref<32x64xbf16, #tpu.memory_space<vmem>>, %arg18: memref<32x64xbf16, #tpu.memory_space<vmem>>, %arg19: memref<32x1xf32, #tpu.memory_space<vmem>>, %arg20: memref<32x1xf32, #tpu.memory_space<vmem>>, %arg21: memref<32x1xf32, #tpu.memory_space<vmem>>, %arg22: memref<3x96xbf16, #tpu.memory_space<vmem>>, %arg23: memref<3x1xf32, #tpu.memory_space<vmem>>, %arg24: memref<1x3x64xf32, #tpu.memory_space<vmem>>) attributes {dimension_semantics = [#tpu.dimension_semantics<parallel>], iteration_bounds = array<i64: 2>, scalar_prefetch = 0 : i64, scratch_operands = 0 : i64, tpu.core_type = #tpu.core_type<tc>, window_params = [{transform_indices = @transform_0, window_bounds = array<i64: 1, 4, 16>}, {pipeline_mode = #tpu.pipeline_mode<synchronous>, transform_indices = @transform_1, window_bounds = array<i64: 64, 4>}, {pipeline_mode = #tpu.pipeline_mode<synchronous>, transform_indices = @transform_2, window_bounds = array<i64: 64, 1>}, {pipeline_mode = #tpu.pipeline_mode<synchronous>, transform_indices = @transform_3, window_bounds = array<i64: 64, 192>}, {pipeline_mode = #tpu.pipeline_mode<synchronous>, transform_indices = @transform_4, window_bounds = array<i64: 64, 1>}, {pipeline_mode = #tpu.pipeline_mode<synchronous>, transform_indices = @transform_5, window_bounds = array<i64: 64, 1>}, {pipeline_mode = #tpu.pipeline_mode<synchronous>, transform_indices = @transform_6, window_bounds = array<i64: 64, 1>}, {pipeline_mode = #tpu.pipeline_mode<synchronous>, transform_indices = @transform_7, window_bounds = array<i64: 32, 128>}, {pipeline_mode = #tpu.pipeline_mode<synchronous>, transform_indices = @transform_8, window_bounds = array<i64: 32, 128>}, {pipeline_mode = #tpu.pipeline_mode<synchronous>, transform_indices = @transform_9, window_bounds = array<i64: 32, 1>}, {pipeline_mode = #tpu.pipeline_mode<synchronous>, transform_indices = @transform_10, window_bounds = array<i64: 32, 1>}, {pipeline_mode = #tpu.pipeline_mode<synchronous>, transform_indices = @transform_11, window_bounds = array<i64: 32, 1>}, {pipeline_mode = #tpu.pipeline_mode<synchronous>, transform_indices = @transform_12, window_bounds = array<i64: 32, 96>}, {pipeline_mode = #tpu.pipeline_mode<synchronous>, transform_indices = @transform_13, window_bounds = array<i64: 32, 1>}, {pipeline_mode = #tpu.pipeline_mode<synchronous>, transform_indices = @transform_14, window_bounds = array<i64: 32, 1>}, {pipeline_mode = #tpu.pipeline_mode<synchronous>, transform_indices = @transform_15, window_bounds = array<i64: 32, 1>}, {pipeline_mode = #tpu.pipeline_mode<synchronous>, transform_indices = @transform_16, window_bounds = array<i64: 32, 64>}, {pipeline_mode = #tpu.pipeline_mode<synchronous>, transform_indices = @transform_17, window_bounds = array<i64: 32, 64>}, {pipeline_mode = #tpu.pipeline_mode<synchronous>, transform_indices = @transform_18, window_bounds = array<i64: 32, 1>}, {pipeline_mode = #tpu.pipeline_mode<synchronous>, transform_indices = @transform_19, window_bounds = array<i64: 32, 1>}, {pipeline_mode = #tpu.pipeline_mode<synchronous>, transform_indices = @transform_20, window_bounds = array<i64: 32, 1>}, {pipeline_mode = #tpu.pipeline_mode<synchronous>, transform_indices = @transform_21, window_bounds = array<i64: 3, 96>}, {pipeline_mode = #tpu.pipeline_mode<synchronous>, transform_indices = @transform_22, window_bounds = array<i64: 3, 1>}, {transform_indices = @transform_23, window_bounds = array<i64: 1, 3, 64>}]} {
    %c0 = arith.constant 0 : index
    %c0_0 = arith.constant 0 : index
    %0 = vector.load %arg2[%c0, %c0_0] : memref<64x4xbf16, #tpu.memory_space<vmem>>, vector<64x4xbf16>
    %c0_1 = arith.constant 0 : index
    %c0_2 = arith.constant 0 : index
    %1 = vector.load %arg3[%c0_1, %c0_2] : memref<64x1xf32, #tpu.memory_space<vmem>>, vector<64x1xf32>
    %c0_3 = arith.constant 0 : index
    %c0_4 = arith.constant 0 : index
    %c0_5 = arith.constant 0 : index
    %2 = vector.load %arg1[%c0_3, %c0_4, %c0_5] : memref<1x4x16xf32, #tpu.memory_space<vmem>>, vector<1x4x16xf32>
    %3 = vector.shape_cast %2 : vector<1x4x16xf32> to vector<4x16xf32>
    %4 = arith.truncf %3 : vector<4x16xf32> to vector<4x16xbf16>
    %cst = arith.constant dense<0.000000e+00> : vector<64x16xf32>
    %5 = tpu.matmul %0, %4, %cst {dimension_numbers = #tpu.dot_dimension_numbers<[1], [0], [0], [1], [0, 0, 1, 1], [], []>} : vector<64x4xbf16>, vector<4x16xbf16>, vector<64x16xf32> -> vector<64x16xf32>
    %6 = vector.broadcast %1 : vector<64x1xf32> to vector<64x16xf32>
    %7 = arith.addf %5, %6 : vector<64x16xf32>
    %cst_6 = arith.constant 5.000000e-01 : f32
    %8 = vector.broadcast %cst_6 : f32 to vector<64x16xf32>
    %9 = arith.mulf %8, %7 : vector<64x16xf32>
    %cst_7 = arith.constant 0.707106769 : f32
    %10 = vector.broadcast %cst_7 : f32 to vector<64x16xf32>
    %11 = arith.mulf %7, %10 : vector<64x16xf32>
    %12 = math.erf %11 : vector<64x16xf32>
    %cst_8 = arith.constant 1.000000e+00 : f32
    %13 = vector.broadcast %cst_8 : f32 to vector<64x16xf32>
    %14 = arith.addf %13, %12 : vector<64x16xf32>
    %15 = arith.mulf %9, %14 : vector<64x16xf32>
    %c0_9 = arith.constant 0 : index
    %c0_10 = arith.constant 0 : index
    %16 = vector.load %arg4[%c0_9, %c0_10] : memref<64x192xbf16, #tpu.memory_space<vmem>>, vector<64x192xbf16>
    %c0_11 = arith.constant 0 : index
    %c0_12 = arith.constant 0 : index
    %17 = vector.load %arg5[%c0_11, %c0_12] : memref<64x1xf32, #tpu.memory_space<vmem>>, vector<64x1xf32>
    %c0_13 = arith.constant 0 : index
    %c0_14 = arith.constant 0 : index
    %18 = vector.load %arg6[%c0_13, %c0_14] : memref<64x1xf32, #tpu.memory_space<vmem>>, vector<64x1xf32>
    %c0_15 = arith.constant 0 : index
    %c0_16 = arith.constant 0 : index
    %19 = vector.load %arg7[%c0_15, %c0_16] : memref<64x1xf32, #tpu.memory_space<vmem>>, vector<64x1xf32>
    %20 = vector.extract_strided_slice %15 {offsets = [0, 0], sizes = [64, 1], strides = [1, 1]} : vector<64x16xf32> to vector<64x1xf32>
    %21 = vector.extract_strided_slice %15 {offsets = [0, 15], sizes = [64, 1], strides = [1, 1]} : vector<64x16xf32> to vector<64x1xf32>
    %22 = vector.extract_strided_slice %15 {offsets = [0, 0], sizes = [64, 15], strides = [1, 1]} : vector<64x16xf32> to vector<64x15xf32>
    %23 = tpu.concatenate %20, %22 in 1 : vector<64x1xf32>, vector<64x15xf32> -> vector<64x16xf32>
    %24 = vector.extract_strided_slice %15 {offsets = [0, 1], sizes = [64, 15], strides = [1, 1]} : vector<64x16xf32> to vector<64x15xf32>
    %25 = tpu.concatenate %24, %21 in 1 : vector<64x15xf32>, vector<64x1xf32> -> vector<64x16xf32>
    %26 = tpu.concatenate %23, %15, %25 in 0 : vector<64x16xf32>, vector<64x16xf32>, vector<64x16xf32> -> vector<192x16xf32>
    %27 = arith.truncf %26 : vector<192x16xf32> to vector<192x16xbf16>
    %cst_17 = arith.constant dense<0.000000e+00> : vector<64x16xf32>
    %28 = tpu.matmul %16, %27, %cst_17 {dimension_numbers = #tpu.dot_dimension_numbers<[1], [0], [0], [1], [0, 0, 1, 1], [], []>} : vector<64x192xbf16>, vector<192x16xbf16>, vector<64x16xf32> -> vector<64x16xf32>
    %29 = vector.broadcast %17 : vector<64x1xf32> to vector<64x16xf32>
    %30 = arith.addf %28, %29 : vector<64x16xf32>
    %cst_18 = arith.constant dense<0.000000e+00> : vector<64xf32>
    %31 = vector.multi_reduction <add>, %30, %cst_18 [1] : vector<64x16xf32> to vector<64xf32>
    %32 = vector.shape_cast %31 : vector<64xf32> to vector<64x1xf32>
    %33 = vector.extract_strided_slice %32 {offsets = [0, 0], sizes = [2, 1], strides = [1, 1]} : vector<64x1xf32> to vector<2x1xf32>
    %cst_19 = arith.constant dense<0.000000e+00> : vector<1xf32>
    %34 = vector.multi_reduction <add>, %33, %cst_19 [0] : vector<2x1xf32> to vector<1xf32>
    %35 = vector.shape_cast %34 : vector<1xf32> to vector<1x1xf32>
    %36 = vector.shape_cast %35 : vector<1x1xf32> to vector<1x1xf32>
    %37 = vector.broadcast %36 : vector<1x1xf32> to vector<2x1xf32>
    %38 = vector.extract_strided_slice %32 {offsets = [2, 0], sizes = [2, 1], strides = [1, 1]} : vector<64x1xf32> to vector<2x1xf32>
    %cst_20 = arith.constant dense<0.000000e+00> : vector<1xf32>
    %39 = vector.multi_reduction <add>, %38, %cst_20 [0] : vector<2x1xf32> to vector<1xf32>
    %40 = vector.shape_cast %39 : vector<1xf32> to vector<1x1xf32>
    %41 = vector.shape_cast %40 : vector<1x1xf32> to vector<1x1xf32>
    %42 = vector.broadcast %41 : vector<1x1xf32> to vector<2x1xf32>
    %43 = vector.extract_strided_slice %32 {offsets = [4, 0], sizes = [2, 1], strides = [1, 1]} : vector<64x1xf32> to vector<2x1xf32>
    %cst_21 = arith.constant dense<0.000000e+00> : vector<1xf32>
    %44 = vector.multi_reduction <add>, %43, %cst_21 [0] : vector<2x1xf32> to vector<1xf32>
    %45 = vector.shape_cast %44 : vector<1xf32> to vector<1x1xf32>
    %46 = vector.shape_cast %45 : vector<1x1xf32> to vector<1x1xf32>
    %47 = vector.broadcast %46 : vector<1x1xf32> to vector<2x1xf32>
    %48 = vector.extract_strided_slice %32 {offsets = [6, 0], sizes = [2, 1], strides = [1, 1]} : vector<64x1xf32> to vector<2x1xf32>
    %cst_22 = arith.constant dense<0.000000e+00> : vector<1xf32>
    %49 = vector.multi_reduction <add>, %48, %cst_22 [0] : vector<2x1xf32> to vector<1xf32>
    %50 = vector.shape_cast %49 : vector<1xf32> to vector<1x1xf32>
    %51 = vector.shape_cast %50 : vector<1x1xf32> to vector<1x1xf32>
    %52 = vector.broadcast %51 : vector<1x1xf32> to vector<2x1xf32>
    %53 = vector.extract_strided_slice %32 {offsets = [8, 0], sizes = [2, 1], strides = [1, 1]} : vector<64x1xf32> to vector<2x1xf32>
    %cst_23 = arith.constant dense<0.000000e+00> : vector<1xf32>
    %54 = vector.multi_reduction <add>, %53, %cst_23 [0] : vector<2x1xf32> to vector<1xf32>
    %55 = vector.shape_cast %54 : vector<1xf32> to vector<1x1xf32>
    %56 = vector.shape_cast %55 : vector<1x1xf32> to vector<1x1xf32>
    %57 = vector.broadcast %56 : vector<1x1xf32> to vector<2x1xf32>
    %58 = vector.extract_strided_slice %32 {offsets = [10, 0], sizes = [2, 1], strides = [1, 1]} : vector<64x1xf32> to vector<2x1xf32>
    %cst_24 = arith.constant dense<0.000000e+00> : vector<1xf32>
    %59 = vector.multi_reduction <add>, %58, %cst_24 [0] : vector<2x1xf32> to vector<1xf32>
    %60 = vector.shape_cast %59 : vector<1xf32> to vector<1x1xf32>
    %61 = vector.shape_cast %60 : vector<1x1xf32> to vector<1x1xf32>
    %62 = vector.broadcast %61 : vector<1x1xf32> to vector<2x1xf32>
    %63 = vector.extract_strided_slice %32 {offsets = [12, 0], sizes = [2, 1], strides = [1, 1]} : vector<64x1xf32> to vector<2x1xf32>
    %cst_25 = arith.constant dense<0.000000e+00> : vector<1xf32>
    %64 = vector.multi_reduction <add>, %63, %cst_25 [0] : vector<2x1xf32> to vector<1xf32>
    %65 = vector.shape_cast %64 : vector<1xf32> to vector<1x1xf32>
    %66 = vector.shape_cast %65 : vector<1x1xf32> to vector<1x1xf32>
    %67 = vector.broadcast %66 : vector<1x1xf32> to vector<2x1xf32>
    %68 = vector.extract_strided_slice %32 {offsets = [14, 0], sizes = [2, 1], strides = [1, 1]} : vector<64x1xf32> to vector<2x1xf32>
    %cst_26 = arith.constant dense<0.000000e+00> : vector<1xf32>
    %69 = vector.multi_reduction <add>, %68, %cst_26 [0] : vector<2x1xf32> to vector<1xf32>
    %70 = vector.shape_cast %69 : vector<1xf32> to vector<1x1xf32>
    %71 = vector.shape_cast %70 : vector<1x1xf32> to vector<1x1xf32>
    %72 = vector.broadcast %71 : vector<1x1xf32> to vector<2x1xf32>
    %73 = vector.extract_strided_slice %32 {offsets = [16, 0], sizes = [2, 1], strides = [1, 1]} : vector<64x1xf32> to vector<2x1xf32>
    %cst_27 = arith.constant dense<0.000000e+00> : vector<1xf32>
    %74 = vector.multi_reduction <add>, %73, %cst_27 [0] : vector<2x1xf32> to vector<1xf32>
    %75 = vector.shape_cast %74 : vector<1xf32> to vector<1x1xf32>
    %76 = vector.shape_cast %75 : vector<1x1xf32> to vector<1x1xf32>
    %77 = vector.broadcast %76 : vector<1x1xf32> to vector<2x1xf32>
    %78 = vector.extract_strided_slice %32 {offsets = [18, 0], sizes = [2, 1], strides = [1, 1]} : vector<64x1xf32> to vector<2x1xf32>
    %cst_28 = arith.constant dense<0.000000e+00> : vector<1xf32>
    %79 = vector.multi_reduction <add>, %78, %cst_28 [0] : vector<2x1xf32> to vector<1xf32>
    %80 = vector.shape_cast %79 : vector<1xf32> to vector<1x1xf32>
    %81 = vector.shape_cast %80 : vector<1x1xf32> to vector<1x1xf32>
    %82 = vector.broadcast %81 : vector<1x1xf32> to vector<2x1xf32>
    %83 = vector.extract_strided_slice %32 {offsets = [20, 0], sizes = [2, 1], strides = [1, 1]} : vector<64x1xf32> to vector<2x1xf32>
    %cst_29 = arith.constant dense<0.000000e+00> : vector<1xf32>
    %84 = vector.multi_reduction <add>, %83, %cst_29 [0] : vector<2x1xf32> to vector<1xf32>
    %85 = vector.shape_cast %84 : vector<1xf32> to vector<1x1xf32>
    %86 = vector.shape_cast %85 : vector<1x1xf32> to vector<1x1xf32>
    %87 = vector.broadcast %86 : vector<1x1xf32> to vector<2x1xf32>
    %88 = vector.extract_strided_slice %32 {offsets = [22, 0], sizes = [2, 1], strides = [1, 1]} : vector<64x1xf32> to vector<2x1xf32>
    %cst_30 = arith.constant dense<0.000000e+00> : vector<1xf32>
    %89 = vector.multi_reduction <add>, %88, %cst_30 [0] : vector<2x1xf32> to vector<1xf32>
    %90 = vector.shape_cast %89 : vector<1xf32> to vector<1x1xf32>
    %91 = vector.shape_cast %90 : vector<1x1xf32> to vector<1x1xf32>
    %92 = vector.broadcast %91 : vector<1x1xf32> to vector<2x1xf32>
    %93 = vector.extract_strided_slice %32 {offsets = [24, 0], sizes = [2, 1], strides = [1, 1]} : vector<64x1xf32> to vector<2x1xf32>
    %cst_31 = arith.constant dense<0.000000e+00> : vector<1xf32>
    %94 = vector.multi_reduction <add>, %93, %cst_31 [0] : vector<2x1xf32> to vector<1xf32>
    %95 = vector.shape_cast %94 : vector<1xf32> to vector<1x1xf32>
    %96 = vector.shape_cast %95 : vector<1x1xf32> to vector<1x1xf32>
    %97 = vector.broadcast %96 : vector<1x1xf32> to vector<2x1xf32>
    %98 = vector.extract_strided_slice %32 {offsets = [26, 0], sizes = [2, 1], strides = [1, 1]} : vector<64x1xf32> to vector<2x1xf32>
    %cst_32 = arith.constant dense<0.000000e+00> : vector<1xf32>
    %99 = vector.multi_reduction <add>, %98, %cst_32 [0] : vector<2x1xf32> to vector<1xf32>
    %100 = vector.shape_cast %99 : vector<1xf32> to vector<1x1xf32>
    %101 = vector.shape_cast %100 : vector<1x1xf32> to vector<1x1xf32>
    %102 = vector.broadcast %101 : vector<1x1xf32> to vector<2x1xf32>
    %103 = vector.extract_strided_slice %32 {offsets = [28, 0], sizes = [2, 1], strides = [1, 1]} : vector<64x1xf32> to vector<2x1xf32>
    %cst_33 = arith.constant dense<0.000000e+00> : vector<1xf32>
    %104 = vector.multi_reduction <add>, %103, %cst_33 [0] : vector<2x1xf32> to vector<1xf32>
    %105 = vector.shape_cast %104 : vector<1xf32> to vector<1x1xf32>
    %106 = vector.shape_cast %105 : vector<1x1xf32> to vector<1x1xf32>
    %107 = vector.broadcast %106 : vector<1x1xf32> to vector<2x1xf32>
    %108 = vector.extract_strided_slice %32 {offsets = [30, 0], sizes = [2, 1], strides = [1, 1]} : vector<64x1xf32> to vector<2x1xf32>
    %cst_34 = arith.constant dense<0.000000e+00> : vector<1xf32>
    %109 = vector.multi_reduction <add>, %108, %cst_34 [0] : vector<2x1xf32> to vector<1xf32>
    %110 = vector.shape_cast %109 : vector<1xf32> to vector<1x1xf32>
    %111 = vector.shape_cast %110 : vector<1x1xf32> to vector<1x1xf32>
    %112 = vector.broadcast %111 : vector<1x1xf32> to vector<2x1xf32>
    %113 = vector.extract_strided_slice %32 {offsets = [32, 0], sizes = [2, 1], strides = [1, 1]} : vector<64x1xf32> to vector<2x1xf32>
    %cst_35 = arith.constant dense<0.000000e+00> : vector<1xf32>
    %114 = vector.multi_reduction <add>, %113, %cst_35 [0] : vector<2x1xf32> to vector<1xf32>
    %115 = vector.shape_cast %114 : vector<1xf32> to vector<1x1xf32>
    %116 = vector.shape_cast %115 : vector<1x1xf32> to vector<1x1xf32>
    %117 = vector.broadcast %116 : vector<1x1xf32> to vector<2x1xf32>
    %118 = vector.extract_strided_slice %32 {offsets = [34, 0], sizes = [2, 1], strides = [1, 1]} : vector<64x1xf32> to vector<2x1xf32>
    %cst_36 = arith.constant dense<0.000000e+00> : vector<1xf32>
    %119 = vector.multi_reduction <add>, %118, %cst_36 [0] : vector<2x1xf32> to vector<1xf32>
    %120 = vector.shape_cast %119 : vector<1xf32> to vector<1x1xf32>
    %121 = vector.shape_cast %120 : vector<1x1xf32> to vector<1x1xf32>
    %122 = vector.broadcast %121 : vector<1x1xf32> to vector<2x1xf32>
    %123 = vector.extract_strided_slice %32 {offsets = [36, 0], sizes = [2, 1], strides = [1, 1]} : vector<64x1xf32> to vector<2x1xf32>
    %cst_37 = arith.constant dense<0.000000e+00> : vector<1xf32>
    %124 = vector.multi_reduction <add>, %123, %cst_37 [0] : vector<2x1xf32> to vector<1xf32>
    %125 = vector.shape_cast %124 : vector<1xf32> to vector<1x1xf32>
    %126 = vector.shape_cast %125 : vector<1x1xf32> to vector<1x1xf32>
    %127 = vector.broadcast %126 : vector<1x1xf32> to vector<2x1xf32>
    %128 = vector.extract_strided_slice %32 {offsets = [38, 0], sizes = [2, 1], strides = [1, 1]} : vector<64x1xf32> to vector<2x1xf32>
    %cst_38 = arith.constant dense<0.000000e+00> : vector<1xf32>
    %129 = vector.multi_reduction <add>, %128, %cst_38 [0] : vector<2x1xf32> to vector<1xf32>
    %130 = vector.shape_cast %129 : vector<1xf32> to vector<1x1xf32>
    %131 = vector.shape_cast %130 : vector<1x1xf32> to vector<1x1xf32>
    %132 = vector.broadcast %131 : vector<1x1xf32> to vector<2x1xf32>
    %133 = vector.extract_strided_slice %32 {offsets = [40, 0], sizes = [2, 1], strides = [1, 1]} : vector<64x1xf32> to vector<2x1xf32>
    %cst_39 = arith.constant dense<0.000000e+00> : vector<1xf32>
    %134 = vector.multi_reduction <add>, %133, %cst_39 [0] : vector<2x1xf32> to vector<1xf32>
    %135 = vector.shape_cast %134 : vector<1xf32> to vector<1x1xf32>
    %136 = vector.shape_cast %135 : vector<1x1xf32> to vector<1x1xf32>
    %137 = vector.broadcast %136 : vector<1x1xf32> to vector<2x1xf32>
    %138 = vector.extract_strided_slice %32 {offsets = [42, 0], sizes = [2, 1], strides = [1, 1]} : vector<64x1xf32> to vector<2x1xf32>
    %cst_40 = arith.constant dense<0.000000e+00> : vector<1xf32>
    %139 = vector.multi_reduction <add>, %138, %cst_40 [0] : vector<2x1xf32> to vector<1xf32>
    %140 = vector.shape_cast %139 : vector<1xf32> to vector<1x1xf32>
    %141 = vector.shape_cast %140 : vector<1x1xf32> to vector<1x1xf32>
    %142 = vector.broadcast %141 : vector<1x1xf32> to vector<2x1xf32>
    %143 = vector.extract_strided_slice %32 {offsets = [44, 0], sizes = [2, 1], strides = [1, 1]} : vector<64x1xf32> to vector<2x1xf32>
    %cst_41 = arith.constant dense<0.000000e+00> : vector<1xf32>
    %144 = vector.multi_reduction <add>, %143, %cst_41 [0] : vector<2x1xf32> to vector<1xf32>
    %145 = vector.shape_cast %144 : vector<1xf32> to vector<1x1xf32>
    %146 = vector.shape_cast %145 : vector<1x1xf32> to vector<1x1xf32>
    %147 = vector.broadcast %146 : vector<1x1xf32> to vector<2x1xf32>
    %148 = vector.extract_strided_slice %32 {offsets = [46, 0], sizes = [2, 1], strides = [1, 1]} : vector<64x1xf32> to vector<2x1xf32>
    %cst_42 = arith.constant dense<0.000000e+00> : vector<1xf32>
    %149 = vector.multi_reduction <add>, %148, %cst_42 [0] : vector<2x1xf32> to vector<1xf32>
    %150 = vector.shape_cast %149 : vector<1xf32> to vector<1x1xf32>
    %151 = vector.shape_cast %150 : vector<1x1xf32> to vector<1x1xf32>
    %152 = vector.broadcast %151 : vector<1x1xf32> to vector<2x1xf32>
    %153 = vector.extract_strided_slice %32 {offsets = [48, 0], sizes = [2, 1], strides = [1, 1]} : vector<64x1xf32> to vector<2x1xf32>
    %cst_43 = arith.constant dense<0.000000e+00> : vector<1xf32>
    %154 = vector.multi_reduction <add>, %153, %cst_43 [0] : vector<2x1xf32> to vector<1xf32>
    %155 = vector.shape_cast %154 : vector<1xf32> to vector<1x1xf32>
    %156 = vector.shape_cast %155 : vector<1x1xf32> to vector<1x1xf32>
    %157 = vector.broadcast %156 : vector<1x1xf32> to vector<2x1xf32>
    %158 = vector.extract_strided_slice %32 {offsets = [50, 0], sizes = [2, 1], strides = [1, 1]} : vector<64x1xf32> to vector<2x1xf32>
    %cst_44 = arith.constant dense<0.000000e+00> : vector<1xf32>
    %159 = vector.multi_reduction <add>, %158, %cst_44 [0] : vector<2x1xf32> to vector<1xf32>
    %160 = vector.shape_cast %159 : vector<1xf32> to vector<1x1xf32>
    %161 = vector.shape_cast %160 : vector<1x1xf32> to vector<1x1xf32>
    %162 = vector.broadcast %161 : vector<1x1xf32> to vector<2x1xf32>
    %163 = vector.extract_strided_slice %32 {offsets = [52, 0], sizes = [2, 1], strides = [1, 1]} : vector<64x1xf32> to vector<2x1xf32>
    %cst_45 = arith.constant dense<0.000000e+00> : vector<1xf32>
    %164 = vector.multi_reduction <add>, %163, %cst_45 [0] : vector<2x1xf32> to vector<1xf32>
    %165 = vector.shape_cast %164 : vector<1xf32> to vector<1x1xf32>
    %166 = vector.shape_cast %165 : vector<1x1xf32> to vector<1x1xf32>
    %167 = vector.broadcast %166 : vector<1x1xf32> to vector<2x1xf32>
    %168 = vector.extract_strided_slice %32 {offsets = [54, 0], sizes = [2, 1], strides = [1, 1]} : vector<64x1xf32> to vector<2x1xf32>
    %cst_46 = arith.constant dense<0.000000e+00> : vector<1xf32>
    %169 = vector.multi_reduction <add>, %168, %cst_46 [0] : vector<2x1xf32> to vector<1xf32>
    %170 = vector.shape_cast %169 : vector<1xf32> to vector<1x1xf32>
    %171 = vector.shape_cast %170 : vector<1x1xf32> to vector<1x1xf32>
    %172 = vector.broadcast %171 : vector<1x1xf32> to vector<2x1xf32>
    %173 = vector.extract_strided_slice %32 {offsets = [56, 0], sizes = [2, 1], strides = [1, 1]} : vector<64x1xf32> to vector<2x1xf32>
    %cst_47 = arith.constant dense<0.000000e+00> : vector<1xf32>
    %174 = vector.multi_reduction <add>, %173, %cst_47 [0] : vector<2x1xf32> to vector<1xf32>
    %175 = vector.shape_cast %174 : vector<1xf32> to vector<1x1xf32>
    %176 = vector.shape_cast %175 : vector<1x1xf32> to vector<1x1xf32>
    %177 = vector.broadcast %176 : vector<1x1xf32> to vector<2x1xf32>
    %178 = vector.extract_strided_slice %32 {offsets = [58, 0], sizes = [2, 1], strides = [1, 1]} : vector<64x1xf32> to vector<2x1xf32>
    %cst_48 = arith.constant dense<0.000000e+00> : vector<1xf32>
    %179 = vector.multi_reduction <add>, %178, %cst_48 [0] : vector<2x1xf32> to vector<1xf32>
    %180 = vector.shape_cast %179 : vector<1xf32> to vector<1x1xf32>
    %181 = vector.shape_cast %180 : vector<1x1xf32> to vector<1x1xf32>
    %182 = vector.broadcast %181 : vector<1x1xf32> to vector<2x1xf32>
    %183 = vector.extract_strided_slice %32 {offsets = [60, 0], sizes = [2, 1], strides = [1, 1]} : vector<64x1xf32> to vector<2x1xf32>
    %cst_49 = arith.constant dense<0.000000e+00> : vector<1xf32>
    %184 = vector.multi_reduction <add>, %183, %cst_49 [0] : vector<2x1xf32> to vector<1xf32>
    %185 = vector.shape_cast %184 : vector<1xf32> to vector<1x1xf32>
    %186 = vector.shape_cast %185 : vector<1x1xf32> to vector<1x1xf32>
    %187 = vector.broadcast %186 : vector<1x1xf32> to vector<2x1xf32>
    %188 = vector.extract_strided_slice %32 {offsets = [62, 0], sizes = [2, 1], strides = [1, 1]} : vector<64x1xf32> to vector<2x1xf32>
    %cst_50 = arith.constant dense<0.000000e+00> : vector<1xf32>
    %189 = vector.multi_reduction <add>, %188, %cst_50 [0] : vector<2x1xf32> to vector<1xf32>
    %190 = vector.shape_cast %189 : vector<1xf32> to vector<1x1xf32>
    %191 = vector.shape_cast %190 : vector<1x1xf32> to vector<1x1xf32>
    %192 = vector.broadcast %191 : vector<1x1xf32> to vector<2x1xf32>
    %193 = tpu.concatenate %37, %42, %47, %52, %57, %62, %67, %72, %77, %82, %87, %92, %97, %102, %107, %112 in 0 : vector<2x1xf32>, vector<2x1xf32>, vector<2x1xf32>, vector<2x1xf32>, vector<2x1xf32>, vector<2x1xf32>, vector<2x1xf32>, vector<2x1xf32>, vector<2x1xf32>, vector<2x1xf32>, vector<2x1xf32>, vector<2x1xf32>, vector<2x1xf32>, vector<2x1xf32>, vector<2x1xf32>, vector<2x1xf32> -> vector<32x1xf32>
    %194 = tpu.concatenate %117, %122, %127, %132, %137, %142, %147, %152, %157, %162, %167, %172, %177, %182, %187, %192 in 0 : vector<2x1xf32>, vector<2x1xf32>, vector<2x1xf32>, vector<2x1xf32>, vector<2x1xf32>, vector<2x1xf32>, vector<2x1xf32>, vector<2x1xf32>, vector<2x1xf32>, vector<2x1xf32>, vector<2x1xf32>, vector<2x1xf32>, vector<2x1xf32>, vector<2x1xf32>, vector<2x1xf32>, vector<2x1xf32> -> vector<32x1xf32>
    %195 = tpu.concatenate %193, %194 in 0 : vector<32x1xf32>, vector<32x1xf32> -> vector<64x1xf32>
    %cst_51 = arith.constant 3.125000e-02 : f32
    %196 = vector.broadcast %cst_51 : f32 to vector<64x1xf32>
    %197 = arith.mulf %195, %196 : vector<64x1xf32>
    %198 = vector.broadcast %197 : vector<64x1xf32> to vector<64x16xf32>
    %199 = arith.subf %30, %198 : vector<64x16xf32>
    %200 = arith.mulf %199, %199 : vector<64x16xf32>
    %cst_52 = arith.constant dense<0.000000e+00> : vector<64xf32>
    %201 = vector.multi_reduction <add>, %200, %cst_52 [1] : vector<64x16xf32> to vector<64xf32>
    %202 = vector.shape_cast %201 : vector<64xf32> to vector<64x1xf32>
    %203 = vector.extract_strided_slice %202 {offsets = [0, 0], sizes = [2, 1], strides = [1, 1]} : vector<64x1xf32> to vector<2x1xf32>
    %cst_53 = arith.constant dense<0.000000e+00> : vector<1xf32>
    %204 = vector.multi_reduction <add>, %203, %cst_53 [0] : vector<2x1xf32> to vector<1xf32>
    %205 = vector.shape_cast %204 : vector<1xf32> to vector<1x1xf32>
    %206 = vector.shape_cast %205 : vector<1x1xf32> to vector<1x1xf32>
    %207 = vector.broadcast %206 : vector<1x1xf32> to vector<2x1xf32>
    %208 = vector.extract_strided_slice %202 {offsets = [2, 0], sizes = [2, 1], strides = [1, 1]} : vector<64x1xf32> to vector<2x1xf32>
    %cst_54 = arith.constant dense<0.000000e+00> : vector<1xf32>
    %209 = vector.multi_reduction <add>, %208, %cst_54 [0] : vector<2x1xf32> to vector<1xf32>
    %210 = vector.shape_cast %209 : vector<1xf32> to vector<1x1xf32>
    %211 = vector.shape_cast %210 : vector<1x1xf32> to vector<1x1xf32>
    %212 = vector.broadcast %211 : vector<1x1xf32> to vector<2x1xf32>
    %213 = vector.extract_strided_slice %202 {offsets = [4, 0], sizes = [2, 1], strides = [1, 1]} : vector<64x1xf32> to vector<2x1xf32>
    %cst_55 = arith.constant dense<0.000000e+00> : vector<1xf32>
    %214 = vector.multi_reduction <add>, %213, %cst_55 [0] : vector<2x1xf32> to vector<1xf32>
    %215 = vector.shape_cast %214 : vector<1xf32> to vector<1x1xf32>
    %216 = vector.shape_cast %215 : vector<1x1xf32> to vector<1x1xf32>
    %217 = vector.broadcast %216 : vector<1x1xf32> to vector<2x1xf32>
    %218 = vector.extract_strided_slice %202 {offsets = [6, 0], sizes = [2, 1], strides = [1, 1]} : vector<64x1xf32> to vector<2x1xf32>
    %cst_56 = arith.constant dense<0.000000e+00> : vector<1xf32>
    %219 = vector.multi_reduction <add>, %218, %cst_56 [0] : vector<2x1xf32> to vector<1xf32>
    %220 = vector.shape_cast %219 : vector<1xf32> to vector<1x1xf32>
    %221 = vector.shape_cast %220 : vector<1x1xf32> to vector<1x1xf32>
    %222 = vector.broadcast %221 : vector<1x1xf32> to vector<2x1xf32>
    %223 = vector.extract_strided_slice %202 {offsets = [8, 0], sizes = [2, 1], strides = [1, 1]} : vector<64x1xf32> to vector<2x1xf32>
    %cst_57 = arith.constant dense<0.000000e+00> : vector<1xf32>
    %224 = vector.multi_reduction <add>, %223, %cst_57 [0] : vector<2x1xf32> to vector<1xf32>
    %225 = vector.shape_cast %224 : vector<1xf32> to vector<1x1xf32>
    %226 = vector.shape_cast %225 : vector<1x1xf32> to vector<1x1xf32>
    %227 = vector.broadcast %226 : vector<1x1xf32> to vector<2x1xf32>
    %228 = vector.extract_strided_slice %202 {offsets = [10, 0], sizes = [2, 1], strides = [1, 1]} : vector<64x1xf32> to vector<2x1xf32>
    %cst_58 = arith.constant dense<0.000000e+00> : vector<1xf32>
    %229 = vector.multi_reduction <add>, %228, %cst_58 [0] : vector<2x1xf32> to vector<1xf32>
    %230 = vector.shape_cast %229 : vector<1xf32> to vector<1x1xf32>
    %231 = vector.shape_cast %230 : vector<1x1xf32> to vector<1x1xf32>
    %232 = vector.broadcast %231 : vector<1x1xf32> to vector<2x1xf32>
    %233 = vector.extract_strided_slice %202 {offsets = [12, 0], sizes = [2, 1], strides = [1, 1]} : vector<64x1xf32> to vector<2x1xf32>
    %cst_59 = arith.constant dense<0.000000e+00> : vector<1xf32>
    %234 = vector.multi_reduction <add>, %233, %cst_59 [0] : vector<2x1xf32> to vector<1xf32>
    %235 = vector.shape_cast %234 : vector<1xf32> to vector<1x1xf32>
    %236 = vector.shape_cast %235 : vector<1x1xf32> to vector<1x1xf32>
    %237 = vector.broadcast %236 : vector<1x1xf32> to vector<2x1xf32>
    %238 = vector.extract_strided_slice %202 {offsets = [14, 0], sizes = [2, 1], strides = [1, 1]} : vector<64x1xf32> to vector<2x1xf32>
    %cst_60 = arith.constant dense<0.000000e+00> : vector<1xf32>
    %239 = vector.multi_reduction <add>, %238, %cst_60 [0] : vector<2x1xf32> to vector<1xf32>
    %240 = vector.shape_cast %239 : vector<1xf32> to vector<1x1xf32>
    %241 = vector.shape_cast %240 : vector<1x1xf32> to vector<1x1xf32>
    %242 = vector.broadcast %241 : vector<1x1xf32> to vector<2x1xf32>
    %243 = vector.extract_strided_slice %202 {offsets = [16, 0], sizes = [2, 1], strides = [1, 1]} : vector<64x1xf32> to vector<2x1xf32>
    %cst_61 = arith.constant dense<0.000000e+00> : vector<1xf32>
    %244 = vector.multi_reduction <add>, %243, %cst_61 [0] : vector<2x1xf32> to vector<1xf32>
    %245 = vector.shape_cast %244 : vector<1xf32> to vector<1x1xf32>
    %246 = vector.shape_cast %245 : vector<1x1xf32> to vector<1x1xf32>
    %247 = vector.broadcast %246 : vector<1x1xf32> to vector<2x1xf32>
    %248 = vector.extract_strided_slice %202 {offsets = [18, 0], sizes = [2, 1], strides = [1, 1]} : vector<64x1xf32> to vector<2x1xf32>
    %cst_62 = arith.constant dense<0.000000e+00> : vector<1xf32>
    %249 = vector.multi_reduction <add>, %248, %cst_62 [0] : vector<2x1xf32> to vector<1xf32>
    %250 = vector.shape_cast %249 : vector<1xf32> to vector<1x1xf32>
    %251 = vector.shape_cast %250 : vector<1x1xf32> to vector<1x1xf32>
    %252 = vector.broadcast %251 : vector<1x1xf32> to vector<2x1xf32>
    %253 = vector.extract_strided_slice %202 {offsets = [20, 0], sizes = [2, 1], strides = [1, 1]} : vector<64x1xf32> to vector<2x1xf32>
    %cst_63 = arith.constant dense<0.000000e+00> : vector<1xf32>
    %254 = vector.multi_reduction <add>, %253, %cst_63 [0] : vector<2x1xf32> to vector<1xf32>
    %255 = vector.shape_cast %254 : vector<1xf32> to vector<1x1xf32>
    %256 = vector.shape_cast %255 : vector<1x1xf32> to vector<1x1xf32>
    %257 = vector.broadcast %256 : vector<1x1xf32> to vector<2x1xf32>
    %258 = vector.extract_strided_slice %202 {offsets = [22, 0], sizes = [2, 1], strides = [1, 1]} : vector<64x1xf32> to vector<2x1xf32>
    %cst_64 = arith.constant dense<0.000000e+00> : vector<1xf32>
    %259 = vector.multi_reduction <add>, %258, %cst_64 [0] : vector<2x1xf32> to vector<1xf32>
    %260 = vector.shape_cast %259 : vector<1xf32> to vector<1x1xf32>
    %261 = vector.shape_cast %260 : vector<1x1xf32> to vector<1x1xf32>
    %262 = vector.broadcast %261 : vector<1x1xf32> to vector<2x1xf32>
    %263 = vector.extract_strided_slice %202 {offsets = [24, 0], sizes = [2, 1], strides = [1, 1]} : vector<64x1xf32> to vector<2x1xf32>
    %cst_65 = arith.constant dense<0.000000e+00> : vector<1xf32>
    %264 = vector.multi_reduction <add>, %263, %cst_65 [0] : vector<2x1xf32> to vector<1xf32>
    %265 = vector.shape_cast %264 : vector<1xf32> to vector<1x1xf32>
    %266 = vector.shape_cast %265 : vector<1x1xf32> to vector<1x1xf32>
    %267 = vector.broadcast %266 : vector<1x1xf32> to vector<2x1xf32>
    %268 = vector.extract_strided_slice %202 {offsets = [26, 0], sizes = [2, 1], strides = [1, 1]} : vector<64x1xf32> to vector<2x1xf32>
    %cst_66 = arith.constant dense<0.000000e+00> : vector<1xf32>
    %269 = vector.multi_reduction <add>, %268, %cst_66 [0] : vector<2x1xf32> to vector<1xf32>
    %270 = vector.shape_cast %269 : vector<1xf32> to vector<1x1xf32>
    %271 = vector.shape_cast %270 : vector<1x1xf32> to vector<1x1xf32>
    %272 = vector.broadcast %271 : vector<1x1xf32> to vector<2x1xf32>
    %273 = vector.extract_strided_slice %202 {offsets = [28, 0], sizes = [2, 1], strides = [1, 1]} : vector<64x1xf32> to vector<2x1xf32>
    %cst_67 = arith.constant dense<0.000000e+00> : vector<1xf32>
    %274 = vector.multi_reduction <add>, %273, %cst_67 [0] : vector<2x1xf32> to vector<1xf32>
    %275 = vector.shape_cast %274 : vector<1xf32> to vector<1x1xf32>
    %276 = vector.shape_cast %275 : vector<1x1xf32> to vector<1x1xf32>
    %277 = vector.broadcast %276 : vector<1x1xf32> to vector<2x1xf32>
    %278 = vector.extract_strided_slice %202 {offsets = [30, 0], sizes = [2, 1], strides = [1, 1]} : vector<64x1xf32> to vector<2x1xf32>
    %cst_68 = arith.constant dense<0.000000e+00> : vector<1xf32>
    %279 = vector.multi_reduction <add>, %278, %cst_68 [0] : vector<2x1xf32> to vector<1xf32>
    %280 = vector.shape_cast %279 : vector<1xf32> to vector<1x1xf32>
    %281 = vector.shape_cast %280 : vector<1x1xf32> to vector<1x1xf32>
    %282 = vector.broadcast %281 : vector<1x1xf32> to vector<2x1xf32>
    %283 = vector.extract_strided_slice %202 {offsets = [32, 0], sizes = [2, 1], strides = [1, 1]} : vector<64x1xf32> to vector<2x1xf32>
    %cst_69 = arith.constant dense<0.000000e+00> : vector<1xf32>
    %284 = vector.multi_reduction <add>, %283, %cst_69 [0] : vector<2x1xf32> to vector<1xf32>
    %285 = vector.shape_cast %284 : vector<1xf32> to vector<1x1xf32>
    %286 = vector.shape_cast %285 : vector<1x1xf32> to vector<1x1xf32>
    %287 = vector.broadcast %286 : vector<1x1xf32> to vector<2x1xf32>
    %288 = vector.extract_strided_slice %202 {offsets = [34, 0], sizes = [2, 1], strides = [1, 1]} : vector<64x1xf32> to vector<2x1xf32>
    %cst_70 = arith.constant dense<0.000000e+00> : vector<1xf32>
    %289 = vector.multi_reduction <add>, %288, %cst_70 [0] : vector<2x1xf32> to vector<1xf32>
    %290 = vector.shape_cast %289 : vector<1xf32> to vector<1x1xf32>
    %291 = vector.shape_cast %290 : vector<1x1xf32> to vector<1x1xf32>
    %292 = vector.broadcast %291 : vector<1x1xf32> to vector<2x1xf32>
    %293 = vector.extract_strided_slice %202 {offsets = [36, 0], sizes = [2, 1], strides = [1, 1]} : vector<64x1xf32> to vector<2x1xf32>
    %cst_71 = arith.constant dense<0.000000e+00> : vector<1xf32>
    %294 = vector.multi_reduction <add>, %293, %cst_71 [0] : vector<2x1xf32> to vector<1xf32>
    %295 = vector.shape_cast %294 : vector<1xf32> to vector<1x1xf32>
    %296 = vector.shape_cast %295 : vector<1x1xf32> to vector<1x1xf32>
    %297 = vector.broadcast %296 : vector<1x1xf32> to vector<2x1xf32>
    %298 = vector.extract_strided_slice %202 {offsets = [38, 0], sizes = [2, 1], strides = [1, 1]} : vector<64x1xf32> to vector<2x1xf32>
    %cst_72 = arith.constant dense<0.000000e+00> : vector<1xf32>
    %299 = vector.multi_reduction <add>, %298, %cst_72 [0] : vector<2x1xf32> to vector<1xf32>
    %300 = vector.shape_cast %299 : vector<1xf32> to vector<1x1xf32>
    %301 = vector.shape_cast %300 : vector<1x1xf32> to vector<1x1xf32>
    %302 = vector.broadcast %301 : vector<1x1xf32> to vector<2x1xf32>
    %303 = vector.extract_strided_slice %202 {offsets = [40, 0], sizes = [2, 1], strides = [1, 1]} : vector<64x1xf32> to vector<2x1xf32>
    %cst_73 = arith.constant dense<0.000000e+00> : vector<1xf32>
    %304 = vector.multi_reduction <add>, %303, %cst_73 [0] : vector<2x1xf32> to vector<1xf32>
    %305 = vector.shape_cast %304 : vector<1xf32> to vector<1x1xf32>
    %306 = vector.shape_cast %305 : vector<1x1xf32> to vector<1x1xf32>
    %307 = vector.broadcast %306 : vector<1x1xf32> to vector<2x1xf32>
    %308 = vector.extract_strided_slice %202 {offsets = [42, 0], sizes = [2, 1], strides = [1, 1]} : vector<64x1xf32> to vector<2x1xf32>
    %cst_74 = arith.constant dense<0.000000e+00> : vector<1xf32>
    %309 = vector.multi_reduction <add>, %308, %cst_74 [0] : vector<2x1xf32> to vector<1xf32>
    %310 = vector.shape_cast %309 : vector<1xf32> to vector<1x1xf32>
    %311 = vector.shape_cast %310 : vector<1x1xf32> to vector<1x1xf32>
    %312 = vector.broadcast %311 : vector<1x1xf32> to vector<2x1xf32>
    %313 = vector.extract_strided_slice %202 {offsets = [44, 0], sizes = [2, 1], strides = [1, 1]} : vector<64x1xf32> to vector<2x1xf32>
    %cst_75 = arith.constant dense<0.000000e+00> : vector<1xf32>
    %314 = vector.multi_reduction <add>, %313, %cst_75 [0] : vector<2x1xf32> to vector<1xf32>
    %315 = vector.shape_cast %314 : vector<1xf32> to vector<1x1xf32>
    %316 = vector.shape_cast %315 : vector<1x1xf32> to vector<1x1xf32>
    %317 = vector.broadcast %316 : vector<1x1xf32> to vector<2x1xf32>
    %318 = vector.extract_strided_slice %202 {offsets = [46, 0], sizes = [2, 1], strides = [1, 1]} : vector<64x1xf32> to vector<2x1xf32>
    %cst_76 = arith.constant dense<0.000000e+00> : vector<1xf32>
    %319 = vector.multi_reduction <add>, %318, %cst_76 [0] : vector<2x1xf32> to vector<1xf32>
    %320 = vector.shape_cast %319 : vector<1xf32> to vector<1x1xf32>
    %321 = vector.shape_cast %320 : vector<1x1xf32> to vector<1x1xf32>
    %322 = vector.broadcast %321 : vector<1x1xf32> to vector<2x1xf32>
    %323 = vector.extract_strided_slice %202 {offsets = [48, 0], sizes = [2, 1], strides = [1, 1]} : vector<64x1xf32> to vector<2x1xf32>
    %cst_77 = arith.constant dense<0.000000e+00> : vector<1xf32>
    %324 = vector.multi_reduction <add>, %323, %cst_77 [0] : vector<2x1xf32> to vector<1xf32>
    %325 = vector.shape_cast %324 : vector<1xf32> to vector<1x1xf32>
    %326 = vector.shape_cast %325 : vector<1x1xf32> to vector<1x1xf32>
    %327 = vector.broadcast %326 : vector<1x1xf32> to vector<2x1xf32>
    %328 = vector.extract_strided_slice %202 {offsets = [50, 0], sizes = [2, 1], strides = [1, 1]} : vector<64x1xf32> to vector<2x1xf32>
    %cst_78 = arith.constant dense<0.000000e+00> : vector<1xf32>
    %329 = vector.multi_reduction <add>, %328, %cst_78 [0] : vector<2x1xf32> to vector<1xf32>
    %330 = vector.shape_cast %329 : vector<1xf32> to vector<1x1xf32>
    %331 = vector.shape_cast %330 : vector<1x1xf32> to vector<1x1xf32>
    %332 = vector.broadcast %331 : vector<1x1xf32> to vector<2x1xf32>
    %333 = vector.extract_strided_slice %202 {offsets = [52, 0], sizes = [2, 1], strides = [1, 1]} : vector<64x1xf32> to vector<2x1xf32>
    %cst_79 = arith.constant dense<0.000000e+00> : vector<1xf32>
    %334 = vector.multi_reduction <add>, %333, %cst_79 [0] : vector<2x1xf32> to vector<1xf32>
    %335 = vector.shape_cast %334 : vector<1xf32> to vector<1x1xf32>
    %336 = vector.shape_cast %335 : vector<1x1xf32> to vector<1x1xf32>
    %337 = vector.broadcast %336 : vector<1x1xf32> to vector<2x1xf32>
    %338 = vector.extract_strided_slice %202 {offsets = [54, 0], sizes = [2, 1], strides = [1, 1]} : vector<64x1xf32> to vector<2x1xf32>
    %cst_80 = arith.constant dense<0.000000e+00> : vector<1xf32>
    %339 = vector.multi_reduction <add>, %338, %cst_80 [0] : vector<2x1xf32> to vector<1xf32>
    %340 = vector.shape_cast %339 : vector<1xf32> to vector<1x1xf32>
    %341 = vector.shape_cast %340 : vector<1x1xf32> to vector<1x1xf32>
    %342 = vector.broadcast %341 : vector<1x1xf32> to vector<2x1xf32>
    %343 = vector.extract_strided_slice %202 {offsets = [56, 0], sizes = [2, 1], strides = [1, 1]} : vector<64x1xf32> to vector<2x1xf32>
    %cst_81 = arith.constant dense<0.000000e+00> : vector<1xf32>
    %344 = vector.multi_reduction <add>, %343, %cst_81 [0] : vector<2x1xf32> to vector<1xf32>
    %345 = vector.shape_cast %344 : vector<1xf32> to vector<1x1xf32>
    %346 = vector.shape_cast %345 : vector<1x1xf32> to vector<1x1xf32>
    %347 = vector.broadcast %346 : vector<1x1xf32> to vector<2x1xf32>
    %348 = vector.extract_strided_slice %202 {offsets = [58, 0], sizes = [2, 1], strides = [1, 1]} : vector<64x1xf32> to vector<2x1xf32>
    %cst_82 = arith.constant dense<0.000000e+00> : vector<1xf32>
    %349 = vector.multi_reduction <add>, %348, %cst_82 [0] : vector<2x1xf32> to vector<1xf32>
    %350 = vector.shape_cast %349 : vector<1xf32> to vector<1x1xf32>
    %351 = vector.shape_cast %350 : vector<1x1xf32> to vector<1x1xf32>
    %352 = vector.broadcast %351 : vector<1x1xf32> to vector<2x1xf32>
    %353 = vector.extract_strided_slice %202 {offsets = [60, 0], sizes = [2, 1], strides = [1, 1]} : vector<64x1xf32> to vector<2x1xf32>
    %cst_83 = arith.constant dense<0.000000e+00> : vector<1xf32>
    %354 = vector.multi_reduction <add>, %353, %cst_83 [0] : vector<2x1xf32> to vector<1xf32>
    %355 = vector.shape_cast %354 : vector<1xf32> to vector<1x1xf32>
    %356 = vector.shape_cast %355 : vector<1x1xf32> to vector<1x1xf32>
    %357 = vector.broadcast %356 : vector<1x1xf32> to vector<2x1xf32>
    %358 = vector.extract_strided_slice %202 {offsets = [62, 0], sizes = [2, 1], strides = [1, 1]} : vector<64x1xf32> to vector<2x1xf32>
    %cst_84 = arith.constant dense<0.000000e+00> : vector<1xf32>
    %359 = vector.multi_reduction <add>, %358, %cst_84 [0] : vector<2x1xf32> to vector<1xf32>
    %360 = vector.shape_cast %359 : vector<1xf32> to vector<1x1xf32>
    %361 = vector.shape_cast %360 : vector<1x1xf32> to vector<1x1xf32>
    %362 = vector.broadcast %361 : vector<1x1xf32> to vector<2x1xf32>
    %363 = tpu.concatenate %207, %212, %217, %222, %227, %232, %237, %242, %247, %252, %257, %262, %267, %272, %277, %282 in 0 : vector<2x1xf32>, vector<2x1xf32>, vector<2x1xf32>, vector<2x1xf32>, vector<2x1xf32>, vector<2x1xf32>, vector<2x1xf32>, vector<2x1xf32>, vector<2x1xf32>, vector<2x1xf32>, vector<2x1xf32>, vector<2x1xf32>, vector<2x1xf32>, vector<2x1xf32>, vector<2x1xf32>, vector<2x1xf32> -> vector<32x1xf32>
    %364 = tpu.concatenate %287, %292, %297, %302, %307, %312, %317, %322, %327, %332, %337, %342, %347, %352, %357, %362 in 0 : vector<2x1xf32>, vector<2x1xf32>, vector<2x1xf32>, vector<2x1xf32>, vector<2x1xf32>, vector<2x1xf32>, vector<2x1xf32>, vector<2x1xf32>, vector<2x1xf32>, vector<2x1xf32>, vector<2x1xf32>, vector<2x1xf32>, vector<2x1xf32>, vector<2x1xf32>, vector<2x1xf32>, vector<2x1xf32> -> vector<32x1xf32>
    %365 = tpu.concatenate %363, %364 in 0 : vector<32x1xf32>, vector<32x1xf32> -> vector<64x1xf32>
    %cst_85 = arith.constant 3.125000e-02 : f32
    %366 = vector.broadcast %cst_85 : f32 to vector<64x1xf32>
    %367 = arith.mulf %365, %366 : vector<64x1xf32>
    %cst_86 = arith.constant 9.99999974E-6 : f32
    %368 = vector.broadcast %cst_86 : f32 to vector<64x1xf32>
    %369 = arith.addf %367, %368 : vector<64x1xf32>
    %370 = math.rsqrt %369 : vector<64x1xf32>
    %371 = vector.broadcast %370 : vector<64x1xf32> to vector<64x16xf32>
    %372 = arith.mulf %199, %371 : vector<64x16xf32>
    %373 = vector.broadcast %18 : vector<64x1xf32> to vector<64x16xf32>
    %374 = arith.mulf %372, %373 : vector<64x16xf32>
    %375 = vector.broadcast %19 : vector<64x1xf32> to vector<64x16xf32>
    %376 = arith.addf %374, %375 : vector<64x16xf32>
    %cst_87 = arith.constant 5.000000e-01 : f32
    %377 = vector.broadcast %cst_87 : f32 to vector<64x16xf32>
    %378 = arith.mulf %377, %376 : vector<64x16xf32>
    %cst_88 = arith.constant 0.707106769 : f32
    %379 = vector.broadcast %cst_88 : f32 to vector<64x16xf32>
    %380 = arith.mulf %376, %379 : vector<64x16xf32>
    %381 = math.erf %380 : vector<64x16xf32>
    %cst_89 = arith.constant 1.000000e+00 : f32
    %382 = vector.broadcast %cst_89 : f32 to vector<64x16xf32>
    %383 = arith.addf %382, %381 : vector<64x16xf32>
    %384 = arith.mulf %378, %383 : vector<64x16xf32>
    %c0_90 = arith.constant 0 : index
    %c0_91 = arith.constant 0 : index
    %385 = vector.load %arg8[%c0_90, %c0_91] : memref<32x128xbf16, #tpu.memory_space<vmem>>, vector<32x128xbf16>
    %c0_92 = arith.constant 0 : index
    %c0_93 = arith.constant 0 : index
    %386 = vector.load %arg9[%c0_92, %c0_93] : memref<32x128xbf16, #tpu.memory_space<vmem>>, vector<32x128xbf16>
    %c0_94 = arith.constant 0 : index
    %c0_95 = arith.constant 0 : index
    %387 = vector.load %arg10[%c0_94, %c0_95] : memref<32x1xf32, #tpu.memory_space<vmem>>, vector<32x1xf32>
    %c0_96 = arith.constant 0 : index
    %c0_97 = arith.constant 0 : index
    %388 = vector.load %arg11[%c0_96, %c0_97] : memref<32x1xf32, #tpu.memory_space<vmem>>, vector<32x1xf32>
    %c0_98 = arith.constant 0 : index
    %c0_99 = arith.constant 0 : index
    %389 = vector.load %arg12[%c0_98, %c0_99] : memref<32x1xf32, #tpu.memory_space<vmem>>, vector<32x1xf32>
    %cst_100 = arith.constant 0.000000e+00 : f32
    %390 = vector.broadcast %cst_100 : f32 to vector<64x1xf32>
    %391 = vector.extract_strided_slice %384 {offsets = [0, 0], sizes = [64, 15], strides = [1, 1]} : vector<64x16xf32> to vector<64x15xf32>
    %392 = tpu.concatenate %390, %391 in 1 : vector<64x1xf32>, vector<64x15xf32> -> vector<64x16xf32>
    %393 = vector.extract_strided_slice %384 {offsets = [0, 1], sizes = [64, 15], strides = [1, 1]} : vector<64x16xf32> to vector<64x15xf32>
    %394 = tpu.concatenate %393, %390 in 1 : vector<64x15xf32>, vector<64x1xf32> -> vector<64x16xf32>
    %395 = tpu.concatenate %384, %392 in 0 : vector<64x16xf32>, vector<64x16xf32> -> vector<128x16xf32>
    %396 = arith.truncf %395 : vector<128x16xf32> to vector<128x16xbf16>
    %cst_101 = arith.constant dense<0.000000e+00> : vector<32x16xf32>
    %397 = tpu.matmul %385, %396, %cst_101 {dimension_numbers = #tpu.dot_dimension_numbers<[1], [0], [0], [1], [0, 0, 1, 1], [], []>} : vector<32x128xbf16>, vector<128x16xbf16>, vector<32x16xf32> -> vector<32x16xf32>
    %398 = vector.broadcast %387 : vector<32x1xf32> to vector<32x16xf32>
    %399 = arith.addf %397, %398 : vector<32x16xf32>
    %400 = tpu.concatenate %394, %384 in 0 : vector<64x16xf32>, vector<64x16xf32> -> vector<128x16xf32>
    %401 = arith.truncf %400 : vector<128x16xf32> to vector<128x16xbf16>
    %cst_102 = arith.constant dense<0.000000e+00> : vector<32x16xf32>
    %402 = tpu.matmul %386, %401, %cst_102 {dimension_numbers = #tpu.dot_dimension_numbers<[1], [0], [0], [1], [0, 0, 1, 1], [], []>} : vector<32x128xbf16>, vector<128x16xbf16>, vector<32x16xf32> -> vector<32x16xf32>
    %403 = vector.broadcast %387 : vector<32x1xf32> to vector<32x16xf32>
    %404 = arith.addf %402, %403 : vector<32x16xf32>
    %405 = tpu.concatenate %399, %404 in 1 : vector<32x16xf32>, vector<32x16xf32> -> vector<32x32xf32>
    %cst_103 = arith.constant dense<0.000000e+00> : vector<32xf32>
    %406 = vector.multi_reduction <add>, %405, %cst_103 [1] : vector<32x32xf32> to vector<32xf32>
    %407 = vector.shape_cast %406 : vector<32xf32> to vector<32x1xf32>
    %cst_104 = arith.constant 3.125000e-02 : f32
    %408 = vector.broadcast %cst_104 : f32 to vector<32x1xf32>
    %409 = arith.mulf %407, %408 : vector<32x1xf32>
    %410 = vector.broadcast %409 : vector<32x1xf32> to vector<32x32xf32>
    %411 = arith.subf %405, %410 : vector<32x32xf32>
    %412 = arith.mulf %411, %411 : vector<32x32xf32>
    %cst_105 = arith.constant dense<0.000000e+00> : vector<32xf32>
    %413 = vector.multi_reduction <add>, %412, %cst_105 [1] : vector<32x32xf32> to vector<32xf32>
    %414 = vector.shape_cast %413 : vector<32xf32> to vector<32x1xf32>
    %cst_106 = arith.constant 3.125000e-02 : f32
    %415 = vector.broadcast %cst_106 : f32 to vector<32x1xf32>
    %416 = arith.mulf %414, %415 : vector<32x1xf32>
    %cst_107 = arith.constant 9.99999974E-6 : f32
    %417 = vector.broadcast %cst_107 : f32 to vector<32x1xf32>
    %418 = arith.addf %416, %417 : vector<32x1xf32>
    %419 = math.rsqrt %418 : vector<32x1xf32>
    %420 = vector.broadcast %419 : vector<32x1xf32> to vector<32x32xf32>
    %421 = arith.mulf %411, %420 : vector<32x32xf32>
    %422 = vector.broadcast %388 : vector<32x1xf32> to vector<32x32xf32>
    %423 = arith.mulf %421, %422 : vector<32x32xf32>
    %424 = vector.broadcast %389 : vector<32x1xf32> to vector<32x32xf32>
    %425 = arith.addf %423, %424 : vector<32x32xf32>
    %cst_108 = arith.constant 5.000000e-01 : f32
    %426 = vector.broadcast %cst_108 : f32 to vector<32x32xf32>
    %427 = arith.mulf %426, %425 : vector<32x32xf32>
    %cst_109 = arith.constant 0.707106769 : f32
    %428 = vector.broadcast %cst_109 : f32 to vector<32x32xf32>
    %429 = arith.mulf %425, %428 : vector<32x32xf32>
    %430 = math.erf %429 : vector<32x32xf32>
    %cst_110 = arith.constant 1.000000e+00 : f32
    %431 = vector.broadcast %cst_110 : f32 to vector<32x32xf32>
    %432 = arith.addf %431, %430 : vector<32x32xf32>
    %433 = arith.mulf %427, %432 : vector<32x32xf32>
    %c0_111 = arith.constant 0 : index
    %c0_112 = arith.constant 0 : index
    %434 = vector.load %arg13[%c0_111, %c0_112] : memref<32x96xbf16, #tpu.memory_space<vmem>>, vector<32x96xbf16>
    %c0_113 = arith.constant 0 : index
    %c0_114 = arith.constant 0 : index
    %435 = vector.load %arg14[%c0_113, %c0_114] : memref<32x1xf32, #tpu.memory_space<vmem>>, vector<32x1xf32>
    %c0_115 = arith.constant 0 : index
    %c0_116 = arith.constant 0 : index
    %436 = vector.load %arg15[%c0_115, %c0_116] : memref<32x1xf32, #tpu.memory_space<vmem>>, vector<32x1xf32>
    %c0_117 = arith.constant 0 : index
    %c0_118 = arith.constant 0 : index
    %437 = vector.load %arg16[%c0_117, %c0_118] : memref<32x1xf32, #tpu.memory_space<vmem>>, vector<32x1xf32>
    %438 = vector.extract_strided_slice %433 {offsets = [0, 0], sizes = [32, 16], strides = [1, 1]} : vector<32x32xf32> to vector<32x16xf32>
    %439 = vector.extract_strided_slice %433 {offsets = [0, 16], sizes = [32, 16], strides = [1, 1]} : vector<32x32xf32> to vector<32x16xf32>
    %440 = vector.extract_strided_slice %438 {offsets = [0, 0], sizes = [32, 1], strides = [1, 1]} : vector<32x16xf32> to vector<32x1xf32>
    %441 = vector.extract_strided_slice %439 {offsets = [0, 15], sizes = [32, 1], strides = [1, 1]} : vector<32x16xf32> to vector<32x1xf32>
    %442 = vector.extract_strided_slice %439 {offsets = [0, 0], sizes = [32, 15], strides = [1, 1]} : vector<32x16xf32> to vector<32x15xf32>
    %443 = tpu.concatenate %440, %442 in 1 : vector<32x1xf32>, vector<32x15xf32> -> vector<32x16xf32>
    %444 = vector.extract_strided_slice %438 {offsets = [0, 1], sizes = [32, 15], strides = [1, 1]} : vector<32x16xf32> to vector<32x15xf32>
    %445 = tpu.concatenate %444, %441 in 1 : vector<32x15xf32>, vector<32x1xf32> -> vector<32x16xf32>
    %446 = tpu.concatenate %443, %438 in 1 : vector<32x16xf32>, vector<32x16xf32> -> vector<32x32xf32>
    %447 = tpu.concatenate %439, %445 in 1 : vector<32x16xf32>, vector<32x16xf32> -> vector<32x32xf32>
    %448 = tpu.concatenate %446, %433, %447 in 0 : vector<32x32xf32>, vector<32x32xf32>, vector<32x32xf32> -> vector<96x32xf32>
    %449 = arith.truncf %448 : vector<96x32xf32> to vector<96x32xbf16>
    %cst_119 = arith.constant dense<0.000000e+00> : vector<32x32xf32>
    %450 = tpu.matmul %434, %449, %cst_119 {dimension_numbers = #tpu.dot_dimension_numbers<[1], [0], [0], [1], [0, 0, 1, 1], [], []>} : vector<32x96xbf16>, vector<96x32xbf16>, vector<32x32xf32> -> vector<32x32xf32>
    %451 = vector.broadcast %435 : vector<32x1xf32> to vector<32x32xf32>
    %452 = arith.addf %450, %451 : vector<32x32xf32>
    %cst_120 = arith.constant dense<0.000000e+00> : vector<32xf32>
    %453 = vector.multi_reduction <add>, %452, %cst_120 [1] : vector<32x32xf32> to vector<32xf32>
    %454 = vector.shape_cast %453 : vector<32xf32> to vector<32x1xf32>
    %cst_121 = arith.constant 3.125000e-02 : f32
    %455 = vector.broadcast %cst_121 : f32 to vector<32x1xf32>
    %456 = arith.mulf %454, %455 : vector<32x1xf32>
    %457 = vector.broadcast %456 : vector<32x1xf32> to vector<32x32xf32>
    %458 = arith.subf %452, %457 : vector<32x32xf32>
    %459 = arith.mulf %458, %458 : vector<32x32xf32>
    %cst_122 = arith.constant dense<0.000000e+00> : vector<32xf32>
    %460 = vector.multi_reduction <add>, %459, %cst_122 [1] : vector<32x32xf32> to vector<32xf32>
    %461 = vector.shape_cast %460 : vector<32xf32> to vector<32x1xf32>
    %cst_123 = arith.constant 3.125000e-02 : f32
    %462 = vector.broadcast %cst_123 : f32 to vector<32x1xf32>
    %463 = arith.mulf %461, %462 : vector<32x1xf32>
    %cst_124 = arith.constant 9.99999974E-6 : f32
    %464 = vector.broadcast %cst_124 : f32 to vector<32x1xf32>
    %465 = arith.addf %463, %464 : vector<32x1xf32>
    %466 = math.rsqrt %465 : vector<32x1xf32>
    %467 = vector.broadcast %466 : vector<32x1xf32> to vector<32x32xf32>
    %468 = arith.mulf %458, %467 : vector<32x32xf32>
    %469 = vector.broadcast %436 : vector<32x1xf32> to vector<32x32xf32>
    %470 = arith.mulf %468, %469 : vector<32x32xf32>
    %471 = vector.broadcast %437 : vector<32x1xf32> to vector<32x32xf32>
    %472 = arith.addf %470, %471 : vector<32x32xf32>
    %cst_125 = arith.constant 5.000000e-01 : f32
    %473 = vector.broadcast %cst_125 : f32 to vector<32x32xf32>
    %474 = arith.mulf %473, %472 : vector<32x32xf32>
    %cst_126 = arith.constant 0.707106769 : f32
    %475 = vector.broadcast %cst_126 : f32 to vector<32x32xf32>
    %476 = arith.mulf %472, %475 : vector<32x32xf32>
    %477 = math.erf %476 : vector<32x32xf32>
    %cst_127 = arith.constant 1.000000e+00 : f32
    %478 = vector.broadcast %cst_127 : f32 to vector<32x32xf32>
    %479 = arith.addf %478, %477 : vector<32x32xf32>
    %480 = arith.mulf %474, %479 : vector<32x32xf32>
    %c0_128 = arith.constant 0 : index
    %c0_129 = arith.constant 0 : index
    %481 = vector.load %arg17[%c0_128, %c0_129] : memref<32x64xbf16, #tpu.memory_space<vmem>>, vector<32x64xbf16>
    %c0_130 = arith.constant 0 : index
    %c0_131 = arith.constant 0 : index
    %482 = vector.load %arg18[%c0_130, %c0_131] : memref<32x64xbf16, #tpu.memory_space<vmem>>, vector<32x64xbf16>
    %c0_132 = arith.constant 0 : index
    %c0_133 = arith.constant 0 : index
    %483 = vector.load %arg19[%c0_132, %c0_133] : memref<32x1xf32, #tpu.memory_space<vmem>>, vector<32x1xf32>
    %c0_134 = arith.constant 0 : index
    %c0_135 = arith.constant 0 : index
    %484 = vector.load %arg20[%c0_134, %c0_135] : memref<32x1xf32, #tpu.memory_space<vmem>>, vector<32x1xf32>
    %c0_136 = arith.constant 0 : index
    %c0_137 = arith.constant 0 : index
    %485 = vector.load %arg21[%c0_136, %c0_137] : memref<32x1xf32, #tpu.memory_space<vmem>>, vector<32x1xf32>
    %486 = vector.extract_strided_slice %480 {offsets = [0, 0], sizes = [32, 16], strides = [1, 1]} : vector<32x32xf32> to vector<32x16xf32>
    %487 = vector.extract_strided_slice %480 {offsets = [0, 16], sizes = [32, 16], strides = [1, 1]} : vector<32x32xf32> to vector<32x16xf32>
    %cst_138 = arith.constant 0.000000e+00 : f32
    %488 = vector.broadcast %cst_138 : f32 to vector<32x1xf32>
    %489 = vector.extract_strided_slice %487 {offsets = [0, 0], sizes = [32, 15], strides = [1, 1]} : vector<32x16xf32> to vector<32x15xf32>
    %490 = tpu.concatenate %488, %489 in 1 : vector<32x1xf32>, vector<32x15xf32> -> vector<32x16xf32>
    %491 = vector.extract_strided_slice %486 {offsets = [0, 1], sizes = [32, 15], strides = [1, 1]} : vector<32x16xf32> to vector<32x15xf32>
    %492 = tpu.concatenate %491, %488 in 1 : vector<32x15xf32>, vector<32x1xf32> -> vector<32x16xf32>
    %493 = tpu.concatenate %490, %486 in 1 : vector<32x16xf32>, vector<32x16xf32> -> vector<32x32xf32>
    %494 = tpu.concatenate %487, %492 in 1 : vector<32x16xf32>, vector<32x16xf32> -> vector<32x32xf32>
    %495 = tpu.concatenate %480, %493 in 0 : vector<32x32xf32>, vector<32x32xf32> -> vector<64x32xf32>
    %496 = arith.truncf %495 : vector<64x32xf32> to vector<64x32xbf16>
    %cst_139 = arith.constant dense<0.000000e+00> : vector<32x32xf32>
    %497 = tpu.matmul %481, %496, %cst_139 {dimension_numbers = #tpu.dot_dimension_numbers<[1], [0], [0], [1], [0, 0, 1, 1], [], []>} : vector<32x64xbf16>, vector<64x32xbf16>, vector<32x32xf32> -> vector<32x32xf32>
    %498 = vector.broadcast %483 : vector<32x1xf32> to vector<32x32xf32>
    %499 = arith.addf %497, %498 : vector<32x32xf32>
    %500 = tpu.concatenate %494, %480 in 0 : vector<32x32xf32>, vector<32x32xf32> -> vector<64x32xf32>
    %501 = arith.truncf %500 : vector<64x32xf32> to vector<64x32xbf16>
    %cst_140 = arith.constant dense<0.000000e+00> : vector<32x32xf32>
    %502 = tpu.matmul %482, %501, %cst_140 {dimension_numbers = #tpu.dot_dimension_numbers<[1], [0], [0], [1], [0, 0, 1, 1], [], []>} : vector<32x64xbf16>, vector<64x32xbf16>, vector<32x32xf32> -> vector<32x32xf32>
    %503 = vector.broadcast %483 : vector<32x1xf32> to vector<32x32xf32>
    %504 = arith.addf %502, %503 : vector<32x32xf32>
    %505 = vector.extract_strided_slice %499 {offsets = [0, 0], sizes = [32, 16], strides = [1, 1]} : vector<32x32xf32> to vector<32x16xf32>
    %506 = vector.extract_strided_slice %499 {offsets = [0, 16], sizes = [32, 16], strides = [1, 1]} : vector<32x32xf32> to vector<32x16xf32>
    %507 = vector.extract_strided_slice %504 {offsets = [0, 0], sizes = [32, 16], strides = [1, 1]} : vector<32x32xf32> to vector<32x16xf32>
    %508 = vector.extract_strided_slice %504 {offsets = [0, 16], sizes = [32, 16], strides = [1, 1]} : vector<32x32xf32> to vector<32x16xf32>
    %509 = tpu.concatenate %505, %507, %506, %508 in 1 : vector<32x16xf32>, vector<32x16xf32>, vector<32x16xf32>, vector<32x16xf32> -> vector<32x64xf32>
    %cst_141 = arith.constant dense<0.000000e+00> : vector<32xf32>
    %510 = vector.multi_reduction <add>, %509, %cst_141 [1] : vector<32x64xf32> to vector<32xf32>
    %511 = vector.shape_cast %510 : vector<32xf32> to vector<32x1xf32>
    %cst_142 = arith.constant 1.562500e-02 : f32
    %512 = vector.broadcast %cst_142 : f32 to vector<32x1xf32>
    %513 = arith.mulf %511, %512 : vector<32x1xf32>
    %514 = vector.broadcast %513 : vector<32x1xf32> to vector<32x64xf32>
    %515 = arith.subf %509, %514 : vector<32x64xf32>
    %516 = arith.mulf %515, %515 : vector<32x64xf32>
    %cst_143 = arith.constant dense<0.000000e+00> : vector<32xf32>
    %517 = vector.multi_reduction <add>, %516, %cst_143 [1] : vector<32x64xf32> to vector<32xf32>
    %518 = vector.shape_cast %517 : vector<32xf32> to vector<32x1xf32>
    %cst_144 = arith.constant 1.562500e-02 : f32
    %519 = vector.broadcast %cst_144 : f32 to vector<32x1xf32>
    %520 = arith.mulf %518, %519 : vector<32x1xf32>
    %cst_145 = arith.constant 9.99999974E-6 : f32
    %521 = vector.broadcast %cst_145 : f32 to vector<32x1xf32>
    %522 = arith.addf %520, %521 : vector<32x1xf32>
    %523 = math.rsqrt %522 : vector<32x1xf32>
    %524 = vector.broadcast %523 : vector<32x1xf32> to vector<32x64xf32>
    %525 = arith.mulf %515, %524 : vector<32x64xf32>
    %526 = vector.broadcast %484 : vector<32x1xf32> to vector<32x64xf32>
    %527 = arith.mulf %525, %526 : vector<32x64xf32>
    %528 = vector.broadcast %485 : vector<32x1xf32> to vector<32x64xf32>
    %529 = arith.addf %527, %528 : vector<32x64xf32>
    %cst_146 = arith.constant 5.000000e-01 : f32
    %530 = vector.broadcast %cst_146 : f32 to vector<32x64xf32>
    %531 = arith.mulf %530, %529 : vector<32x64xf32>
    %cst_147 = arith.constant 0.707106769 : f32
    %532 = vector.broadcast %cst_147 : f32 to vector<32x64xf32>
    %533 = arith.mulf %529, %532 : vector<32x64xf32>
    %534 = math.erf %533 : vector<32x64xf32>
    %cst_148 = arith.constant 1.000000e+00 : f32
    %535 = vector.broadcast %cst_148 : f32 to vector<32x64xf32>
    %536 = arith.addf %535, %534 : vector<32x64xf32>
    %537 = arith.mulf %531, %536 : vector<32x64xf32>
    %c0_149 = arith.constant 0 : index
    %c0_150 = arith.constant 0 : index
    %538 = vector.load %arg22[%c0_149, %c0_150] : memref<3x96xbf16, #tpu.memory_space<vmem>>, vector<3x96xbf16>
    %c0_151 = arith.constant 0 : index
    %c0_152 = arith.constant 0 : index
    %539 = vector.load %arg23[%c0_151, %c0_152] : memref<3x1xf32, #tpu.memory_space<vmem>>, vector<3x1xf32>
    %540 = vector.extract_strided_slice %537 {offsets = [0, 0], sizes = [32, 16], strides = [1, 1]} : vector<32x64xf32> to vector<32x16xf32>
    %541 = vector.extract_strided_slice %537 {offsets = [0, 16], sizes = [32, 16], strides = [1, 1]} : vector<32x64xf32> to vector<32x16xf32>
    %542 = vector.extract_strided_slice %537 {offsets = [0, 32], sizes = [32, 16], strides = [1, 1]} : vector<32x64xf32> to vector<32x16xf32>
    %543 = vector.extract_strided_slice %537 {offsets = [0, 48], sizes = [32, 16], strides = [1, 1]} : vector<32x64xf32> to vector<32x16xf32>
    %cst_153 = arith.constant 0.000000e+00 : f32
    %544 = vector.broadcast %cst_153 : f32 to vector<32x1xf32>
    %545 = vector.extract_strided_slice %543 {offsets = [0, 0], sizes = [32, 15], strides = [1, 1]} : vector<32x16xf32> to vector<32x15xf32>
    %546 = tpu.concatenate %544, %545 in 1 : vector<32x1xf32>, vector<32x15xf32> -> vector<32x16xf32>
    %547 = vector.extract_strided_slice %540 {offsets = [0, 1], sizes = [32, 15], strides = [1, 1]} : vector<32x16xf32> to vector<32x15xf32>
    %548 = tpu.concatenate %547, %544 in 1 : vector<32x15xf32>, vector<32x1xf32> -> vector<32x16xf32>
    %549 = tpu.concatenate %546, %540, %541, %542 in 1 : vector<32x16xf32>, vector<32x16xf32>, vector<32x16xf32>, vector<32x16xf32> -> vector<32x64xf32>
    %550 = tpu.concatenate %541, %542, %543, %548 in 1 : vector<32x16xf32>, vector<32x16xf32>, vector<32x16xf32>, vector<32x16xf32> -> vector<32x64xf32>
    %551 = tpu.concatenate %549, %537, %550 in 0 : vector<32x64xf32>, vector<32x64xf32>, vector<32x64xf32> -> vector<96x64xf32>
    %552 = arith.truncf %551 : vector<96x64xf32> to vector<96x64xbf16>
    %cst_154 = arith.constant dense<0.000000e+00> : vector<3x64xf32>
    %553 = tpu.matmul %538, %552, %cst_154 {dimension_numbers = #tpu.dot_dimension_numbers<[1], [0], [0], [1], [0, 0, 1, 1], [], []>} : vector<3x96xbf16>, vector<96x64xbf16>, vector<3x64xf32> -> vector<3x64xf32>
    %554 = vector.broadcast %539 : vector<3x1xf32> to vector<3x64xf32>
    %555 = arith.addf %553, %554 : vector<3x64xf32>
    %c0_155 = arith.constant 0 : index
    %c0_156 = arith.constant 0 : index
    %c0_157 = arith.constant 0 : index
    %556 = vector.load %arg24[%c0_155, %c0_156, %c0_157] : memref<1x3x64xf32, #tpu.memory_space<vmem>>, vector<1x3x64xf32>
    %557 = vector.shape_cast %556 : vector<1x3x64xf32> to vector<3x64xf32>
    %558 = vector.shape_cast %555 : vector<3x64xf32> to vector<1x3x64xf32>
    tpu.vector_store %arg24[%c0_155, %c0_156, %c0_157], %558 {strides = array<i32>} : memref<1x3x64xf32, #tpu.memory_space<vmem>>, vector<1x3x64xf32>,
    return
  }
  func.func @transform_0(%arg0: i32) -> (i32, i32, i32) {
    %c0_i32 = arith.constant 0 : i32
    %c0_i32_0 = arith.constant 0 : i32
    %c0_i32_1 = arith.constant 0 : i32
    return %arg0, %c0_i32, %c0_i32_0 : i32, i32, i32
  }
  func.func @transform_1(%arg0: i32) -> (i32, i32) {
    %c0_i32 = arith.constant 0 : i32
    %c0_i32_0 = arith.constant 0 : i32
    %c0_i32_1 = arith.constant 0 : i32
    return %c0_i32, %c0_i32_0 : i32, i32
  }
  func.func @transform_2(%arg0: i32) -> (i32, i32) {
    %c0_i32 = arith.constant 0 : i32
    %c0_i32_0 = arith.constant 0 : i32
    %c0_i32_1 = arith.constant 0 : i32
    return %c0_i32, %c0_i32_0 : i32, i32
  }
  func.func @transform_3(%arg0: i32) -> (i32, i32) {
    %c0_i32 = arith.constant 0 : i32
    %c0_i32_0 = arith.constant 0 : i32
    %c0_i32_1 = arith.constant 0 : i32
    return %c0_i32, %c0_i32_0 : i32, i32
  }
  func.func @transform_4(%arg0: i32) -> (i32, i32) {
    %c0_i32 = arith.constant 0 : i32
    %c0_i32_0 = arith.constant 0 : i32
    %c0_i32_1 = arith.constant 0 : i32
    return %c0_i32, %c0_i32_0 : i32, i32
  }
  func.func @transform_5(%arg0: i32) -> (i32, i32) {
    %c0_i32 = arith.constant 0 : i32
    %c0_i32_0 = arith.constant 0 : i32
    %c0_i32_1 = arith.constant 0 : i32
    return %c0_i32, %c0_i32_0 : i32, i32
  }
  func.func @transform_6(%arg0: i32) -> (i32, i32) {
    %c0_i32 = arith.constant 0 : i32
    %c0_i32_0 = arith.constant 0 : i32
    %c0_i32_1 = arith.constant 0 : i32
    return %c0_i32, %c0_i32_0 : i32, i32
  }
  func.func @transform_7(%arg0: i32) -> (i32, i32) {
    %c0_i32 = arith.constant 0 : i32
    %c0_i32_0 = arith.constant 0 : i32
    %c0_i32_1 = arith.constant 0 : i32
    return %c0_i32, %c0_i32_0 : i32, i32
  }
  func.func @transform_8(%arg0: i32) -> (i32, i32) {
    %c0_i32 = arith.constant 0 : i32
    %c0_i32_0 = arith.constant 0 : i32
    %c0_i32_1 = arith.constant 0 : i32
    return %c0_i32, %c0_i32_0 : i32, i32
  }
  func.func @transform_9(%arg0: i32) -> (i32, i32) {
    %c0_i32 = arith.constant 0 : i32
    %c0_i32_0 = arith.constant 0 : i32
    %c0_i32_1 = arith.constant 0 : i32
    return %c0_i32, %c0_i32_0 : i32, i32
  }
  func.func @transform_10(%arg0: i32) -> (i32, i32) {
    %c0_i32 = arith.constant 0 : i32
    %c0_i32_0 = arith.constant 0 : i32
    %c0_i32_1 = arith.constant 0 : i32
    return %c0_i32, %c0_i32_0 : i32, i32
  }
  func.func @transform_11(%arg0: i32) -> (i32, i32) {
    %c0_i32 = arith.constant 0 : i32
    %c0_i32_0 = arith.constant 0 : i32
    %c0_i32_1 = arith.constant 0 : i32
    return %c0_i32, %c0_i32_0 : i32, i32
  }
  func.func @transform_12(%arg0: i32) -> (i32, i32) {
    %c0_i32 = arith.constant 0 : i32
    %c0_i32_0 = arith.constant 0 : i32
    %c0_i32_1 = arith.constant 0 : i32
    return %c0_i32, %c0_i32_0 : i32, i32
  }
  func.func @transform_13(%arg0: i32) -> (i32, i32) {
    %c0_i32 = arith.constant 0 : i32
    %c0_i32_0 = arith.constant 0 : i32
    %c0_i32_1 = arith.constant 0 : i32
    return %c0_i32, %c0_i32_0 : i32, i32
  }
  func.func @transform_14(%arg0: i32) -> (i32, i32) {
    %c0_i32 = arith.constant 0 : i32
    %c0_i32_0 = arith.constant 0 : i32
    %c0_i32_1 = arith.constant 0 : i32
    return %c0_i32, %c0_i32_0 : i32, i32
  }
  func.func @transform_15(%arg0: i32) -> (i32, i32) {
    %c0_i32 = arith.constant 0 : i32
    %c0_i32_0 = arith.constant 0 : i32
    %c0_i32_1 = arith.constant 0 : i32
    return %c0_i32, %c0_i32_0 : i32, i32
  }
  func.func @transform_16(%arg0: i32) -> (i32, i32) {
    %c0_i32 = arith.constant 0 : i32
    %c0_i32_0 = arith.constant 0 : i32
    %c0_i32_1 = arith.constant 0 : i32
    return %c0_i32, %c0_i32_0 : i32, i32
  }
  func.func @transform_17(%arg0: i32) -> (i32, i32) {
    %c0_i32 = arith.constant 0 : i32
    %c0_i32_0 = arith.constant 0 : i32
    %c0_i32_1 = arith.constant 0 : i32
    return %c0_i32, %c0_i32_0 : i32, i32
  }
  func.func @transform_18(%arg0: i32) -> (i32, i32) {
    %c0_i32 = arith.constant 0 : i32
    %c0_i32_0 = arith.constant 0 : i32
    %c0_i32_1 = arith.constant 0 : i32
    return %c0_i32, %c0_i32_0 : i32, i32
  }
  func.func @transform_19(%arg0: i32) -> (i32, i32) {
    %c0_i32 = arith.constant 0 : i32
    %c0_i32_0 = arith.constant 0 : i32
    %c0_i32_1 = arith.constant 0 : i32
    return %c0_i32, %c0_i32_0 : i32, i32
  }
  func.func @transform_20(%arg0: i32) -> (i32, i32) {
    %c0_i32 = arith.constant 0 : i32
    %c0_i32_0 = arith.constant 0 : i32
    %c0_i32_1 = arith.constant 0 : i32
    return %c0_i32, %c0_i32_0 : i32, i32
  }
  func.func @transform_21(%arg0: i32) -> (i32, i32) {
    %c0_i32 = arith.constant 0 : i32
    %c0_i32_0 = arith.constant 0 : i32
    %c0_i32_1 = arith.constant 0 : i32
    return %c0_i32, %c0_i32_0 : i32, i32
  }
  func.func @transform_22(%arg0: i32) -> (i32, i32) {
    %c0_i32 = arith.constant 0 : i32
    %c0_i32_0 = arith.constant 0 : i32
    %c0_i32_1 = arith.constant 0 : i32
    return %c0_i32, %c0_i32_0 : i32, i32
  }
  func.func @transform_23(%arg0: i32) -> (i32, i32, i32) {
    %c0_i32 = arith.constant 0 : i32
    %c0_i32_0 = arith.constant 0 : i32
    %c0_i32_1 = arith.constant 0 : i32
    return %arg0, %c0_i32, %c0_i32_0 : i32, i32, i32
  }
}

</mosaic_0001>

<bundles_post_ra>
// kernel: _lambda_.1
= control target key start
LH: loop header
LB: loop body
LE: loop exit
PB: predicated region body
PF: predicated region fallthrough
CT: control target
= control target key end

     0   :  { %s6567_s0 = inlined_call_operand.vmem [shape: f32[2,4,16], index: 0, kind: input, shape index: {}]   ;;  %s6568_s1 = inlined_call_operand.hbm [shape: bf16[64,4], index: 1, kind: input, shape index: {}]   ;;  %s6569_s2 = inlined_call_operand.vmem [shape: f32[64,1], index: 2, kind: input, shape index: {}]   ;;  %s6570_s3 = inlined_call_operand.vmem [shape: bf16[64,192], index: 3, kind: input, shape index: {}]   ;;  %s6571_s4 = inlined_call_operand.vmem [shape: f32[64,1], index: 4, kind: input, shape index: {}]   ;;  %s6572_s5 = inlined_call_operand.vmem [shape: f32[64,1], index: 5, kind: input, shape index: {}]   ;;  %s6573_s6 = inlined_call_operand.vmem [shape: f32[64,1], index: 6, kind: input, shape index: {}]   ;;  %s6574_s7 = inlined_call_operand.vmem [shape: bf16[32,128], index: 7, kind: input, shape index: {}]   ;;  %s6575_s8 = inlined_call_operand.hbm [shape: bf16[32,128], index: 8, kind: input, shape index: {}]   ;;  %s6576_s9 = inlined_call_operand.hbm [shape: f32[32,1], index: 9, kind: input, shape index: {}]   ;;  %s6577_s10 = inlined_call_operand.hbm [shape: f32[32,1], index: 10, kind: input, shape index: {}]   ;;  %s6578_s11 = inlined_call_operand.hbm [shape: f32[32,1], index: 11, kind: input, shape index: {}]   ;;  %s6579_s12 = inlined_call_operand.hbm [shape: bf16[32,96], index: 12, kind: input, shape index: {}]   ;;  %s6580_s13 = inlined_call_operand.hbm [shape: f32[32,1], index: 13, kind: input, shape index: {}]   ;;  %s6581_s14 = inlined_call_operand.hbm [shape: f32[32,1], index: 14, kind: input, shape index: {}]   ;;  %s6582_s15 = inlined_call_operand.hbm [shape: f32[32,1], index: 15, kind: input, shape index: {}]   ;;  %s6583_s16 = inlined_call_operand.hbm [shape: bf16[32,64], index: 16, kind: input, shape index: {}]   ;;  %s6584_s17 = inlined_call_operand.hbm [shape: bf16[32,64], index: 17, kind: input, shape index: {}]   ;;  %s6585_s18 = inlined_call_operand.hbm [shape: f32[32,1], index: 18, kind: input, shape index: {}]   ;;  %s6586_s19 = inlined_call_operand.hbm [shape: f32[32,1], index: 19, kind: input, shape index: {}]   ;;  %s6587_s20 = inlined_call_operand.hbm [shape: f32[32,1], index: 20, kind: input, shape index: {}]   ;;  %s6588_s21 = inlined_call_operand.vmem [shape: bf16[3,96], index: 21, kind: input, shape index: {}]   ;;  %s6589_s22 = inlined_call_operand.hbm [shape: f32[3,1], index: 22, kind: input, shape index: {}]   ;;  %s6590_s23 = inlined_call_operand.vmem [shape: f32[2,3,64], index: 23, kind: output, shape index: {}]  }
   0x1   :  { %6611 = sst [smem:[#allocation35_spill]] %s6567_s0 }
   0x2   :  { %6612 = sst [smem:[#allocation36_spill]] %s6568_s1 }
   0x3   :  { %6613 = sst [smem:[#allocation37_spill]] %s6569_s2 }
   0x4   :  { %6614 = sst [smem:[#allocation38_spill]] %s6570_s3 }
   0x5   :  { %6615 = sst [smem:[#allocation39_spill]] %s6571_s4 }
   0x6   :  { %6616 = sst [smem:[#allocation40_spill]] %s6572_s5 }
   0x7   :  { %6617 = sst [smem:[#allocation41_spill]] %s6573_s6 }
   0x8   :  { %6618 = sst [smem:[#allocation42_spill]] %s6574_s7 }
   0x9   :  { %6619 = sst [smem:[#allocation43_spill]] %s6575_s8 }
   0xa   :  { %6620 = sst [smem:[#allocation44_spill]] %s6577_s10 }
   0xb   :  { %6621 = sst [smem:[#allocation45_spill]] %s6579_s12 }
   0xc   :  { %6622 = sst [smem:[#allocation46_spill]] %s6588_s21 }
   0xd   :  { %6623 = sst [smem:[#allocation47_spill]] %s6590_s23 }
   0xe   :  { %28 = vsyncpa [#allocation3], 0 }
   0xf   :  { %29 = vsyncpa [#allocation5], 0 }
  0x10   :  { %30 = vsyncpa [#allocation8], 0 }
  0x11   :  { %31 = vsyncpa [#allocation11], 0 }
  0x12   :  { %32 = vsyncpa [#allocation14], 0 }
  0x13   :  { %33 = vsyncpa [#allocation17], 0 }
  0x14   :  { %34 = vsyncpa [#allocation20], 0 }
  0x15   :  { %35 = vsyncpa [#allocation23], 0  ;;  %s5219_s4 = smov 0  }
  0x16 LB: > { %6624 = sst [smem:[#allocation33_spill]] %s5067_s4  ;;  %s5225_s30 = sadd.s32 4294967295, %s5067_s4   ;;  %s5067_s4 = sphi %s5219_s4, %s41_s4  }
  0x17   : > { %6625 = sst [smem:[#allocation34_spill]] %s5225_s30  ;;  %p3816_p0 = scmp.ge.s32.totalorder %s5067_s4, 1 }
  0x18   : > { %p560_p1 = scmp.lt.s32.totalorder %s5067_s4, 3  ;;  %p6607_p2 = scmp.eq.s32.totalorder %s5225_s30, 0 }
  0x19   : > { %s5069_s25 = smov [#allocation4]   ;;  %s5070_s26 = smov [#allocation7]  }
  0x1a   : > { %p5230_p3 = pnand %p3816_p0, %p560_p1  ;;  %s603_s5 = sshll.u32 %s5069_s25, 4  ;;  %s5234_s5 = int_to_ptr.vmem [resolvable:$true] %s603_s5 }
  0x1b   : > { %s629_s2 = sshll.u32 %s5070_s26, 4  ;;  %s5071_s6 = smov [#allocation10]   ;;  %s5244_s2 = int_to_ptr.vmem [resolvable:$true] %s629_s2 }
  0x1c   : > { %s6626_s24 = scalar_select %p5230_p3, 1, 0 }
  0x1d   : > { %p4141_p4 = pneg %p5230_p3  ;;  %s655_s27 = sshll.u32 %s5071_s6, 4  ;;  %s5246_s27 = int_to_ptr.vmem [resolvable:$true] %s655_s27 }
  0x1e   : > { %s6628_s8 = sld [smem:[#allocation43_spill]] }
  0x1f   : > { %p5240_p5 = pnand %p6607_p2, %p4141_p4 }
  0x21   : > { %p5256_p7 = pneg %p5240_p5 }
  0x24   : > { %s4609_s29 = scalar_lea.hbm %s6628_s8, 256 }
  0x25   : > { %p4610_p6 = scmp.ne.s32.totalorder %s6628_s8, %s4609_s29  ;;  %p4616_p10 = scmp.lt.u32.totalorder %s4609_s29, %s6628_s8 }
  0x27   : > { %p4612_p8 = pnand %p5256_p7, %p4610_p6 }
  0x29   : > { %p4613_p9 = pneg %p4612_p8 }
  0x2b   : > { %p4618_p11 = pnand %p4616_p10, %p4613_p9 }
  0x2d   : > { %4621 = shalt.err (!%p4618_p11)
}
  0x2e   : > { %s4622_s7 = scalar_lea.vmem %s5234_s5, 256  ;;  %p4630_p1 = scmp.lt.s32.totalorder %s5234_s5, %s5234_s5 }
  0x2f   : > { %p4623_p12 = scmp.ne.s32.totalorder %s5234_s5, %s4622_s7  ;;  %p4631_p4 = scmp.lt.s32.totalorder %s4622_s7, %s4622_s7 }
  0x31   : > { %p4625_p13 = pnand %p4623_p12, %p5256_p7  ;;  %p4632_p6 = por %p4631_p4, %p4630_p1 }
  0x33   : > { %p4626_p0 = pneg %p4625_p13 }
  0x35   : > { %p4633_p8 = pnand %p4632_p6, %p4626_p0 }
  0x37   : > { %4636 = shalt.err (!%p4633_p8)
}
  0x38   : > { %s6601_s28 = smov 64   ;;  %s6609_s29 = smov 4  }
  0x39   : > { %4147 = dma.hbm_to_vmem [thread:$0]  (!%p5240_p5), %s6628_s8, 256, %s5234_s5, [#allocation5], %s6601_s28, %s6601_s28, %s6609_s29  }
  0x3a   : > { %s6630_s10 = sld [smem:[#allocation44_spill]] }
  0x40   : > { %s4637_s7 = scalar_lea.hbm %s6630_s10, 512 }
  0x41   : > { %p4638_p9 = scmp.ne.s32.totalorder %s6630_s10, %s4637_s7  ;;  %p4644_p12 = scmp.lt.u32.totalorder %s4637_s7, %s6630_s10 }
  0x43   : > { %p4640_p10 = pnand %p4638_p9, %p5256_p7 }
  0x45   : > { %p4641_p11 = pneg %p4640_p10 }
  0x47   : > { %p4646_p13 = pnand %p4644_p12, %p4641_p11 }
  0x49   : > { %4649 = shalt.err (!%p4646_p13)
}
  0x4a   : > { %s4650_s5 = scalar_lea.vmem %s5244_s2, 512  ;;  %p4658_p6 = scmp.lt.s32.totalorder %s5244_s2, %s5244_s2 }
  0x4b   : > { %p4651_p0 = scmp.ne.s32.totalorder %s5244_s2, %s4650_s5  ;;  %p4659_p8 = scmp.lt.s32.totalorder %s4650_s5, %s4650_s5 }
  0x4d   : > { %p4653_p1 = pnand %p4651_p0, %p5256_p7  ;;  %p4660_p9 = por %p4659_p8, %p4658_p6 }
  0x4f   : > { %p4654_p4 = pneg %p4653_p1 }
  0x51   : > { %p4661_p10 = pnand %p4660_p9, %p4654_p4 }
  0x53   : > { %4664 = shalt.err (!%p4661_p10)
}
  0x54   : > { %s6603_s23 = smov 128   ;;  %s6605_s21 = smov 8  }
  0x55   : > { %4153 = dma.hbm_to_vmem [thread:$0]  (!%p5240_p5), %s6630_s10, 512, %s5244_s2, [#allocation8], %s6603_s23, %s6603_s23, %s6605_s21  }
  0x56   : > { %s6631_s12 = sld [smem:[#allocation45_spill]] }
  0x5c   : > { %s4665_s26 = scalar_lea.hbm %s6631_s12, 256 }
  0x5d   : > { %p4666_p11 = scmp.ne.s32.totalorder %s6631_s12, %s4665_s26  ;;  %p4672_p0 = scmp.lt.u32.totalorder %s4665_s26, %s6631_s12 }
  0x5f   : > { %p4668_p12 = pnand %p4666_p11, %p5256_p7 }
  0x61   : > { %p4669_p13 = pneg %p4668_p12 }
  0x63   : > { %p4674_p1 = pnand %p4672_p0, %p4669_p13 }
  0x65   : > { %4677 = shalt.err (!%p4674_p1)
}
  0x66   : > { %s4678_s2 = scalar_lea.vmem %s5246_s27, 256  ;;  %p4686_p9 = scmp.lt.s32.totalorder %s5246_s27, %s5246_s27 }
  0x67   : > { %p4679_p4 = scmp.ne.s32.totalorder %s5246_s27, %s4678_s2  ;;  %p4687_p10 = scmp.lt.s32.totalorder %s4678_s2, %s4678_s2 }
  0x69   : > { %p4681_p6 = pnand %p4679_p4, %p5256_p7  ;;  %p4688_p11 = por %p4687_p10, %p4686_p9 }
  0x6b   : > { %p4682_p8 = pneg %p4681_p6 }
  0x6d   : > { %p4689_p12 = pnand %p4688_p11, %p4682_p8 }
  0x6f   : > { %4692 = shalt.err (!%p4689_p12)
}
  0x70   : > { %s6632_s28 = smov 64   ;;  %s5076_s3 = smov [#allocation13]  }
  0x71   : > { %4159 = dma.hbm_to_vmem [thread:$0]  (!%p5240_p5), %s6631_s12, 256, %s5246_s27, [#allocation11], %s6632_s28, %s6632_s28, %s6609_s29  }
  0x72   : > { %s681_s0 = sshll.u32 %s5076_s3, 4  ;;  %s5077_s26 = smov [#allocation16]   ;;  %s682_s0 = int_to_ptr.vmem [resolvable:$true] %s681_s0 }
  0x73   : > { %s707_s6 = sshll.u32 %s5077_s26, 4  ;;  %s4693_s2 = scalar_lea.hbm %s6581_s14, 512  ;;  %s5332_s6 = int_to_ptr.vmem [resolvable:$true] %s707_s6 }
  0x74   : > { %p4694_p13 = scmp.ne.s32.totalorder %s6581_s14, %s4693_s2  ;;  %p4700_p4 = scmp.lt.u32.totalorder %s4693_s2, %s6581_s14 }
  0x76   : > { %p4696_p0 = pnand %p4694_p13, %p5256_p7 }
  0x78   : > { %p4697_p1 = pneg %p4696_p0 }
  0x7a   : > { %p4702_p6 = pnand %p4700_p4, %p4697_p1 }
  0x7c   : > { %4705 = shalt.err (!%p4702_p6)
}
  0x7d   : > { %s4706_s30 = scalar_lea.vmem %s682_s0, 512  ;;  %p4714_p11 = scmp.lt.s32.totalorder %s682_s0, %s682_s0 }
  0x7e   : > { %p4707_p8 = scmp.ne.s32.totalorder %s682_s0, %s4706_s30  ;;  %p4715_p12 = scmp.lt.s32.totalorder %s4706_s30, %s4706_s30 }
  0x80   : > { %p4709_p9 = pnand %p4707_p8, %p5256_p7  ;;  %p4716_p2 = por %p4715_p12, %p4714_p11 }
  0x82   : > { %p4710_p10 = pneg %p4709_p9 }
  0x84   : > { %p4717_p3 = pnand %p4716_p2, %p4710_p10 }
  0x86   : > { %4720 = shalt.err (!%p4717_p3)
}
  0x87   : > { %s6633_s23 = smov 8   ;;  %s6634_s21 = smov 128  }
  0x88   : > { %4165 = dma.hbm_to_vmem [thread:$0]  (!%p5240_p5), %s6581_s14, 512, %s682_s0, [#allocation14], %s6634_s21, %s6634_s21, %s6633_s23  }
  0x89   : > { %s4721_s2 = scalar_lea.hbm %s6583_s16, 256 }
  0x8a   : > { %p4722_p13 = scmp.ne.s32.totalorder %s6583_s16, %s4721_s2  ;;  %p4728_p0 = scmp.lt.u32.totalorder %s4721_s2, %s6583_s16 }
  0x8c   : > { %p4724_p2 = pnand %p4722_p13, %p5256_p7 }
  0x8e   : > { %p4725_p3 = pneg %p4724_p2 }
  0x90   : > { %p4730_p1 = pnand %p4728_p0, %p4725_p3 }
  0x92   : > { %4733 = shalt.err (!%p4730_p1)
}
  0x93   : > { %s4734_s0 = scalar_lea.vmem %s5332_s6, 256  ;;  %p4742_p9 = scmp.lt.s32.totalorder %s5332_s6, %s5332_s6 }
  0x94   : > { %p4735_p4 = scmp.ne.s32.totalorder %s5332_s6, %s4734_s0  ;;  %p4743_p10 = scmp.lt.s32.totalorder %s4734_s0, %s4734_s0 }
  0x96   : > { %p4737_p6 = pnand %p4735_p4, %p5256_p7  ;;  %p4744_p11 = por %p4743_p10, %p4742_p9 }
  0x98   : > { %p4738_p8 = pneg %p4737_p6 }
  0x9a   : > { %p4745_p12 = pnand %p4744_p11, %p4738_p8 }
  0x9c   : > { %4748 = shalt.err (!%p4745_p12)
}
  0x9d   : > { %s6635_s29 = smov 4   ;;  %s5078_s7 = smov [#allocation19]  }
  0x9e   : > { %4171 = dma.hbm_to_vmem [thread:$0]  (!%p5240_p5), %s6583_s16, 256, %s5332_s6, [#allocation17], %s6632_s28, %s6632_s28, %s6635_s29  }
  0x9f   : > { %s733_s5 = sshll.u32 %s5078_s7, 4  ;;  %s5079_s2 = smov [#allocation22]   ;;  %s734_s5 = int_to_ptr.vmem [resolvable:$true] %s733_s5 }
  0xa0   : > { %s759_s4 = sshll.u32 %s5079_s2, 4  ;;  %s4749_s0 = scalar_lea.hbm %s6585_s18, 512  ;;  %s5381_s4 = int_to_ptr.vmem [resolvable:$true] %s759_s4 }
  0xa1   : > { %p4750_p13 = scmp.ne.s32.totalorder %s6585_s18, %s4749_s0  ;;  %p4756_p0 = scmp.lt.u32.totalorder %s4749_s0, %s6585_s18 }
  0xa3   : > { %p4752_p2 = pnand %p4750_p13, %p5256_p7 }
  0xa5   : > { %p4753_p3 = pneg %p4752_p2 }
  0xa7   : > { %p4758_p1 = pnand %p4756_p0, %p4753_p3 }
  0xa9   : > { %4761 = shalt.err (!%p4758_p1)
}
  0xaa   : > { %s4762_s26 = scalar_lea.vmem %s734_s5, 512  ;;  %p4770_p9 = scmp.lt.s32.totalorder %s734_s5, %s734_s5 }
  0xab   : > { %p4763_p4 = scmp.ne.s32.totalorder %s734_s5, %s4762_s26  ;;  %p4771_p10 = scmp.lt.s32.totalorder %s4762_s26, %s4762_s26 }
  0xad   : > { %p4765_p6 = pnand %p4763_p4, %p5256_p7  ;;  %p4772_p11 = por %p4771_p10, %p4770_p9 }
  0xaf   : > { %p4766_p8 = pneg %p4765_p6 }
  0xb1   : > { %p4773_p12 = pnand %p4772_p11, %p4766_p8 }
  0xb3   : > { %4776 = shalt.err (!%p4773_p12)
}
  0xb4   : > { %4177 = dma.hbm_to_vmem [thread:$0]  (!%p5240_p5), %s6585_s18, 512, %s734_s5, [#allocation20], %s6634_s21, %s6634_s21, %s6633_s23  }
  0xb5   : > { %s4777_s27 = scalar_lea.hbm %s6587_s20, 512 }
  0xb6   : > { %p4778_p13 = scmp.ne.s32.totalorder %s6587_s20, %s4777_s27  ;;  %p4784_p0 = scmp.lt.u32.totalorder %s4777_s27, %s6587_s20 }
  0xb8   : > { %p4780_p2 = pnand %p4778_p13, %p5256_p7 }
  0xba   : > { %p4781_p3 = pneg %p4780_p2 }
  0xbc   : > { %p4786_p1 = pnand %p4784_p0, %p4781_p3 }
  0xbe   : > { %4789 = shalt.err (!%p4786_p1)
}
  0xbf   : > { %s4790_s5 = scalar_lea.vmem %s5381_s4, 512  ;;  %p4798_p9 = scmp.lt.s32.totalorder %s5381_s4, %s5381_s4 }
  0xc0   : > { %p4791_p4 = scmp.ne.s32.totalorder %s5381_s4, %s4790_s5  ;;  %p4799_p10 = scmp.lt.s32.totalorder %s4790_s5, %s4790_s5 }
  0xc2   : > { %p4793_p6 = pnand %p4791_p4, %p5256_p7  ;;  %p4800_p11 = por %p4799_p10, %p4798_p9 }
  0xc4   : > { %p4794_p8 = pneg %p4793_p6 }
  0xc6   : > { %p4801_p12 = pnand %p4800_p11, %p4794_p8 }
  0xc8   : > { %4804 = shalt.err (!%p4801_p12)
}
  0xc9   : > { %4183 = dma.hbm_to_vmem [thread:$0]  (!%p5240_p5), %s6587_s20, 512, %s5381_s4, [#allocation23], %s6634_s21, %s6634_s21, %s6633_s23  }
  0xca   : > { %s5080_s10 = smov [#allocation2]   ;;  %s5081_s2 = smov [#allocation6]  }
  0xcb   : > { %s572_s7 = sshll.u32 %s5080_s10, 4  ;;  %s616_s27 = sshll.u32 %s5081_s2, 4  ;;  %s573_s7 = int_to_ptr.vmem [resolvable:$true] %s572_s7  ;;  %s5430_s27 = int_to_ptr.vmem [resolvable:$true] %s616_s27 }
  0xcc   : > { %s6636_s3 = sld [smem:[#allocation36_spill]] }
  0xd2   : > { %s4805_s6 = scalar_lea.hbm %s6636_s3, 512 }
  0xd3   : > { %p4806_p13 = scmp.ne.s32.totalorder %s6636_s3, %s4805_s6  ;;  %p4812_p0 = scmp.lt.u32.totalorder %s4805_s6, %s6636_s3 }
  0xd5   : > { %p4808_p2 = pnand %p4806_p13, %p5256_p7 }
  0xd7   : > { %p4809_p3 = pneg %p4808_p2 }
  0xd9   : > { %p4814_p1 = pnand %p4812_p0, %p4809_p3 }
  0xdb   : > { %4817 = shalt.err (!%p4814_p1)
}
  0xdc   : > { %s4818_s8 = scalar_lea.vmem %s573_s7, 512  ;;  %p4826_p9 = scmp.lt.s32.totalorder %s573_s7, %s573_s7 }
  0xdd   : > { %p4819_p4 = scmp.ne.s32.totalorder %s573_s7, %s4818_s8  ;;  %p4827_p10 = scmp.lt.s32.totalorder %s4818_s8, %s4818_s8 }
  0xdf   : > { %p4821_p6 = pnand %p4819_p4, %p5256_p7  ;;  %p4828_p11 = por %p4827_p10, %p4826_p9 }
  0xe1   : > { %p4822_p8 = pneg %p4821_p6 }
  0xe3   : > { %p4829_p12 = pnand %p4828_p11, %p4822_p8 }
  0xe5   : > { %4832 = shalt.err (!%p4829_p12)
}
  0xe6   : > { %4144 = dma.hbm_to_vmem [thread:$0]  (!%p5240_p5), %s6636_s3, 512, %s573_s7, [#allocation3], %s6632_s28, %s6632_s28, %s6635_s29  }
  0xe7   : > { %s4833_s0 = scalar_lea.hbm %s6576_s9, 512 }
  0xe8   : > { %p4834_p13 = scmp.ne.s32.totalorder %s6576_s9, %s4833_s0  ;;  %p4840_p0 = scmp.lt.u32.totalorder %s4833_s0, %s6576_s9 }
  0xea   : > { %p4836_p2 = pnand %p4834_p13, %p5256_p7 }
  0xec   : > { %p4837_p3 = pneg %p4836_p2 }
  0xee   : > { %p4842_p1 = pnand %p4840_p0, %p4837_p3 }
  0xf0   : > { %4845 = shalt.err (!%p4842_p1)
}
  0xf1   : > { %s4846_s7 = scalar_lea.vmem %s5430_s27, 512  ;;  %p4854_p9 = scmp.lt.s32.totalorder %s5430_s27, %s5430_s27 }
  0xf2   : > { %p4847_p4 = scmp.ne.s32.totalorder %s5430_s27, %s4846_s7  ;;  %p4855_p10 = scmp.lt.s32.totalorder %s4846_s7, %s4846_s7 }
  0xf4   : > { %p4849_p6 = pnand %p4847_p4, %p5256_p7  ;;  %p4856_p11 = por %p4855_p10, %p4854_p9 }
  0xf6   : > { %p4850_p8 = pneg %p4849_p6 }
  0xf8   : > { %p4857_p12 = pnand %p4856_p11, %p4850_p8 }
  0xfa   : > { %4860 = shalt.err (!%p4857_p12)
}
  0xfb   : > { %4150 = dma.hbm_to_vmem [thread:$0]  (!%p5240_p5), %s6576_s9, 512, %s5430_s27, [#allocation5], %s6634_s21, %s6634_s21, %s6633_s23  }
  0xfc   : > { %s5082_s10 = smov [#allocation9]   ;;  %s5083_s30 = smov [#allocation12]  }
  0xfd   : > { %s642_s2 = sshll.u32 %s5082_s10, 4  ;;  %s668_s0 = sshll.u32 %s5083_s30, 4  ;;  %s643_s2 = int_to_ptr.vmem [resolvable:$true] %s642_s2  ;;  %s5479_s0 = int_to_ptr.vmem [resolvable:$true] %s668_s0 }
  0xfe   : > { %s4861_s26 = scalar_lea.hbm %s6578_s11, 512 }
  0xff   : > { %p4862_p13 = scmp.ne.s32.totalorder %s6578_s11, %s4861_s26  ;;  %p4868_p0 = scmp.lt.u32.totalorder %s4861_s26, %s6578_s11 }
 0x101   : > { %p4864_p2 = pnand %p4862_p13, %p5256_p7 }
 0x103   : > { %p4865_p3 = pneg %p4864_p2 }
 0x105   : > { %p4870_p1 = pnand %p4868_p0, %p4865_p3 }
 0x107   : > { %4873 = shalt.err (!%p4870_p1)
}
 0x108   : > { %s4874_s12 = scalar_lea.vmem %s643_s2, 512  ;;  %p4882_p9 = scmp.lt.s32.totalorder %s643_s2, %s643_s2 }
 0x109   : > { %p4875_p4 = scmp.ne.s32.totalorder %s643_s2, %s4874_s12  ;;  %p4883_p10 = scmp.lt.s32.totalorder %s4874_s12, %s4874_s12 }
 0x10b   : > { %p4877_p6 = pnand %p4875_p4, %p5256_p7  ;;  %p4884_p11 = por %p4883_p10, %p4882_p9 }
 0x10d   : > { %p4878_p8 = pneg %p4877_p6 }
 0x10f   : > { %p4885_p12 = pnand %p4884_p11, %p4878_p8 }
 0x111   : > { %4888 = shalt.err (!%p4885_p12)
}
 0x112   : > { %4156 = dma.hbm_to_vmem [thread:$0]  (!%p5240_p5), %s6578_s11, 512, %s643_s2, [#allocation8], %s6634_s21, %s6634_s21, %s6633_s23  }
 0x113   : > { %s4889_s26 = scalar_lea.hbm %s6580_s13, 512 }
 0x114   : > { %p4890_p13 = scmp.ne.s32.totalorder %s6580_s13, %s4889_s26  ;;  %p4896_p0 = scmp.lt.u32.totalorder %s4889_s26, %s6580_s13 }
 0x116   : > { %p4892_p2 = pnand %p4890_p13, %p5256_p7 }
 0x118   : > { %p4893_p3 = pneg %p4892_p2 }
 0x11a   : > { %p4898_p1 = pnand %p4896_p0, %p4893_p3 }
 0x11c   : > { %4901 = shalt.err (!%p4898_p1)
}
 0x11d   : > { %s4902_s2 = scalar_lea.vmem %s5479_s0, 512  ;;  %p4910_p9 = scmp.lt.s32.totalorder %s5479_s0, %s5479_s0 }
 0x11e   : > { %p4903_p4 = scmp.ne.s32.totalorder %s5479_s0, %s4902_s2  ;;  %p4911_p10 = scmp.lt.s32.totalorder %s4902_s2, %s4902_s2 }
 0x120   : > { %p4905_p6 = pnand %p4903_p4, %p5256_p7  ;;  %p4912_p11 = por %p4911_p10, %p4910_p9 }
 0x122   : > { %p4906_p8 = pneg %p4905_p6 }
 0x124   : > { %p4913_p12 = pnand %p4912_p11, %p4906_p8 }
 0x126   : > { %4916 = shalt.err (!%p4913_p12)
}
 0x127   : > { %4162 = dma.hbm_to_vmem [thread:$0]  (!%p5240_p5), %s6580_s13, 512, %s5479_s0, [#allocation11], %s6634_s21, %s6634_s21, %s6633_s23  }
 0x128   : > { %s5084_s30 = smov [#allocation15]   ;;  %s5085_s5 = smov [#allocation18]  }
 0x129   : > { %s694_s6 = sshll.u32 %s5084_s30, 4  ;;  %s720_s26 = sshll.u32 %s5085_s5, 4  ;;  %s695_s6 = int_to_ptr.vmem [resolvable:$true] %s694_s6  ;;  %s5528_s26 = int_to_ptr.vmem [resolvable:$true] %s720_s26 }
 0x12a   : > { %s4917_s8 = scalar_lea.hbm %s6582_s15, 512 }
 0x12b   : > { %p4918_p13 = scmp.ne.s32.totalorder %s6582_s15, %s4917_s8  ;;  %p4924_p0 = scmp.lt.u32.totalorder %s4917_s8, %s6582_s15 }
 0x12d   : > { %p4920_p2 = pnand %p4918_p13, %p5256_p7 }
 0x12f   : > { %p4921_p3 = pneg %p4920_p2 }
 0x131   : > { %p4926_p1 = pnand %p4924_p0, %p4921_p3 }
 0x133   : > { %4929 = shalt.err (!%p4926_p1)
}
 0x134   : > { %s4930_s10 = scalar_lea.vmem %s695_s6, 512  ;;  %p4938_p9 = scmp.lt.s32.totalorder %s695_s6, %s695_s6 }
 0x135   : > { %p4931_p4 = scmp.ne.s32.totalorder %s695_s6, %s4930_s10  ;;  %p4939_p10 = scmp.lt.s32.totalorder %s4930_s10, %s4930_s10 }
 0x137   : > { %p4933_p6 = pnand %p4931_p4, %p5256_p7  ;;  %p4940_p11 = por %p4939_p10, %p4938_p9 }
 0x139   : > { %p4934_p8 = pneg %p4933_p6 }
 0x13b   : > { %p4941_p12 = pnand %p4940_p11, %p4934_p8 }
 0x13d   : > { %4944 = shalt.err (!%p4941_p12)
}
 0x13e   : > { %4168 = dma.hbm_to_vmem [thread:$0]  (!%p5240_p5), %s6582_s15, 512, %s695_s6, [#allocation14], %s6634_s21, %s6634_s21, %s6633_s23  }
 0x13f   : > { %s4945_s8 = scalar_lea.hbm %s6584_s17, 256 }
 0x140   : > { %p4946_p13 = scmp.ne.s32.totalorder %s6584_s17, %s4945_s8  ;;  %p4952_p0 = scmp.lt.u32.totalorder %s4945_s8, %s6584_s17 }
 0x142   : > { %p4948_p2 = pnand %p4946_p13, %p5256_p7 }
 0x144   : > { %p4949_p3 = pneg %p4948_p2 }
 0x146   : > { %p4954_p1 = pnand %p4952_p0, %p4949_p3 }
 0x148   : > { %4957 = shalt.err (!%p4954_p1)
}
 0x149   : > { %s4958_s6 = scalar_lea.vmem %s5528_s26, 256  ;;  %p4966_p9 = scmp.lt.s32.totalorder %s5528_s26, %s5528_s26 }
 0x14a   : > { %p4959_p4 = scmp.ne.s32.totalorder %s5528_s26, %s4958_s6  ;;  %p4967_p10 = scmp.lt.s32.totalorder %s4958_s6, %s4958_s6 }
 0x14c   : > { %p4961_p6 = pnand %p4959_p4, %p5256_p7  ;;  %p4968_p11 = por %p4967_p10, %p4966_p9 }
 0x14e   : > { %p4962_p8 = pneg %p4961_p6 }
 0x150   : > { %p4969_p12 = pnand %p4968_p11, %p4962_p8 }
 0x152   : > { %4972 = shalt.err (!%p4969_p12)
}
 0x153   : > { %4174 = dma.hbm_to_vmem [thread:$0]  (!%p5240_p5), %s6584_s17, 256, %s5528_s26, [#allocation17], %s6632_s28, %s6632_s28, %s6635_s29  }
 0x154   : > { %s5086_s5 = smov [#allocation21]   ;;  %s5087_s7 = smov [#allocation24]  }
 0x155   : > { %s746_s4 = sshll.u32 %s5086_s5, 4  ;;  %s776_s8 = sshll.u32 %s5087_s7, 4  ;;  %s747_s4 = int_to_ptr.vmem [resolvable:$true] %s746_s4  ;;  %s5577_s8 = int_to_ptr.vmem [resolvable:$true] %s776_s8 }
 0x156   : > { %s4973_s12 = scalar_lea.hbm %s6586_s19, 512 }
 0x157   : > { %p4974_p13 = scmp.ne.s32.totalorder %s6586_s19, %s4973_s12  ;;  %p4980_p0 = scmp.lt.u32.totalorder %s4973_s12, %s6586_s19 }
 0x159   : > { %p4976_p2 = pnand %p4974_p13, %p5256_p7 }
 0x15b   : > { %p4977_p3 = pneg %p4976_p2 }
 0x15d   : > { %p4982_p1 = pnand %p4980_p0, %p4977_p3 }
 0x15f   : > { %4985 = shalt.err (!%p4982_p1)
}
 0x160   : > { %s4986_s29 = scalar_lea.vmem %s747_s4, 512  ;;  %p4994_p9 = scmp.lt.s32.totalorder %s747_s4, %s747_s4 }
 0x161   : > { %p4987_p4 = scmp.ne.s32.totalorder %s747_s4, %s4986_s29  ;;  %p4995_p10 = scmp.lt.s32.totalorder %s4986_s29, %s4986_s29 }
 0x163   : > { %p4989_p6 = pnand %p4987_p4, %p5256_p7  ;;  %p4996_p11 = por %p4995_p10, %p4994_p9 }
 0x165   : > { %p4990_p8 = pneg %p4989_p6 }
 0x167   : > { %p4997_p12 = pnand %p4996_p11, %p4990_p8 }
 0x169   : > { %5000 = shalt.err (!%p4997_p12)
}
 0x16a   : > { %4180 = dma.hbm_to_vmem [thread:$0]  (!%p5240_p5), %s6586_s19, 512, %s747_s4, [#allocation20], %s6634_s21, %s6634_s21, %s6633_s23  }
 0x16b   : > { %s5001_s27 = scalar_lea.hbm %s6589_s22, 64 }
 0x16c   : > { %p5002_p13 = scmp.ne.s32.totalorder %s6589_s22, %s5001_s27  ;;  %p5008_p0 = scmp.lt.u32.totalorder %s5001_s27, %s6589_s22 }
 0x16e   : > { %p5004_p2 = pnand %p5002_p13, %p5256_p7 }
 0x170   : > { %p5005_p3 = pneg %p5004_p2 }
 0x172   : > { %p5010_p1 = pnand %p5008_p0, %p5005_p3 }
 0x174   : > { %5013 = shalt.err (!%p5010_p1)
}
 0x175   : > { %s5014_s23 = scalar_lea.vmem %s5577_s8, 64  ;;  %p5022_p9 = scmp.lt.s32.totalorder %s5577_s8, %s5577_s8 }
 0x176   : > { %p5015_p4 = scmp.ne.s32.totalorder %s5577_s8, %s5014_s23  ;;  %p5023_p10 = scmp.lt.s32.totalorder %s5014_s23, %s5014_s23 }
 0x178   : > { %p5017_p6 = pnand %p5015_p4, %p5256_p7  ;;  %p5024_p11 = por %p5023_p10, %p5022_p9 }
 0x17a   : > { %p5018_p8 = pneg %p5017_p6 }
 0x17c   : > { %p5025_p12 = pnand %p5024_p11, %p5018_p8 }
 0x17e   : > { %5028 = shalt.err (!%p5025_p12)
}
 0x17f   : > { %4186 = dma.hbm_to_vmem [thread:$0]  (!%p5240_p5), %s6589_s22, 64, %s5577_s8, [#allocation23]  }
 0x180   : > { %p6637_p13 = scmp.ne.s32.totalorder %s6626_s24, 0 }
 0x181   : > { %s6638_s10 = sld [smem:[#allocation34_spill]] (!%p6637_p13) }
 0x182   : > { %796 = sbr.rel (%p6637_p13) target bundleno = 4802 (0x12c2), region = 112 }
 0x187   : > { %p6639_p2 = scmp.eq.s32.totalorder (!%p6637_p13), %s6638_s10, 0 }
 0x189   : > { %5034 = dma.done.wait (%p6639_p2), [#allocation3], 512   ;;  %p6640_p7 = pmov %p6639_p2 }
 0x18a   : > { %p6641_p3 = pmov %p6639_p2 }
 0x18b   : > { %5036 = vsyncadd (%p6640_p7), [#allocation3], 4294966784 }
 0x18c   : > { %5038 = dma.done.wait (%p6641_p3), [#allocation5], 768   ;;  %p6642_p0 = pmov %p6639_p2 }
 0x18e   : > { %5040 = vsyncadd (%p6642_p0), [#allocation5], 4294966528  ;;  %p6643_p1 = pmov %p6642_p0 }
 0x18f   : > { %p6644_p5 = pmov %p6642_p0 }
 0x190   : > { %5042 = dma.done.wait (%p6643_p1), [#allocation8], 1024  }
 0x191   : > { %5044 = vsyncadd (%p6644_p5), [#allocation8], 4294966272  ;;  %p6645_p4 = pmov %p6642_p0 }
 0x192   : > { %p6646_p6 = pmov %p6642_p0 }
 0x193   : > { %5046 = dma.done.wait (%p6645_p4), [#allocation11], 768  }
 0x194   : > { %5048 = vsyncadd (%p6646_p6), [#allocation11], 4294966528  ;;  %p6647_p8 = pmov %p6642_p0 }
 0x195   : > { %p6648_p9 = pmov %p6642_p0 }
 0x196   : > { %5050 = dma.done.wait (%p6647_p8), [#allocation14], 1024  }
 0x197   : > { %5052 = vsyncadd (%p6648_p9), [#allocation14], 4294966272  ;;  %p6649_p10 = pmov %p6642_p0 }
 0x198   : > { %p6650_p11 = pmov %p6642_p0 }
 0x199   : > { %5054 = dma.done.wait (%p6649_p10), [#allocation17], 512  }
 0x19a   : > { %5056 = vsyncadd (%p6650_p11), [#allocation17], 4294966784  ;;  %p6651_p12 = pmov %p6642_p0 }
 0x19b   : > { %p6652_p13 = pmov %p6642_p0 }
 0x19c   : > { %5058 = dma.done.wait (%p6651_p12), [#allocation20], 1024  }
 0x19d   : > { %5060 = vsyncadd (%p6652_p13), [#allocation20], 4294966272  ;;  %p6653_p2 = pmov %p6642_p0 }
 0x19e   : > { %p6654_p7 = pmov %p6642_p0 }
 0x19f   : > { %5062 = dma.done.wait (%p6653_p2), [#allocation23], 576  }
 0x1a0   : > { %5064 = vsyncadd (%p6654_p7), [#allocation23], 4294966720  ;;  %p914_p3 = scmp.lt.s32.totalorder %s6638_s10, 1  ;;  %v5088_v0 = vmov 0   ;;  %s6655_s8 = sld [smem:[#allocation35_spill]]  ;;  %vm1014_vm0 = vcmask 1041408  }
 0x1a1   : > { %4255 = vset.pattern.permute.xlu0 %v5088_v0  ;;  %4256 = vset.pattern.permute.xlu1 %v5088_v0  ;;  %vm1001_vm1 = vcmask 31744   ;;  %v4487_v3 = vld [vmem:[#allocation2] sm:$0xff]   ;;  %v4488_v5 = vld [vmem:[#allocation2 + $0x8] sm:$0xff]   ;;  %v4489_v6 = vld [vmem:[#allocation2 + $0x10] sm:$0xff]   ;;  %s6656_s30 = sld [smem:[#allocation37_spill]]  ;;  %s5089_s29 = smov 1  }
 0x1a2   : > { %s6670_s10 = smov (!%p914_p3, %s6638_s10), 1  ;;  %3976 = vmatprep.mubr.msk.bf16.mxu1 %vm1001_vm1, %v4487_v3  ;;  %v4490_v13 = vld [vmem:[#allocation2 + $0x18] sm:$0xff]   ;;  %s5090_s26 = smov 127   ;;  %vm1317_vm2 = vcmask 523264   ;;  %vm1187_vm3 = vcmask 7168   ;;  %vm1220_vm4 = vcmask 121856  }
 0x1a3   : > { %s3849_s24 = sshll.u32 %s6670_s10, 2  ;;  %s6657_s27 = sld [smem:[#allocation39_spill]]  ;;  %vm1395_vm5 = vcmask 130048   ;;  %vm1701_vm6 = vcmask 1043456   ;;  %vm1703_vm7 = vcmask 1045504   ;;  %vm3873_vm8 = vmneg %vm1187_vm3  ;;  %vm2592_vm11 = vcmask 261120  }
 0x1a4   : > { %s6658_s6 = sld [smem:[#allocation38_spill]]  ;;  %s6659_s25 = sld [smem:[#allocation40_spill]]  ;;  %vm6281_vm9 = vmpackc.low %vm3873_vm8, %vm3873_vm8  ;;  %vm2849_vm12 = vcmask 785408   ;;  %vm3337_vm13 = vcmask 392192   ;;  %vm5097_vm14 = vmmov 0   ;;  %vm3614_vm15 = vcmask 518144  }
 0x1a5   : > { %s6660_s2 = sld [smem:[#allocation41_spill]]  ;;  %s6661_s5 = sld [smem:[#allocation42_spill]]  ;;  %vm6299_vm10 = vmpackc.low %vm1220_vm4, %vm1220_vm4 }
 0x1a6   : > { %s917_s28 = scalar_lea.vmem %s6655_s8, %s3849_s24  ;;  %s5091_s12 = smov 16  }
 0x1a7   : > { %v939_v1 = vld [vmem:[%s917_s28] sm:$0xf]  ;;  %v933_v8 = vld [vmem:[%s6656_s30 + $0x10] sm:$0xff]  ;;  %v932_v9 = vld [vmem:[%s6656_s30 + $0x8] sm:$0xff]  ;;  %s5092_s0 = smov 112   ;;  %s5093_s23 = smov 113  }
 0x1a8   : > { %v940_v2 = vpack.c.bf16 %v939_v1, %v939_v1  ;;  %v931_v7 = vld [vmem:[%s6656_s30] sm:$0xff]  ;;  %953 = vperm.xlu1 %4256, %v933_v8   ;;  %v934_v10 = vld [vmem:[%s6656_s30 + $0x18] sm:$0xff]  ;;  %v936_v12 = vld [vmem:[%s6656_s30 + $0x28] sm:$0xff]  ;;  %s5094_s21 = smov 32   ;;  %s5096_s4 = smov 81  }
 0x1a9   : > { %943 = vperm.xlu0 %4255, %v931_v7   ;;  %v935_v11 = vld [vmem:[%s6656_s30 + $0x20] sm:$0xff]  ;;  %v937_v14 = vld [vmem:[%s6656_s30 + $0x30] sm:$0xff]  ;;  %v938_v15 = vld [vmem:[%s6656_s30 + $0x38] sm:$0xff]  ;;  %s6666_s28 = sld [smem:[#allocation46_spill]] }
 0x1aa   : > { %4080 = vmatprep.subr.msk.bf16.mxu1 %vm1014_vm0, %v940_v2  ;;  %v1016_v4 = vsel %vm1014_vm0, %v940_v2, 0 }
 0x1ab   : > { %3975 = vmatpush3.bf16.msra.mxu1 %v1016_v4 }
 0x1ac   : > { %1330 = vmatprep.subr.bf16.mxu1 %v5088_v0  ;;  %958 = vperm.xlu1 %4256, %v934_v10  }
 0x1ad   : > { %948 = vperm.xlu0 %4255, %v932_v9  }
 0x1ae   : > { %3977 = vmatmul.mubr.msk.bf16.vlgmr.msra.gmra.mrb[0].mxu1 %vm1001_vm1, %v4488_v5 }
 0x1af   : > { %3980 = vmatprep.mubr.msk.bf16.mxu1 %vm1001_vm1, %v4489_v6 }
 0x1b0   : > { %968 = vperm.xlu1 %4256, %v936_v12  }
 0x1b1   : > { %963 = vperm.xlu0 %4255, %v935_v11  }
 0x1b4   : > { %978 = vperm.xlu1 %4256, %v938_v15  }
 0x1b5   : > { %973 = vperm.xlu0 %4255, %v937_v14  }
 0x1b6   : > { %3981 = vmatmul.mubr.msk.bf16.gmra.mrb[4].mxu1 %vm1001_vm1, %v4490_v13 }
 0x227   : > { %v954_v17 = vpop.permute.xlu1 %953 }
 0x228   : > { %v944_v16 = vpop.permute.xlu0 %943 }
 0x22b   : > { %v959_v19 = vpop.permute.xlu1 %958 }
 0x22c   : > { %v949_v18 = vpop.permute.xlu0 %948 }
 0x22f   : > { %v969_v29 = vpop.permute.xlu1 %968 }
 0x230   : > { %v964_v23 = vpop.permute.xlu0 %963 }
 0x233   : > { %v979_v38 = vpop.permute.xlu1 %978 }
 0x234   : > { %v974_v34 = vpop.permute.xlu0 %973 }
 0x281   : > { %v3978_v20 = vpop.f32.mrb[0].mxu1 }
 0x282   : > { %v1061_v21 = vadd.f32 %v3978_v20, %v954_v17  ;;  %v1052_v22 = vpop.f32.mrb[1].mxu1 }
 0x283   : > { %v1053_v24 = vadd.f32 %v1052_v22, %v944_v16  ;;  %v3979_v25 = vpop.f32.mrb[2].mxu1  ;;  %v1131_v22 = vld [vmem:[%s6657_s27] sm:$0xff] }
 0x284   : > { %v1093_v26 = vmul.f32 0.70710677, %v1061_v21  ;;  %v1064_v27 = vadd.f32 %v3979_v25, %v959_v19  ;;  %v1055_v28 = vpop.f32.mrb[3].mxu1  ;;  %v1085_v54 = vmul.f32 0.5, %v1061_v21  ;;  %v1132_v21 = vld [vmem:[%s6657_s27 + $0x8] sm:$0xff] }
 0x285   : > { %v1091_v30 = vmul.f32 0.70710677, %v1053_v24  ;;  %v1056_v31 = vadd.f32 %v1055_v28, %v949_v18  ;;  %v1083_v57 = vmul.f32 0.5, %v1053_v24  ;;  %v1133_v24 = vld [vmem:[%s6657_s27 + $0x10] sm:$0xff]  ;;  %v1136_v25 = vld [vmem:[%s6657_s27 + $0x28] sm:$0xff] }
 0x286   : > { %4513 = verf.f32 %v1093_v26  ;;  %v1094_v32 = vmul.f32 0.70710677, %v1064_v27  ;;  %v1086_v55 = vmul.f32 0.5, %v1064_v27  ;;  %v1135_v26 = vld [vmem:[%s6657_s27 + $0x20] sm:$0xff]  ;;  %v1138_v27 = vld [vmem:[%s6657_s27 + $0x38] sm:$0xff]  ;;  %v1137_v28 = vld [vmem:[%s6657_s27 + $0x30] sm:$0xff] }
 0x287   : > { %4515 = verf.f32 %v1091_v30  ;;  %v1092_v33 = vmul.f32 0.70710677, %v1056_v31  ;;  %v1084_v58 = vmul.f32 0.5, %v1056_v31 }
 0x288   : > { %4517 = verf.f32 %v1094_v32 }
 0x289   : > { %4519 = verf.f32 %v1092_v33  ;;  %v3982_v35 = vpop.f32.mrb[4].mxu1 }
 0x28a   : > { %v1077_v36 = vadd.f32 %v3982_v35, %v974_v34  ;;  %v1068_v37 = vpop.f32.mrb[5].mxu1 }
 0x28b   : > { %v1069_v39 = vadd.f32 %v1068_v37, %v964_v23  ;;  %v3983_v40 = vpop.f32.mrb[6].mxu1  ;;  %v1134_v23 = vld [vmem:[%s6657_s27 + $0x18] sm:$0xff] }
 0x28c   : > { %v1097_v41 = vmul.f32 0.70710677, %v1077_v36  ;;  %v1080_v42 = vadd.f32 %v3983_v40, %v979_v38  ;;  %v1071_v43 = vpop.f32.mrb[7].mxu1  ;;  %v1089_v9 = vmul.f32 0.5, %v1077_v36 }
 0x28d   : > { %v1095_v44 = vmul.f32 0.70710677, %v1069_v39  ;;  %v1072_v45 = vadd.f32 %v1071_v43, %v969_v29  ;;  %v1087_v12 = vmul.f32 0.5, %v1069_v39  ;;  %v4493_v29 = vld [vmem:[%s6658_s6 + $0x4] ss:$8 sps:$4 sm:$0xff]  }
 0x28e   : > { %4521 = verf.f32 %v1097_v41  ;;  %v1098_v46 = vmul.f32 0.70710677, %v1080_v42  ;;  %v1090_v10 = vmul.f32 0.5, %v1080_v42  ;;  %3867 = vmatprep.mubr.msk.bf16.mxu1 %vm1317_vm2, %v4493_v29 }
 0x28f   : > { %4523 = verf.f32 %v1095_v44  ;;  %v1096_v47 = vmul.f32 0.70710677, %v1072_v45  ;;  %v1088_v13 = vmul.f32 0.5, %v1072_v45 }
 0x290   : > { %v4514_v48 = vpop.eup %4513  ;;  %4525 = verf.f32 %v1098_v46 }
 0x291   : > { %v4516_v49 = vpop.eup %4515  ;;  %v1109_v50 = vadd.f32 1.0, %v4514_v48  ;;  %4527 = verf.f32 %v1096_v47 }
 0x292   : > { %v4518_v51 = vpop.eup %4517  ;;  %v1107_v52 = vadd.f32 1.0, %v4516_v49 }
 0x293   : > { %v4520_v53 = vpop.eup %4519  ;;  %v1110_v56 = vadd.f32 1.0, %v4518_v51  ;;  %v5700_v60 = vmul.f32 %v1109_v50, %v1085_v54 }
 0x294   : > { %v1108_v59 = vadd.f32 1.0, %v4520_v53  ;;  %v5704_v62 = vmul.f32 %v1107_v52, %v1083_v57 }
 0x295   : > { %v5702_v61 = vmul.f32 %v1110_v56, %v1086_v55 }
 0x296   : > { %v5706_v63 = vmul.f32 %v1108_v59, %v1084_v58 }
 0x297   : > { %v4262_v1 = vpack.i.bf16 %v5702_v61, %v5700_v60  ;;  %v1234_v55 = vpack.c.bf16 %v5702_v61, %v5700_v60 }
 0x298   : > { %v4522_v2 = vpop.eup %4521  ;;  %v4257_v3 = vpack.i.bf16 %v5706_v63, %v5704_v62  ;;  %v1233_v54 = vpack.c.bf16 %v5706_v63, %v5704_v62 }
 0x299   : > { %v4524_v4 = vpop.eup %4523  ;;  %v1113_v5 = vadd.f32 1.0, %v4522_v2  ;;  %4263 = vrot.lane.b32.xlu1 %v4262_v1, %s5089_s29 }
 0x29a   : > { %v4526_v6 = vpop.eup %4525  ;;  %v1111_v7 = vadd.f32 1.0, %v4524_v4  ;;  %4258 = vrot.lane.b32.xlu0 %v4257_v3, %s5089_s29 }
 0x29b   : > { %v4528_v8 = vpop.eup %4527  ;;  %v1114_v11 = vadd.f32 1.0, %v4526_v6  ;;  %v5714_v15 = vmul.f32 %v1113_v5, %v1089_v9 }
 0x29c   : > { %v1112_v14 = vadd.f32 1.0, %v4528_v8  ;;  %v5718_v17 = vmul.f32 %v1111_v7, %v1087_v12 }
 0x29d   : > { %v5716_v16 = vmul.f32 %v1114_v11, %v1090_v10 }
 0x29e   : > { %v5720_v18 = vmul.f32 %v1112_v14, %v1088_v13 }
 0x29f   : > { %v4272_v19 = vpack.i.bf16 %v5716_v16, %v5714_v15  ;;  %v1236_v2 = vpack.c.bf16 %v5716_v16, %v5714_v15 }
 0x2a0   : > { %v4267_v20 = vpack.i.bf16 %v5720_v18, %v5718_v17  ;;  %v1235_v57 = vpack.c.bf16 %v5720_v18, %v5718_v17 }
 0x2a1   : > { %4273 = vrot.lane.b32.xlu1 %v4272_v19, %s5089_s29 }
 0x2a2   : > { %4268 = vrot.lane.b32.xlu0 %v4267_v20, %s5089_s29 }
 0x2a5   : > { %4283 = vrot.lane.b32.xlu1 %v4262_v1, %s5090_s26 }
 0x2a6   : > { %4278 = vrot.lane.b32.xlu0 %v4257_v3, %s5090_s26 }
 0x2a9   : > { %4293 = vrot.lane.b32.xlu1 %v4272_v19, %s5090_s26 }
 0x2aa   : > { %4288 = vrot.lane.b32.xlu0 %v4267_v20, %s5090_s26 }
 0x2ad   : > { %1248 = vperm.xlu1 %4256, %v1132_v21  }
 0x2ae   : > { %1243 = vperm.xlu0 %4255, %v1131_v22  }
 0x2b1   : > { %1258 = vperm.xlu1 %4256, %v1134_v23   ;;  %v4500_v23 = vld [vmem:[%s6658_s6 + $0x34] ss:$8 sps:$4 sm:$0xff]  }
 0x2b2   : > { %1253 = vperm.xlu0 %4255, %v1133_v24   ;;  %v4502_v24 = vld [vmem:[%s6658_s6 + $0x30] ss:$8 sps:$4 sm:$0xff]  }
 0x2b5   : > { %1268 = vperm.xlu1 %4256, %v1136_v25  }
 0x2b6   : > { %1263 = vperm.xlu0 %4255, %v1135_v26  }
 0x2b9   : > { %1278 = vperm.xlu1 %4256, %v1138_v27  }
 0x2ba   : > { %1273 = vperm.xlu0 %4255, %v1137_v28  }
 0x30b   : > { %v4264_v30 = vpop.permute.xlu1 %4263 }
 0x30c   : > { %v4259_v31 = vpop.permute.xlu0 %4258  ;;  %v4266_v32 = vunpack.i.h.bf16 %v4264_v30  ;;  %v4265_v33 = vunpack.i.l.bf16 %v4264_v30 }
 0x30d   : > { %v4261_v34 = vunpack.i.h.bf16 %v4259_v31  ;;  %v4260_v35 = vunpack.i.l.bf16 %v4259_v31 }
 0x30e   : > { %v1191_v39 = vsel %vm1187_vm3, %v5702_v61, %v4266_v32  ;;  %v1190_v40 = vsel %vm1187_vm3, %v5700_v60, %v4265_v33 }
 0x30f   : > { %v1189_v36 = vsel %vm1187_vm3, %v5706_v63, %v4261_v34  ;;  %v1188_v37 = vsel %vm1187_vm3, %v5704_v62, %v4260_v35  ;;  %v1230_v43 = vpack.c.bf16 %v1191_v39, %v1190_v40 }
 0x310   : > { %v1229_v38 = vpack.c.bf16 %v1189_v36, %v1188_v37 }
 0x312   : > { %1331 = vmatpush1.bf16.msra.mxu1 %v1229_v38 }
 0x313   : > { %v4274_v41 = vpop.permute.xlu1 %4273  ;;  %1332 = vmatprep.subr.bf16.mxu1 %v5088_v0 }
 0x314   : > { %v4269_v42 = vpop.permute.xlu0 %4268  ;;  %v4276_v44 = vunpack.i.h.bf16 %v4274_v41  ;;  %v4275_v45 = vunpack.i.l.bf16 %v4274_v41 }
 0x315   : > { %v4271_v46 = vunpack.i.h.bf16 %v4269_v42  ;;  %v4270_v47 = vunpack.i.l.bf16 %v4269_v42 }
 0x316   : > { %1333 = vmatpush1.bf16.msra.mxu1 %v1230_v43  ;;  %v1195_v51 = vsel %vm1187_vm3, %v5716_v16, %v4276_v44  ;;  %v1194_v52 = vsel %vm1187_vm3, %v5714_v15, %v4275_v45 }
 0x317   : > { %v1193_v48 = vsel %vm1187_vm3, %v5720_v18, %v4271_v46  ;;  %v1192_v49 = vsel %vm1187_vm3, %v5718_v17, %v4270_v47  ;;  %1334 = vmatprep.subr.bf16.mxu1 %v5088_v0  ;;  %v1232_v53 = vpack.c.bf16 %v1195_v51, %v1194_v52  ;;  %v4284_v1 = vpop.permute.xlu1 %4283 }
 0x318   : > { %v1231_v50 = vpack.c.bf16 %v1193_v48, %v1192_v49  ;;  %v4279_v56 = vpop.permute.xlu0 %4278  ;;  %v4286_v3 = vunpack.i.h.bf16 %v4284_v1  ;;  %v4285_v4 = vunpack.i.l.bf16 %v4284_v1 }
 0x319   : > { %v4281_v58 = vunpack.i.h.bf16 %v4279_v56  ;;  %v4280_v59 = vunpack.i.l.bf16 %v4279_v56 }
 0x31a   : > { %1335 = vmatpush1.bf16.msra.mxu1 %v1231_v50  ;;  %v1224_v9 = vsel %vm1220_vm4, %v4286_v3, %v5702_v61  ;;  %v1223_v10 = vsel %vm1220_vm4, %v4285_v4, %v5700_v60 }
 0x31b   : > { %1336 = vmatprep.subr.bf16.mxu1 %v5088_v0  ;;  %v1222_v5 = vsel %vm1220_vm4, %v4281_v58, %v5706_v63  ;;  %v1221_v6 = vsel %vm1220_vm4, %v4280_v59, %v5704_v62  ;;  %v4294_v13 = vpop.permute.xlu1 %4293  ;;  %v1238_v63 = vpack.c.bf16 %v1224_v9, %v1223_v10 }
 0x31c   : > { %v4289_v7 = vpop.permute.xlu0 %4288  ;;  %v1237_v8 = vpack.c.bf16 %v1222_v5, %v1221_v6  ;;  %v4296_v14 = vunpack.i.h.bf16 %v4294_v13  ;;  %v4295_v62 = vunpack.i.l.bf16 %v4294_v13 }
 0x31d   : > { %v4291_v11 = vunpack.i.h.bf16 %v4289_v7  ;;  %v4290_v12 = vunpack.i.l.bf16 %v4289_v7 }
 0x31e   : > { %1337 = vmatpush1.bf16.msra.mxu1 %v1232_v53  ;;  %v1228_v60 = vsel %vm1220_vm4, %v4296_v14, %v5716_v16  ;;  %v1227_v21 = vsel %vm1220_vm4, %v4295_v62, %v5714_v15  ;;  %v4496_v15 = vld [vmem:[%s6658_s6 + $0x10] ss:$8 sps:$4 sm:$0xff]   ;;  %v4499_v16 = vld [vmem:[%s6658_s6 + $0x20] ss:$8 sps:$4 sm:$0xff]  }
 0x31f   : > { %1338 = vmatprep.subr.bf16.mxu1 %v5088_v0  ;;  %v1226_v19 = vsel %vm1220_vm4, %v4291_v11, %v5720_v18  ;;  %v1225_v20 = vsel %vm1220_vm4, %v4290_v12, %v5718_v17  ;;  %v1240_v22 = vpack.c.bf16 %v1228_v60, %v1227_v21  ;;  %v4491_v18 = vld [vmem:[%s6658_s6] ss:$8 sps:$4 sm:$0xff]   ;;  %v4494_v17 = vld [vmem:[%s6658_s6 + $0x14] ss:$8 sps:$4 sm:$0xff]  }
 0x320   : > { %v1239_v61 = vpack.c.bf16 %v1226_v19, %v1225_v20 }
 0x322   : > { %1339 = vmatpush1.bf16.msra.mxu1 %v1233_v54 }
 0x323   : > { %1340 = vmatprep.subr.bf16.mxu1 %v5088_v0 }
 0x326   : > { %1341 = vmatpush1.bf16.msra.mxu1 %v1234_v55 }
 0x327   : > { %1342 = vmatprep.subr.bf16.mxu1 %v5088_v0 }
 0x32a   : > { %1343 = vmatpush1.bf16.msra.mxu1 %v1235_v57 }
 0x32b   : > { %1344 = vmatprep.subr.bf16.mxu1 %v5088_v0 }
 0x32c   : > { %v1249_v29 = vpop.permute.xlu1 %1248 }
 0x32d   : > { %v1244_v25 = vpop.permute.xlu0 %1243 }
 0x32e   : > { %1345 = vmatpush1.bf16.msra.mxu1 %v1236_v2 }
 0x32f   : > { %1346 = vmatprep.subr.bf16.mxu1 %v5088_v0 }
 0x330   : > { %v1259_v39 = vpop.permute.xlu1 %1258 }
 0x331   : > { %v1254_v35 = vpop.permute.xlu0 %1253 }
 0x332   : > { %1347 = vmatpush1.bf16.msra.mxu1 %v1237_v8 }
 0x333   : > { %1348 = vmatprep.subr.bf16.mxu1 %v5088_v0 }
 0x334   : > { %v1269_v49 = vpop.permute.xlu1 %1268 }
 0x335   : > { %v1264_v45 = vpop.permute.xlu0 %1263 }
 0x336   : > { %1349 = vmatpush1.bf16.msra.mxu1 %v1238_v63 }
 0x337   : > { %1350 = vmatprep.subr.bf16.mxu1 %v5088_v0 }
 0x338   : > { %v1279_v59 = vpop.permute.xlu1 %1278 }
 0x339   : > { %v1274_v55 = vpop.permute.xlu0 %1273 }
 0x33a   : > { %1351 = vmatpush1.bf16.msra.mxu1 %v1239_v61 }
 0x33b   : > { %1352 = vmatprep.subr.bf16.mxu1 %v5088_v0  ;;  %v4497_v0 = vld [vmem:[%s6658_s6 + $0x24] ss:$8 sps:$4 sm:$0xff]  }
 0x33e   : > { %1353 = vmatpush1.bf16.msra.mxu1 %v1240_v22 }
 0x341   : > { %1363 = vmatmul.mubr.bf16.vlgmr.msra.gmra.mrb[8].mxu1 %v4491_v18 }
 0x342   : > { %3868 = vmatprep.mubr.msk.bf16.mxu1 %vm1317_vm2, %v4494_v17 }
 0x349   : > { %1371 = vmatmul.mubr.bf16.gmra.mrb[12].mxu1 %v4496_v15 }
 0x34a   : > { %3869 = vmatprep.mubr.msk.bf16.mxu1 %vm1317_vm2, %v4497_v0 }
 0x351   : > { %1379 = vmatmul.mubr.bf16.gmra.mrb[16].mxu1 %v4499_v16 }
 0x352   : > { %3870 = vmatprep.mubr.msk.bf16.mxu1 %vm1317_vm2, %v4500_v23 }
 0x359   : > { %1387 = vmatmul.mubr.bf16.gmra.mrb[20].mxu1 %v4502_v24 }
 0x414   : > { %v1364_v26 = vpop.f32.mrb[8].mxu1 }
 0x415   : > { %v5835_v27 = vadd.f32 %v1364_v26, %v1244_v25  ;;  %v1366_v28 = vpop.f32.mrb[9].mxu1 }
 0x416   : > { %v1367_v30 = vpop.f32.mrb[10].mxu1 }
 0x417   : > { %v5837_v31 = vadd.f32 %v1367_v30, %v1249_v29  ;;  %v1369_v32 = vpop.f32.mrb[11].mxu1  ;;  %v1396_v33 = vsel %vm1395_vm5, %v5835_v27, 0.0 }
 0x418   : > { %1397 = vadd.xlane.f32.xlu0 %v1396_v33 }
 0x419   : > { %v1399_v34 = vsel %vm1395_vm5, %v5837_v31, 0.0 }
 0x41a   : > { %1400 = vadd.xlane.f32.xlu1 %v1399_v34 }
 0x41c   : > { %v1372_v36 = vpop.f32.mrb[12].mxu1 }
 0x41d   : > { %v5843_v37 = vadd.f32 %v1372_v36, %v1254_v35  ;;  %v1374_v38 = vpop.f32.mrb[13].mxu1 }
 0x41e   : > { %v1375_v40 = vpop.f32.mrb[14].mxu1 }
 0x41f   : > { %v5845_v41 = vadd.f32 %v1375_v40, %v1259_v39  ;;  %v1377_v42 = vpop.f32.mrb[15].mxu1  ;;  %v1402_v43 = vsel %vm1395_vm5, %v5843_v37, 0.0 }
 0x420   : > { %1403 = vadd.xlane.f32.xlu0 %v1402_v43 }
 0x421   : > { %v1405_v44 = vsel %vm1395_vm5, %v5845_v41, 0.0 }
 0x424   : > { %v1380_v46 = vpop.f32.mrb[16].mxu1  ;;  %1406 = vadd.xlane.f32.xlu0 %v1405_v44 }
 0x425   : > { %v5851_v47 = vadd.f32 %v1380_v46, %v1264_v45  ;;  %v1382_v48 = vpop.f32.mrb[17].mxu1 }
 0x426   : > { %v1383_v50 = vpop.f32.mrb[18].mxu1 }
 0x427   : > { %v5853_v51 = vadd.f32 %v1383_v50, %v1269_v49  ;;  %v1385_v52 = vpop.f32.mrb[19].mxu1  ;;  %v1408_v53 = vsel %vm1395_vm5, %v5851_v47, 0.0 }
 0x428   : > { %1409 = vadd.xlane.f32.xlu1 %v1408_v53 }
 0x429   : > { %v1411_v54 = vsel %vm1395_vm5, %v5853_v51, 0.0 }
 0x42a   : > { %1412 = vadd.xlane.f32.xlu0 %v1411_v54 }
 0x42c   : > { %v1388_v56 = vpop.f32.mrb[20].mxu1 }
 0x42d   : > { %v5859_v57 = vadd.f32 %v1388_v56, %v1274_v55  ;;  %v1390_v58 = vpop.f32.mrb[21].mxu1 }
 0x42e   : > { %v1391_v1 = vpop.f32.mrb[22].mxu1 }
 0x42f   : > { %v5861_v2 = vadd.f32 %v1391_v1, %v1279_v59  ;;  %v1393_v3 = vpop.f32.mrb[23].mxu1  ;;  %v1414_v4 = vsel %vm1395_vm5, %v5859_v57, 0.0 }
 0x430   : > { %1415 = vadd.xlane.f32.xlu1 %v1414_v4 }
 0x431   : > { %v1417_v5 = vsel %vm1395_vm5, %v5861_v2, 0.0 }
 0x432   : > { %1418 = vadd.xlane.f32.xlu0 %v1417_v5 }
 0x4a5   : > { %v1398_v6 = vpop.xlane.xlu0 %1397 }
 0x4a6   : > { %v1420_v7 = vsel %vm1014_vm0, %v1398_v6, 0.0  ;;  %v1428_v8 = vrot.slane %v1398_v6, 2  ;;  %v1437_v9 = vrot.slane %v1398_v6, 4  ;;  %v1446_v10 = vrot.slane %v1398_v6, 6 }
 0x4a7   : > { %v1421_v11 = vrot.slane %v1420_v7, 4  ;;  %v1401_v12 = vpop.xlane.xlu1 %1400 }
 0x4a8   : > { %v1430_v13 = vsel %vm1014_vm0, %v1428_v8, 0.0  ;;  %v1439_v63 = vsel %vm1014_vm0, %v1437_v9, 0.0  ;;  %v1448_v14 = vsel %vm1014_vm0, %v1446_v10, 0.0  ;;  %v1455_v62 = vsel %vm1014_vm0, %v1401_v12, 0.0 }
 0x4a9   : > { %v1422_v19 = vadd.f32 %v1421_v11, %v1420_v7  ;;  %v1431_v20 = vrot.slane %v1430_v13, 4  ;;  %v1440_v61 = vrot.slane %v1439_v63, 4  ;;  %v1449_v60 = vrot.slane %v1448_v14, 4 }
 0x4aa   : > { %v1456_v21 = vrot.slane %v1455_v62, 4  ;;  %v1463_v22 = vrot.slane %v1401_v12, 2  ;;  %v1472_v18 = vrot.slane %v1401_v12, 4  ;;  %v1481_v17 = vrot.slane %v1401_v12, 6 }
 0x4ab   : > { %v1423_v15 = vrot.slane %v1422_v19, 2  ;;  %v1432_v0 = vadd.f32 %v1431_v20, %v1430_v13  ;;  %v5872_v16 = vadd.f32 %v1440_v61, %v1439_v63  ;;  %v5874_v23 = vadd.f32 %v1449_v60, %v1448_v14 }
 0x4ac   : > { %v1457_v24 = vadd.f32 %v1456_v21, %v1455_v62  ;;  %v1465_v25 = vsel %vm1014_vm0, %v1463_v22, 0.0  ;;  %v1474_v26 = vsel %vm1014_vm0, %v1472_v18, 0.0  ;;  %v1483_v28 = vsel %vm1014_vm0, %v1481_v17, 0.0 }
 0x4ad   : > { %v5879_v29 = vadd.f32 %v1423_v15, %v1422_v19  ;;  %v1433_v30 = vrot.slane %v1432_v0, 2  ;;  %v1442_v32 = vrot.slane %v5872_v16, 2  ;;  %v1466_v33 = vrot.slane %v1465_v25, 4  ;;  %v1404_v34 = vpop.xlane.xlu0 %1403 }
 0x4ae   : > { %v1458_v35 = vrot.slane %v1457_v24, 2  ;;  %v1475_v36 = vrot.slane %v1474_v26, 4  ;;  %v1484_v38 = vrot.slane %v1483_v28, 4  ;;  %v1490_v39 = vsel %vm1014_vm0, %v1404_v34, 0.0 }
 0x4af   : > { %v1425_v40 = vrot.slane %v5879_v29, 1  ;;  %v5884_v42 = vadd.f32 %v1433_v30, %v1432_v0  ;;  %v1467_v43 = vadd.f32 %v1466_v33, %v1465_v25  ;;  %v1491_v44 = vrot.slane %v1490_v39, 4 }
 0x4b0   : > { %v5886_v45 = vadd.f32 %v1458_v35, %v1457_v24  ;;  %v5888_v46 = vadd.f32 %v1475_v36, %v1474_v26  ;;  %v5890_v48 = vadd.f32 %v1484_v38, %v1483_v28  ;;  %v1498_v49 = vrot.slane %v1404_v34, 2 }
 0x4b1   : > { %v1468_v50 = vrot.slane %v1467_v43, 2  ;;  %v1492_v52 = vadd.f32 %v1491_v44, %v1490_v39  ;;  %v1507_v53 = vrot.slane %v1404_v34, 4  ;;  %v1516_v54 = vrot.slane %v1404_v34, 6  ;;  %v1407_v55 = vpop.xlane.xlu0 %1406 }
 0x4b2   : > { %v1460_v56 = vrot.slane %v5886_v45, 1  ;;  %v1477_v58 = vrot.slane %v5888_v46, 2  ;;  %v1500_v59 = vsel %vm1014_vm0, %v1498_v49, 0.0  ;;  %v1525_v1 = vsel %vm1014_vm0, %v1407_v55, 0.0 }
 0x4b3   : > { %v5896_v3 = vadd.f32 %v1468_v50, %v1467_v43  ;;  %v1493_v4 = vrot.slane %v1492_v52, 2  ;;  %v1501_v5 = vrot.slane %v1500_v59, 4  ;;  %v1509_v6 = vsel %vm1014_vm0, %v1507_v53, 0.0 }
 0x4b4   : > { %v1510_v7 = vrot.slane %v1509_v6, 4  ;;  %v1518_v8 = vsel %vm1014_vm0, %v1516_v54, 0.0  ;;  %v1526_v9 = vrot.slane %v1525_v1, 4  ;;  %v1533_v10 = vrot.slane %v1407_v55, 2 }
 0x4b5   : > { %v5900_v11 = vadd.f32 %v1493_v4, %v1492_v52  ;;  %v1502_v12 = vadd.f32 %v1501_v5, %v1500_v59  ;;  %v1519_v13 = vrot.slane %v1518_v8, 4  ;;  %v1542_v63 = vrot.slane %v1407_v55, 4  ;;  %v1410_v18 = vpop.xlane.xlu1 %1409 }
 0x4b6   : > { %v5902_v14 = vadd.f32 %v1510_v7, %v1509_v6  ;;  %v1527_v62 = vadd.f32 %v1526_v9, %v1525_v1  ;;  %v1535_v19 = vsel %vm1014_vm0, %v1533_v10, 0.0  ;;  %v1551_v20 = vrot.slane %v1407_v55, 6 }
 0x4b7   : > { %v1495_v61 = vrot.slane %v5900_v11, 1  ;;  %v1503_v60 = vrot.slane %v1502_v12, 2  ;;  %v5906_v21 = vadd.f32 %v1519_v13, %v1518_v8  ;;  %v1536_v22 = vrot.slane %v1535_v19, 4  ;;  %v1413_v49 = vpop.xlane.xlu0 %1412 }
 0x4b8   : > { %v1512_v17 = vrot.slane %v5902_v14, 2  ;;  %v1528_v15 = vrot.slane %v1527_v62, 2  ;;  %v1544_v0 = vsel %vm1014_vm0, %v1542_v63, 0.0  ;;  %v1553_v24 = vsel %vm1014_vm0, %v1551_v20, 0.0 }
 0x4b9   : > { %v5911_v25 = vadd.f32 %v1503_v60, %v1502_v12  ;;  %v1537_v26 = vadd.f32 %v1536_v22, %v1535_v19  ;;  %v1545_v28 = vrot.slane %v1544_v0, 4  ;;  %v1554_v30 = vrot.slane %v1553_v24, 4 }
 0x4ba   : > { %v5913_v33 = vadd.f32 %v1528_v15, %v1527_v62  ;;  %v1560_v34 = vsel %vm1014_vm0, %v1410_v18, 0.0  ;;  %v1568_v35 = vrot.slane %v1410_v18, 2  ;;  %v1577_v36 = vrot.slane %v1410_v18, 4 }
 0x4bb   : > { %v1538_v38 = vrot.slane %v1537_v26, 2  ;;  %v5916_v39 = vadd.f32 %v1545_v28, %v1544_v0  ;;  %v5918_v43 = vadd.f32 %v1554_v30, %v1553_v24  ;;  %v1561_v44 = vrot.slane %v1560_v34, 4 }
 0x4bc   : > { %v1530_v50 = vrot.slane %v5913_v33, 1  ;;  %v1570_v52 = vsel %vm1014_vm0, %v1568_v35, 0.0  ;;  %v1579_v53 = vsel %vm1014_vm0, %v1577_v36, 0.0  ;;  %v1586_v54 = vrot.slane %v1410_v18, 6 }
 0x4bd   : > { %v5923_v55 = vadd.f32 %v1538_v38, %v1537_v26  ;;  %v1547_v59 = vrot.slane %v5916_v39, 2  ;;  %v1562_v1 = vadd.f32 %v1561_v44, %v1560_v34  ;;  %v1571_v4 = vrot.slane %v1570_v52, 4 }
 0x4be   : > { %v1580_v5 = vrot.slane %v1579_v53, 4  ;;  %v1588_v6 = vsel %vm1014_vm0, %v1586_v54, 0.0  ;;  %v1595_v7 = vsel %vm1014_vm0, %v1413_v49, 0.0  ;;  %v1603_v8 = vrot.slane %v1413_v49, 2 }
 0x4bf   : > { %v1563_v9 = vrot.slane %v1562_v1, 2  ;;  %v1572_v10 = vadd.f32 %v1571_v4, %v1570_v52  ;;  %v1589_v12 = vrot.slane %v1588_v6, 4  ;;  %v1596_v13 = vrot.slane %v1595_v7, 4 }
 0x4c0   : > { %v5928_v63 = vadd.f32 %v1580_v5, %v1579_v53  ;;  %v1605_v62 = vsel %vm1014_vm0, %v1603_v8, 0.0  ;;  %v1612_v19 = vrot.slane %v1413_v49, 4  ;;  %v1621_v20 = vrot.slane %v1413_v49, 6 }
 0x4c1   : > { %v5931_v60 = vadd.f32 %v1563_v9, %v1562_v1  ;;  %v1573_v22 = vrot.slane %v1572_v10, 2  ;;  %v5933_v18 = vadd.f32 %v1589_v12, %v1588_v6  ;;  %v1597_v15 = vadd.f32 %v1596_v13, %v1595_v7 }
 0x4c2   : > { %v1582_v0 = vrot.slane %v5928_v63, 2  ;;  %v1606_v24 = vrot.slane %v1605_v62, 4  ;;  %v1614_v26 = vsel %vm1014_vm0, %v1612_v19, 0.0  ;;  %v1623_v28 = vsel %vm1014_vm0, %v1621_v20, 0.0 }
 0x4c3   : > { %v1565_v30 = vrot.slane %v5931_v60, 1  ;;  %v5939_v34 = vadd.f32 %v1573_v22, %v1572_v10  ;;  %v1598_v35 = vrot.slane %v1597_v15, 2  ;;  %v1615_v36 = vrot.slane %v1614_v26, 4 }
 0x4c4   : > { %v1607_v38 = vadd.f32 %v1606_v24, %v1605_v62  ;;  %v1624_v44 = vrot.slane %v1623_v28, 4  ;;  %v1426_v49 = vadd.f32 %v1425_v40, %v5879_v29  ;;  %v1435_v52 = vrot.slane %v5884_v42, 1  ;;  %v1416_v40 = vpop.xlane.xlu1 %1415 }
 0x4c5   : > { %v5945_v53 = vadd.f32 %v1598_v35, %v1597_v15  ;;  %v5947_v54 = vadd.f32 %v1615_v36, %v1614_v26  ;;  %v1443_v1 = vadd.f32 %v1442_v32, %v5872_v16  ;;  %v1451_v4 = vrot.slane %v5874_v23, 2 }
 0x4c6   : > { %v1608_v5 = vrot.slane %v1607_v38, 2  ;;  %v5953_v6 = vadd.f32 %v1624_v44, %v1623_v28  ;;  %v1436_v7 = vadd.f32 %v1435_v52, %v5884_v42  ;;  %v1461_v29 = vadd.f32 %v1460_v56, %v5886_v45  ;;  %v1419_v44 = vpop.xlane.xlu0 %1418 }
 0x4c7   : > { %v1600_v8 = vrot.slane %v5945_v53, 1  ;;  %v1617_v9 = vrot.slane %v5947_v54, 2  ;;  %v1444_v10 = vrot.slane %v1443_v1, 1  ;;  %v1452_v12 = vadd.f32 %v1451_v4, %v5874_v23 }
 0x4c8   : > { %v5962_v16 = vadd.f32 %v1608_v5, %v1607_v38  ;;  %v1700_v32 = vsel %vm1014_vm0, %v1426_v49, %v1436_v7  ;;  %v1470_v13 = vrot.slane %v5896_v3, 1  ;;  %v1478_v42 = vadd.f32 %v1477_v58, %v5888_v46 }
 0x4c9   : > { %v1445_v62 = vadd.f32 %v1444_v10, %v1443_v1  ;;  %v1453_v45 = vrot.slane %v1452_v12, 1  ;;  %v1486_v56 = vrot.slane %v5890_v48, 2  ;;  %v1630_v19 = vsel %vm1014_vm0, %v1416_v40, 0.0 }
 0x4ca   : > { %v1471_v20 = vadd.f32 %v1470_v13, %v5896_v3  ;;  %v1479_v22 = vrot.slane %v1478_v42, 1  ;;  %v1631_v23 = vrot.slane %v1630_v19, 4  ;;  %v1638_v15 = vrot.slane %v1416_v40, 2 }
 0x4cb   : > { %v1454_v24 = vadd.f32 %v1453_v45, %v1452_v12  ;;  %v1702_v26 = vsel %vm1701_vm6, %v1700_v32, %v1445_v62  ;;  %v1487_v28 = vadd.f32 %v1486_v56, %v5890_v48  ;;  %v1647_v35 = vrot.slane %v1416_v40, 4 }
 0x4cc   : > { %v1480_v36 = vadd.f32 %v1479_v22, %v1478_v42  ;;  %v1705_v46 = vsel %vm1014_vm0, %v1461_v29, %v1471_v20  ;;  %v1632_v58 = vadd.f32 %v1631_v23, %v1630_v19  ;;  %v1640_v38 = vsel %vm1014_vm0, %v1638_v15, 0.0 }
 0x4cd   : > { %v1704_v49 = vsel %vm1703_vm7, %v1702_v26, %v1454_v24  ;;  %v1488_v52 = vrot.slane %v1487_v28, 1  ;;  %v1641_v3 = vrot.slane %v1640_v38, 4  ;;  %v1649_v1 = vsel %vm1014_vm0, %v1647_v35, 0.0 }
 0x4ce   : > { %v1726_v4 = vmul.f32 0.03125, %v1704_v49  ;;  %v1706_v5 = vsel %vm1701_vm6, %v1705_v46, %v1480_v36  ;;  %v1633_v7 = vrot.slane %v1632_v58, 2  ;;  %v1650_v10 = vrot.slane %v1649_v1, 4 }
 0x4cf   : > { %v1489_v48 = vadd.f32 %v1488_v52, %v1487_v28  ;;  %v1642_v12 = vadd.f32 %v1641_v3, %v1640_v38  ;;  %v1656_v32 = vrot.slane %v1416_v40, 6  ;;  %v1665_v29 = vsel %vm1014_vm0, %v1419_v44, 0.0 }
 0x4d0   : > { %1736 = vperm.xlu1 %4256, %v1726_v4   ;;  %v5980_v13 = vadd.f32 %v1633_v7, %v1632_v58  ;;  %v5982_v42 = vadd.f32 %v1650_v10, %v1649_v1  ;;  %v1666_v62 = vrot.slane %v1665_v29, 4  ;;  %v1673_v45 = vrot.slane %v1419_v44, 2 }
 0x4d1   : > { %v1707_v56 = vsel %vm1703_vm7, %v1706_v5, %v1489_v48  ;;  %v1643_v19 = vrot.slane %v1642_v12, 2  ;;  %v1658_v20 = vsel %vm1014_vm0, %v1656_v32, 0.0  ;;  %v1682_v22 = vrot.slane %v1419_v44, 4 }
 0x4d2   : > { %v1727_v23 = vmul.f32 0.03125, %v1707_v56  ;;  %v1635_v15 = vrot.slane %v5980_v13, 1  ;;  %v1652_v40 = vrot.slane %v5982_v42, 2  ;;  %v1659_v24 = vrot.slane %v1658_v20, 4 }
 0x4d3   : > { %v5988_v26 = vadd.f32 %v1643_v19, %v1642_v12  ;;  %v1667_v28 = vadd.f32 %v1666_v62, %v1665_v29  ;;  %v1675_v35 = vsel %vm1014_vm0, %v1673_v45, 0.0  ;;  %v1684_v36 = vsel %vm1014_vm0, %v1682_v22, 0.0 }
 0x4d4   : > { %1741 = vperm.xlu0 %4255, %v1727_v23   ;;  %v5992_v46 = vadd.f32 %v1659_v24, %v1658_v20  ;;  %v1676_v58 = vrot.slane %v1675_v35, 4  ;;  %v1685_v38 = vrot.slane %v1684_v36, 4  ;;  %v1691_v49 = vrot.slane %v1419_v44, 6 }
 0x4d5   : > { %v1668_v52 = vrot.slane %v1667_v28, 2  ;;  %v1496_v3 = vadd.f32 %v1495_v61, %v5900_v11  ;;  %v1505_v1 = vrot.slane %v5911_v25, 1  ;;  %v1513_v4 = vadd.f32 %v1512_v17, %v5902_v14 }
 0x4d6   : > { %v1677_v5 = vadd.f32 %v1676_v58, %v1675_v35  ;;  %v6001_v7 = vadd.f32 %v1685_v38, %v1684_v36  ;;  %v1693_v10 = vsel %vm1014_vm0, %v1691_v49, 0.0  ;;  %v1521_v48 = vrot.slane %v5906_v21, 2 }
 0x4d7   : > { %v6005_v12 = vadd.f32 %v1668_v52, %v1667_v28  ;;  %v1694_v44 = vrot.slane %v1693_v10, 4  ;;  %v1506_v32 = vadd.f32 %v1505_v1, %v5911_v25  ;;  %v1514_v29 = vrot.slane %v1513_v4, 1 }
 0x4d8   : > { %v1678_v11 = vrot.slane %v1677_v5, 2  ;;  %v1687_v61 = vrot.slane %v6001_v7, 2  ;;  %v1522_v62 = vadd.f32 %v1521_v48, %v5906_v21  ;;  %v1531_v14 = vadd.f32 %v1530_v50, %v5913_v33 }
 0x4d9   : > { %v1670_v17 = vrot.slane %v6005_v12, 1  ;;  %v6014_v45 = vadd.f32 %v1694_v44, %v1693_v10  ;;  %v1515_v56 = vadd.f32 %v1514_v29, %v1513_v4  ;;  %v1708_v19 = vsel %vm1014_vm0, %v1496_v3, %v1506_v32 }
 0x4da   : > { %v6017_v20 = vadd.f32 %v1678_v11, %v1677_v5  ;;  %v1523_v25 = vrot.slane %v1522_v62, 1  ;;  %v1540_v22 = vrot.slane %v5923_v55, 1  ;;  %v1548_v21 = vadd.f32 %v1547_v59, %v5916_v39 }
 0x4db   : > { %v1709_v23 = vsel %vm1701_vm6, %v1708_v19, %v1515_v56  ;;  %v1556_v33 = vrot.slane %v5918_v43, 2  ;;  %v1566_v50 = vadd.f32 %v1565_v30, %v5931_v60  ;;  %v1575_v24 = vrot.slane %v5939_v34, 1 }
 0x4dc   : > { %v1524_v28 = vadd.f32 %v1523_v25, %v1522_v62  ;;  %v1541_v35 = vadd.f32 %v1540_v22, %v5923_v55  ;;  %v1549_v36 = vrot.slane %v1548_v21, 1  ;;  %v1583_v58 = vadd.f32 %v1582_v0, %v5928_v63 }
 0x4dd   : > { %v1557_v39 = vadd.f32 %v1556_v33, %v5918_v43  ;;  %v1576_v59 = vadd.f32 %v1575_v24, %v5939_v34  ;;  %v1591_v38 = vrot.slane %v5933_v18, 2  ;;  %v1601_v60 = vadd.f32 %v1600_v8, %v5945_v53 }
 0x4de   : > { %v1710_v30 = vsel %vm1703_vm7, %v1709_v23, %v1524_v28  ;;  %v1550_v49 = vadd.f32 %v1549_v36, %v1548_v21  ;;  %v1711_v55 = vsel %vm1014_vm0, %v1531_v14, %v1541_v35  ;;  %v1584_v52 = vrot.slane %v1583_v58, 1 }
 0x4df   : > { %v1728_v3 = vmul.f32 0.03125, %v1710_v30  ;;  %v1558_v1 = vrot.slane %v1557_v39, 1  ;;  %v1592_v63 = vadd.f32 %v1591_v38, %v5933_v18  ;;  %v1714_v43 = vsel %vm1014_vm0, %v1566_v50, %v1576_v59 }
 0x4e0   : > { %v1712_v0 = vsel %vm1701_vm6, %v1711_v55, %v1550_v49  ;;  %v1585_v34 = vadd.f32 %v1584_v52, %v1583_v58  ;;  %v1610_v4 = vrot.slane %v5962_v16, 1  ;;  %v1618_v53 = vadd.f32 %v1617_v9, %v5947_v54 }
 0x4e1   : > { %1746 = vperm.xlu1 %4256, %v1728_v3   ;;  %v1559_v8 = vadd.f32 %v1558_v1, %v1557_v39  ;;  %v1593_v5 = vrot.slane %v1592_v63, 1  ;;  %v1626_v10 = vrot.slane %v5953_v6, 2  ;;  %v1636_v18 = vadd.f32 %v1635_v15, %v5980_v13 }
 0x4e2   : > { %v1715_v48 = vsel %vm1701_vm6, %v1714_v43, %v1585_v34  ;;  %v1611_v44 = vadd.f32 %v1610_v4, %v5962_v16  ;;  %v1619_v32 = vrot.slane %v1618_v53, 1  ;;  %v1645_v29 = vrot.slane %v5988_v26, 1 }
 0x4e3   : > { %v1713_v11 = vsel %vm1703_vm7, %v1712_v0, %v1559_v8  ;;  %v1594_v62 = vadd.f32 %v1593_v5, %v1592_v63  ;;  %v1627_v54 = vadd.f32 %v1626_v10, %v5953_v6  ;;  %v1653_v9 = vadd.f32 %v1652_v40, %v5982_v42 }
 0x4e4   : > { %v1729_v14 = vmul.f32 0.03125, %v1713_v11  ;;  %v1620_v56 = vadd.f32 %v1619_v32, %v1618_v53  ;;  %v1717_v13 = vsel %vm1014_vm0, %v1601_v60, %v1611_v44  ;;  %v1646_v15 = vadd.f32 %v1645_v29, %v5988_v26 }
 0x4e5   : > { %v1716_v16 = vsel %vm1703_vm7, %v1715_v48, %v1594_v62  ;;  %v1628_v19 = vrot.slane %v1627_v54, 1  ;;  %v1654_v25 = vrot.slane %v1653_v9, 1  ;;  %v1661_v22 = vrot.slane %v5992_v46, 2 }
 0x4e6   : > { %1751 = vperm.xlu1 %4256, %v1729_v14   ;;  %v1730_v21 = vmul.f32 0.03125, %v1716_v16  ;;  %v1718_v6 = vsel %vm1701_vm6, %v1717_v13, %v1620_v56  ;;  %v1720_v23 = vsel %vm1014_vm0, %v1636_v18, %v1646_v15  ;;  %v1680_v50 = vrot.slane %v6017_v20, 1 }
 0x4e7   : > { %v1629_v33 = vadd.f32 %v1628_v19, %v1627_v54  ;;  %v1655_v42 = vadd.f32 %v1654_v25, %v1653_v9  ;;  %v1662_v40 = vadd.f32 %v1661_v22, %v5992_v46  ;;  %v1688_v26 = vadd.f32 %v1687_v61, %v6001_v7  ;;  %v1140_v19 = vld [vmem:[%s6659_s25 + $0x8] sm:$0xff]  ;;  %v1141_v22 = vld [vmem:[%s6659_s25 + $0x10] sm:$0xff] }
 0x4e8   : > { %1756 = vperm.xlu0 %4255, %v1730_v21   ;;  %v1696_v24 = vrot.slane %v6014_v45, 2  ;;  %v1671_v36 = vadd.f32 %v1670_v17, %v6005_v12  ;;  %v1681_v58 = vadd.f32 %v1680_v50, %v6017_v20  ;;  %v1148_v25 = vld [vmem:[%s6660_s2 + $0x8] sm:$0xff]  ;;  %v1142_v21 = vld [vmem:[%s6659_s25 + $0x18] sm:$0xff] }
 0x4e9   : > { %v1719_v28 = vsel %vm1703_vm7, %v1718_v6, %v1629_v33  ;;  %v1663_v35 = vrot.slane %v1662_v40, 1  ;;  %v1721_v46 = vsel %vm1701_vm6, %v1720_v23, %v1655_v42  ;;  %v1689_v59 = vrot.slane %v1688_v26, 1  ;;  %v1149_v6 = vld [vmem:[%s6660_s2 + $0x10] sm:$0xff]  ;;  %v1150_v23 = vld [vmem:[%s6660_s2 + $0x18] sm:$0xff]  ;;  %v1143_v33 = vld [vmem:[%s6659_s25 + $0x20] sm:$0xff] }
 0x4ea   : > { %v1731_v39 = vmul.f32 0.03125, %v1719_v28  ;;  %v1697_v38 = vadd.f32 %v1696_v24, %v6014_v45  ;;  %v1723_v7 = vsel %vm1014_vm0, %v1671_v36, %v1681_v58  ;;  %v1144_v42 = vld [vmem:[%s6659_s25 + $0x28] sm:$0xff]  ;;  %v1146_v24 = vld [vmem:[%s6659_s25 + $0x38] sm:$0xff] }
 0x4eb   : > { %v1664_v60 = vadd.f32 %v1663_v35, %v1662_v40  ;;  %v1690_v61 = vadd.f32 %v1689_v59, %v1688_v26  ;;  %v1151_v40 = vld [vmem:[%s6660_s2 + $0x20] sm:$0xff]  ;;  %v1152_v50 = vld [vmem:[%s6660_s2 + $0x28] sm:$0xff]  ;;  %v1145_v26 = vld [vmem:[%s6659_s25 + $0x30] sm:$0xff] }
 0x4ec   : > { %1761 = vperm.xlu1 %4256, %v1731_v39   ;;  %v1698_v30 = vrot.slane %v1697_v38, 1 }
 0x4ed   : > { %v1722_v49 = vsel %vm1703_vm7, %v1721_v46, %v1664_v60  ;;  %v1724_v12 = vsel %vm1701_vm6, %v1723_v7, %v1690_v61 }
 0x4ee   : > { %v1732_v55 = vmul.f32 0.03125, %v1722_v49  ;;  %v1699_v52 = vadd.f32 %v1698_v30, %v1697_v38 }
 0x4f0   : > { %1766 = vperm.xlu0 %4255, %v1732_v55   ;;  %v1725_v17 = vsel %vm1703_vm7, %v1724_v12, %v1699_v52 }
 0x4f1   : > { %v1733_v20 = vmul.f32 0.03125, %v1725_v17 }
 0x4f3   : > { %1771 = vperm.xlu1 %4256, %v1733_v20  }
 0x54f   : > { %v1737_v3 = vpop.permute.xlu1 %1736 }
 0x550   : > { %v6084_v45 = vsub.f32 %v5835_v27, %v1737_v3 }
 0x552   : > { %v1782_v1 = vmul.f32 %v6084_v45, %v6084_v45 }
 0x553   : > { %v1742_v63 = vpop.permute.xlu0 %1741 }
 0x554   : > { %v6089_v43 = vsub.f32 %v5837_v31, %v1742_v63  ;;  %v1790_v0 = vsel %vm1395_vm5, %v1782_v1, 0.0 }
 0x555   : > { %1791 = vadd.xlane.f32.xlu0 %v1790_v0 }
 0x556   : > { %v1783_v34 = vmul.f32 %v6089_v43, %v6089_v43 }
 0x558   : > { %v1793_v4 = vsel %vm1395_vm5, %v1783_v34, 0.0 }
 0x559   : > { %1794 = vadd.xlane.f32.xlu1 %v1793_v4 }
 0x560   : > { %v1747_v53 = vpop.permute.xlu1 %1746 }
 0x561   : > { %v6096_v27 = vsub.f32 %v5843_v37, %v1747_v53 }
 0x563   : > { %v1784_v8 = vmul.f32 %v6096_v27, %v6096_v27 }
 0x565   : > { %v1752_v5 = vpop.permute.xlu1 %1751  ;;  %v1796_v31 = vsel %vm1395_vm5, %v1784_v8, 0.0 }
 0x566   : > { %v6102_v10 = vsub.f32 %v5845_v41, %v1752_v5  ;;  %1797 = vadd.xlane.f32.xlu0 %v1796_v31 }
 0x567   : > { %v1757_v18 = vpop.permute.xlu0 %1756 }
 0x568   : > { %v6105_v48 = vsub.f32 %v5851_v47, %v1757_v18  ;;  %v1785_v44 = vmul.f32 %v6102_v10, %v6102_v10 }
 0x56a   : > { %v1799_v37 = vsel %vm1395_vm5, %v1785_v44, 0.0  ;;  %v1786_v32 = vmul.f32 %v6105_v48, %v6105_v48 }
 0x56b   : > { %1800 = vadd.xlane.f32.xlu0 %v1799_v37  ;;  %v1762_v29 = vpop.permute.xlu1 %1761 }
 0x56c   : > { %v6113_v11 = vsub.f32 %v5853_v51, %v1762_v29  ;;  %v1802_v41 = vsel %vm1395_vm5, %v1786_v32, 0.0 }
 0x56d   : > { %1803 = vadd.xlane.f32.xlu1 %v1802_v41 }
 0x56e   : > { %v1787_v47 = vmul.f32 %v6113_v11, %v6113_v11 }
 0x56f   : > { %v1767_v62 = vpop.permute.xlu0 %1766 }
 0x570   : > { %v1805_v54 = vsel %vm1395_vm5, %v1787_v47, 0.0  ;;  %v6120_v9 = vsub.f32 %v5859_v57, %v1767_v62  ;;  %v1139_v57 = vld [vmem:[%s6659_s25] sm:$0xff] }
 0x571   : > { %1806 = vadd.xlane.f32.xlu0 %v1805_v54 }
 0x572   : > { %v1772_v14 = vpop.permute.xlu1 %1771  ;;  %v1788_v56 = vmul.f32 %v6120_v9, %v6120_v9 }
 0x573   : > { %v6125_v51 = vsub.f32 %v5861_v2, %v1772_v14  ;;  %v1147_v2 = vld [vmem:[%s6660_s2] sm:$0xff] }
 0x574   : > { %v1808_v13 = vsel %vm1395_vm5, %v1788_v56, 0.0 }
 0x575   : > { %1809 = vadd.xlane.f32.xlu1 %v1808_v13  ;;  %v1789_v15 = vmul.f32 %v6125_v51, %v6125_v51 }
 0x577   : > { %v1811_v16 = vsel %vm1395_vm5, %v1789_v15, 0.0 }
 0x578   : > { %1812 = vadd.xlane.f32.xlu0 %v1811_v16 }
 0x586   : > { %2192 = vperm.xlu1 %4256, %v1139_v57  }
 0x58a   : > { %2197 = vperm.xlu1 %4256, %v1140_v19  }
 0x58e   : > { %2240 = vperm.xlu0 %4255, %v1147_v2   ;;  %2245 = vperm.xlu1 %4256, %v1148_v25  }
 0x592   : > { %2202 = vperm.xlu0 %4255, %v1141_v22   ;;  %2207 = vperm.xlu1 %4256, %v1142_v21  }
 0x596   : > { %2250 = vperm.xlu0 %4255, %v1149_v6   ;;  %2255 = vperm.xlu1 %4256, %v1150_v23  }
 0x59a   : > { %2212 = vperm.xlu0 %4255, %v1143_v33   ;;  %2217 = vperm.xlu1 %4256, %v1144_v42  }
 0x59e   : > { %2260 = vperm.xlu0 %4255, %v1151_v40   ;;  %2265 = vperm.xlu1 %4256, %v1152_v50  }
 0x5a2   : > { %2222 = vperm.xlu0 %4255, %v1145_v26   ;;  %2227 = vperm.xlu1 %4256, %v1146_v24  }
 0x5e2   : > { %v1792_v28 = vpop.xlane.xlu0 %1791 }
 0x5e3   : > { %v1814_v35 = vsel %vm1014_vm0, %v1792_v28, 0.0  ;;  %v1822_v36 = vrot.slane %v1792_v28, 2  ;;  %v1831_v58 = vrot.slane %v1792_v28, 4  ;;  %v1840_v39 = vrot.slane %v1792_v28, 6 }
 0x5e4   : > { %v1815_v46 = vrot.slane %v1814_v35, 4 }
 0x5e5   : > { %v1824_v59 = vsel %vm1014_vm0, %v1822_v36, 0.0  ;;  %v1833_v38 = vsel %vm1014_vm0, %v1831_v58, 0.0  ;;  %v1842_v60 = vsel %vm1014_vm0, %v1840_v39, 0.0 }
 0x5e6   : > { %v1816_v7 = vadd.f32 %v1815_v46, %v1814_v35  ;;  %v1825_v61 = vrot.slane %v1824_v59, 4  ;;  %v1834_v30 = vrot.slane %v1833_v38, 4  ;;  %v1843_v49 = vrot.slane %v1842_v60, 4  ;;  %v1795_v55 = vpop.xlane.xlu1 %1794 }
 0x5e7   : > { %v1849_v52 = vsel %vm1014_vm0, %v1795_v55, 0.0  ;;  %v1857_v12 = vrot.slane %v1795_v55, 2  ;;  %v1866_v17 = vrot.slane %v1795_v55, 4  ;;  %v1875_v20 = vrot.slane %v1795_v55, 6 }
 0x5e8   : > { %v1817_v3 = vrot.slane %v1816_v7, 2  ;;  %v1826_v1 = vadd.f32 %v1825_v61, %v1824_v59  ;;  %v1835_v63 = vadd.f32 %v1834_v30, %v1833_v38  ;;  %v1844_v0 = vadd.f32 %v1843_v49, %v1842_v60 }
 0x5e9   : > { %v1850_v34 = vrot.slane %v1849_v52, 4  ;;  %v1859_v4 = vsel %vm1014_vm0, %v1857_v12, 0.0  ;;  %v1868_v53 = vsel %vm1014_vm0, %v1866_v17, 0.0  ;;  %v1877_v8 = vsel %vm1014_vm0, %v1875_v20, 0.0 }
 0x5ea   : > { %v1818_v5 = vadd.f32 %v1817_v3, %v1816_v7  ;;  %v1827_v31 = vrot.slane %v1826_v1, 2  ;;  %v1836_v18 = vrot.slane %v1835_v63, 2  ;;  %v1845_v44 = vrot.slane %v1844_v0, 2 }
 0x5eb   : > { %v1851_v37 = vadd.f32 %v1850_v34, %v1849_v52  ;;  %v1860_v32 = vrot.slane %v1859_v4, 4  ;;  %v1869_v29 = vrot.slane %v1868_v53, 4  ;;  %v1878_v41 = vrot.slane %v1877_v8, 4 }
 0x5ec   : > { %v1819_v47 = vrot.slane %v1818_v5, 1  ;;  %v1828_v62 = vadd.f32 %v1827_v31, %v1826_v1  ;;  %v1837_v54 = vadd.f32 %v1836_v18, %v1835_v63  ;;  %v1846_v14 = vadd.f32 %v1845_v44, %v1844_v0 }
 0x5ed   : > { %v1852_v56 = vrot.slane %v1851_v37, 2  ;;  %v1861_v13 = vadd.f32 %v1860_v32, %v1859_v4  ;;  %v1870_v15 = vadd.f32 %v1869_v29, %v1868_v53  ;;  %v1879_v16 = vadd.f32 %v1878_v41, %v1877_v8 }
 0x5ee   : > { %v1829_v57 = vrot.slane %v1828_v62, 1  ;;  %v1838_v19 = vrot.slane %v1837_v54, 1  ;;  %v1847_v2 = vrot.slane %v1846_v14, 1  ;;  %v1820_v23 = vadd.f32 %v1819_v47, %v1818_v5 }
 0x5ef   : > { %v1853_v25 = vadd.f32 %v1852_v56, %v1851_v37  ;;  %v1862_v22 = vrot.slane %v1861_v13, 2  ;;  %v1871_v21 = vrot.slane %v1870_v15, 2  ;;  %v1880_v6 = vrot.slane %v1879_v16, 2 }
 0x5f0   : > { %v1830_v33 = vadd.f32 %v1829_v57, %v1828_v62  ;;  %v1839_v42 = vadd.f32 %v1838_v19, %v1837_v54  ;;  %v1848_v28 = vadd.f32 %v1847_v2, %v1846_v14 }
 0x5f1   : > { %v1854_v40 = vrot.slane %v1853_v25, 1  ;;  %v1863_v50 = vadd.f32 %v1862_v22, %v1861_v13  ;;  %v1872_v26 = vadd.f32 %v1871_v21, %v1870_v15  ;;  %v1881_v24 = vadd.f32 %v1880_v6, %v1879_v16 }
 0x5f2   : > { %v2094_v35 = vsel %vm1014_vm0, %v1820_v23, %v1830_v33 }
 0x5f3   : > { %v2095_v36 = vsel %vm1701_vm6, %v2094_v35, %v1839_v42  ;;  %v1855_v58 = vadd.f32 %v1854_v40, %v1853_v25  ;;  %v1864_v39 = vrot.slane %v1863_v50, 1  ;;  %v1873_v46 = vrot.slane %v1872_v26, 1  ;;  %v1798_v59 = vpop.xlane.xlu0 %1797 }
 0x5f4   : > { %v2096_v38 = vsel %vm1703_vm7, %v2095_v36, %v1848_v28  ;;  %v1882_v60 = vrot.slane %v1881_v24, 1  ;;  %v1884_v7 = vsel %vm1014_vm0, %v1798_v59, 0.0  ;;  %v1892_v61 = vrot.slane %v1798_v59, 2 }
 0x5f5   : > { %v2118_v30 = vmul.f32 0.03125, %v2096_v38  ;;  %v1865_v49 = vadd.f32 %v1864_v39, %v1863_v50  ;;  %v1874_v55 = vadd.f32 %v1873_v46, %v1872_v26  ;;  %v1885_v52 = vrot.slane %v1884_v7, 4 }
 0x5f6   : > { %v1883_v12 = vadd.f32 %v1882_v60, %v1881_v24  ;;  %v1894_v17 = vsel %vm1014_vm0, %v1892_v61, 0.0  ;;  %v1901_v20 = vrot.slane %v1798_v59, 4  ;;  %v1910_v3 = vrot.slane %v1798_v59, 6 }
 0x5f7   : > { %v2126_v1 = vadd.f32 1e-05, %v2118_v30  ;;  %v2097_v63 = vsel %vm1014_vm0, %v1855_v58, %v1865_v49  ;;  %v1886_v0 = vadd.f32 %v1885_v52, %v1884_v7  ;;  %v1895_v34 = vrot.slane %v1894_v17, 4 }
 0x5f8   : > { %v2098_v4 = vsel %vm1701_vm6, %v2097_v63, %v1874_v55  ;;  %v1903_v53 = vsel %vm1014_vm0, %v1901_v20, 0.0  ;;  %v1912_v8 = vsel %vm1014_vm0, %v1910_v3, 0.0  ;;  %v1801_v5 = vpop.xlane.xlu0 %1800 }
 0x5f9   : > { %4529 = vrsqrt.f32 %v2126_v1  ;;  %v2099_v31 = vsel %vm1703_vm7, %v2098_v4, %v1883_v12  ;;  %v1887_v18 = vrot.slane %v1886_v0, 2  ;;  %v1896_v44 = vadd.f32 %v1895_v34, %v1894_v17 }
 0x5fa   : > { %v2119_v37 = vmul.f32 0.03125, %v2099_v31  ;;  %v1904_v32 = vrot.slane %v1903_v53, 4  ;;  %v1913_v29 = vrot.slane %v1912_v8, 4  ;;  %v1919_v41 = vsel %vm1014_vm0, %v1801_v5, 0.0  ;;  %v1804_v23 = vpop.xlane.xlu1 %1803 }
 0x5fb   : > { %v1888_v47 = vadd.f32 %v1887_v18, %v1886_v0  ;;  %v1897_v62 = vrot.slane %v1896_v44, 2  ;;  %v1920_v54 = vrot.slane %v1919_v41, 4  ;;  %v1927_v14 = vrot.slane %v1801_v5, 2 }
 0x5fc   : > { %v2127_v56 = vadd.f32 1e-05, %v2119_v37  ;;  %v1905_v13 = vadd.f32 %v1904_v32, %v1903_v53  ;;  %v1914_v15 = vadd.f32 %v1913_v29, %v1912_v8  ;;  %v1936_v16 = vrot.slane %v1801_v5, 4 }
 0x5fd   : > { %v1889_v57 = vrot.slane %v1888_v47, 1  ;;  %v1898_v19 = vadd.f32 %v1897_v62, %v1896_v44  ;;  %v1921_v2 = vadd.f32 %v1920_v54, %v1919_v41  ;;  %v1929_v25 = vsel %vm1014_vm0, %v1927_v14, 0.0 }
 0x5fe   : > { %4531 = vrsqrt.f32 %v2127_v56  ;;  %v1906_v22 = vrot.slane %v1905_v13, 2  ;;  %v1915_v21 = vrot.slane %v1914_v15, 2  ;;  %v1930_v6 = vrot.slane %v1929_v25, 4 }
 0x5ff   : > { %v1890_v33 = vadd.f32 %v1889_v57, %v1888_v47  ;;  %v1899_v42 = vrot.slane %v1898_v19, 1  ;;  %v1922_v40 = vrot.slane %v1921_v2, 2  ;;  %v1938_v50 = vsel %vm1014_vm0, %v1936_v16, 0.0 }
 0x600   : > { %v1907_v26 = vadd.f32 %v1906_v22, %v1905_v13  ;;  %v1916_v24 = vadd.f32 %v1915_v21, %v1914_v15  ;;  %v1931_v28 = vadd.f32 %v1930_v6, %v1929_v25  ;;  %v1939_v35 = vrot.slane %v1938_v50, 4 }
 0x601   : > { %v1900_v36 = vadd.f32 %v1899_v42, %v1898_v19  ;;  %v1923_v58 = vadd.f32 %v1922_v40, %v1921_v2  ;;  %v1945_v39 = vrot.slane %v1801_v5, 6  ;;  %v1954_v46 = vsel %vm1014_vm0, %v1804_v23, 0.0  ;;  %v1807_v2 = vpop.xlane.xlu0 %1806 }
 0x602   : > { %v1908_v59 = vrot.slane %v1907_v26, 1  ;;  %v1917_v38 = vrot.slane %v1916_v24, 1  ;;  %v1932_v60 = vrot.slane %v1931_v28, 2  ;;  %v1940_v7 = vadd.f32 %v1939_v35, %v1938_v50 }
 0x603   : > { %v4530_v61 = vpop.eup %4529  ;;  %v2100_v30 = vsel %vm1014_vm0, %v1890_v33, %v1900_v36  ;;  %v1924_v49 = vrot.slane %v1923_v58, 1  ;;  %v1947_v55 = vsel %vm1014_vm0, %v1945_v39, 0.0  ;;  %v1955_v52 = vrot.slane %v1954_v46, 4 }
 0x604   : > { %v1909_v12 = vadd.f32 %v1908_v59, %v1907_v26  ;;  %v1918_v17 = vadd.f32 %v1917_v38, %v1916_v24  ;;  %v1933_v20 = vadd.f32 %v1932_v60, %v1931_v28  ;;  %v1941_v3 = vrot.slane %v1940_v7, 2  ;;  %2144 = vperm.xlu1 %4256, %v4530_v61  }
 0x605   : > { %v1925_v1 = vadd.f32 %v1924_v49, %v1923_v58  ;;  %v1948_v63 = vrot.slane %v1947_v55, 4  ;;  %v1956_v0 = vadd.f32 %v1955_v52, %v1954_v46  ;;  %v1962_v34 = vrot.slane %v1804_v23, 2 }
 0x606   : > { %v2101_v4 = vsel %vm1701_vm6, %v2100_v30, %v1909_v12  ;;  %v1934_v53 = vrot.slane %v1933_v20, 1  ;;  %v1942_v8 = vadd.f32 %v1941_v3, %v1940_v7  ;;  %v1971_v5 = vrot.slane %v1804_v23, 4 }
 0x607   : > { %v2102_v31 = vsel %vm1703_vm7, %v2101_v4, %v1918_v17  ;;  %v1949_v18 = vadd.f32 %v1948_v63, %v1947_v55  ;;  %v1957_v44 = vrot.slane %v1956_v0, 2  ;;  %v1964_v37 = vsel %vm1014_vm0, %v1962_v34, 0.0 }
 0x608   : > { %v4532_v32 = vpop.eup %4531  ;;  %v2120_v29 = vmul.f32 0.03125, %v2102_v31  ;;  %v1935_v41 = vadd.f32 %v1934_v53, %v1933_v20  ;;  %v1943_v47 = vrot.slane %v1942_v8, 1  ;;  %v1965_v62 = vrot.slane %v1964_v37, 4  ;;  %v1810_v53 = vpop.xlane.xlu1 %1809 }
 0x609   : > { %v1950_v54 = vrot.slane %v1949_v18, 2  ;;  %v1958_v14 = vadd.f32 %v1957_v44, %v1956_v0  ;;  %v1973_v56 = vsel %vm1014_vm0, %v1971_v5, 0.0  ;;  %v1980_v13 = vrot.slane %v1804_v23, 6  ;;  %2149 = vperm.xlu0 %4255, %v4532_v32  }
 0x60a   : > { %v2128_v15 = vadd.f32 1e-05, %v2120_v29  ;;  %v1944_v16 = vadd.f32 %v1943_v47, %v1942_v8  ;;  %v2103_v57 = vsel %vm1014_vm0, %v1925_v1, %v1935_v41  ;;  %v1966_v19 = vadd.f32 %v1965_v62, %v1964_v37 }
 0x60b   : > { %v1951_v25 = vadd.f32 %v1950_v54, %v1949_v18  ;;  %v1959_v22 = vrot.slane %v1958_v14, 1  ;;  %v1974_v21 = vrot.slane %v1973_v56, 4  ;;  %v1982_v6 = vsel %vm1014_vm0, %v1980_v13, 0.0 }
 0x60c   : > { %4533 = vrsqrt.f32 %v2128_v15  ;;  %v2104_v33 = vsel %vm1701_vm6, %v2103_v57, %v1944_v16  ;;  %v1967_v42 = vrot.slane %v1966_v19, 2  ;;  %v1983_v40 = vrot.slane %v1982_v6, 4 }
 0x60d   : > { %v1952_v50 = vrot.slane %v1951_v25, 1  ;;  %v1960_v26 = vadd.f32 %v1959_v22, %v1958_v14  ;;  %v1975_v23 = vadd.f32 %v1974_v21, %v1973_v56  ;;  %v1989_v24 = vsel %vm1014_vm0, %v1807_v2, 0.0 }
 0x60e   : > { %v1968_v28 = vadd.f32 %v1967_v42, %v1966_v19  ;;  %v1984_v35 = vadd.f32 %v1983_v40, %v1982_v6  ;;  %v1990_v36 = vrot.slane %v1989_v24, 4  ;;  %v1997_v58 = vrot.slane %v1807_v2, 2 }
 0x60f   : > { %v1953_v39 = vadd.f32 %v1952_v50, %v1951_v25  ;;  %v1976_v46 = vrot.slane %v1975_v23, 2  ;;  %v2006_v59 = vrot.slane %v1807_v2, 4  ;;  %v2015_v38 = vrot.slane %v1807_v2, 6 }
 0x610   : > { %v1969_v60 = vrot.slane %v1968_v28, 1  ;;  %v1985_v7 = vrot.slane %v1984_v35, 2  ;;  %v1991_v61 = vadd.f32 %v1990_v36, %v1989_v24  ;;  %v1999_v30 = vsel %vm1014_vm0, %v1997_v58, 0.0 }
 0x611   : > { %v2105_v49 = vsel %vm1703_vm7, %v2104_v33, %v1953_v39  ;;  %v1977_v55 = vadd.f32 %v1976_v46, %v1975_v23  ;;  %v2000_v52 = vrot.slane %v1999_v30, 4  ;;  %v2008_v12 = vsel %vm1014_vm0, %v2006_v59, 0.0  ;;  %v1813_v46 = vpop.xlane.xlu0 %1812 }
 0x612   : > { %v2121_v17 = vmul.f32 0.03125, %v2105_v49  ;;  %v1970_v20 = vadd.f32 %v1969_v60, %v1968_v28  ;;  %v1986_v3 = vadd.f32 %v1985_v7, %v1984_v35  ;;  %v1992_v1 = vrot.slane %v1991_v61, 2 }
 0x613   : > { %v1978_v63 = vrot.slane %v1977_v55, 1  ;;  %v2001_v0 = vadd.f32 %v2000_v52, %v1999_v30  ;;  %v2009_v34 = vrot.slane %v2008_v12, 4  ;;  %v2017_v4 = vsel %vm1014_vm0, %v2015_v38, 0.0 }
 0x614   : > { %v2129_v8 = vadd.f32 1e-05, %v2121_v17  ;;  %v1987_v5 = vrot.slane %v1986_v3, 1  ;;  %v2106_v31 = vsel %vm1014_vm0, %v1960_v26, %v1970_v20  ;;  %v1993_v18 = vadd.f32 %v1992_v1, %v1991_v61 }
 0x615   : > { %v1979_v44 = vadd.f32 %v1978_v63, %v1977_v55  ;;  %v2002_v37 = vrot.slane %v2001_v0, 2  ;;  %v2010_v32 = vadd.f32 %v2009_v34, %v2008_v12  ;;  %v2018_v29 = vrot.slane %v2017_v4, 4 }
 0x616   : > { %v4534_v41 = vpop.eup %4533  ;;  %4535 = vrsqrt.f32 %v2129_v8  ;;  %v1988_v47 = vadd.f32 %v1987_v5, %v1986_v3  ;;  %v1994_v62 = vrot.slane %v1993_v18, 1  ;;  %v2024_v54 = vsel %vm1014_vm0, %v1810_v53, 0.0 }
 0x617   : > { %v2107_v14 = vsel %vm1701_vm6, %v2106_v31, %v1979_v44  ;;  %v2003_v56 = vadd.f32 %v2002_v37, %v2001_v0  ;;  %v2011_v13 = vrot.slane %v2010_v32, 2  ;;  %v2019_v15 = vadd.f32 %v2018_v29, %v2017_v4  ;;  %2154 = vperm.xlu0 %4255, %v4534_v41  }
 0x618   : > { %v2108_v16 = vsel %vm1703_vm7, %v2107_v14, %v1988_v47  ;;  %v1995_v57 = vadd.f32 %v1994_v62, %v1993_v18  ;;  %v2025_v19 = vrot.slane %v2024_v54, 4  ;;  %v2032_v2 = vrot.slane %v1810_v53, 2 }
 0x619   : > { %v2122_v25 = vmul.f32 0.03125, %v2108_v16  ;;  %v2004_v22 = vrot.slane %v2003_v56, 1  ;;  %v2012_v21 = vadd.f32 %v2011_v13, %v2010_v32  ;;  %v2020_v6 = vrot.slane %v2019_v15, 2 }
 0x61a   : > { %v2026_v33 = vadd.f32 %v2025_v19, %v2024_v54  ;;  %v2034_v42 = vsel %vm1014_vm0, %v2032_v2, 0.0  ;;  %v2041_v40 = vrot.slane %v1810_v53, 4  ;;  %v2050_v50 = vrot.slane %v1810_v53, 6 }
 0x61b   : > { %v2130_v26 = vadd.f32 1e-05, %v2122_v25  ;;  %v2005_v23 = vadd.f32 %v2004_v22, %v2003_v56  ;;  %v2013_v24 = vrot.slane %v2012_v21, 1  ;;  %v2021_v28 = vadd.f32 %v2020_v6, %v2019_v15 }
 0x61c   : > { %v2027_v35 = vrot.slane %v2026_v33, 2  ;;  %v2035_v36 = vrot.slane %v2034_v42, 4  ;;  %v2043_v58 = vsel %vm1014_vm0, %v2041_v40, 0.0  ;;  %v2052_v39 = vsel %vm1014_vm0, %v2050_v50, 0.0 }
 0x61d   : > { %4537 = vrsqrt.f32 %v2130_v26  ;;  %v2014_v59 = vadd.f32 %v2013_v24, %v2012_v21  ;;  %v2022_v38 = vrot.slane %v2021_v28, 1  ;;  %v2109_v60 = vsel %vm1014_vm0, %v1995_v57, %v2005_v23 }
 0x61e   : > { %v2028_v7 = vadd.f32 %v2027_v35, %v2026_v33  ;;  %v2036_v61 = vadd.f32 %v2035_v36, %v2034_v42  ;;  %v2044_v30 = vrot.slane %v2043_v58, 4  ;;  %v2053_v49 = vrot.slane %v2052_v39, 4 }
 0x61f   : > { %v2023_v55 = vadd.f32 %v2022_v38, %v2021_v28  ;;  %v2110_v52 = vsel %vm1701_vm6, %v2109_v60, %v2014_v59  ;;  %v2059_v12 = vsel %vm1014_vm0, %v1813_v46, 0.0  ;;  %v2067_v17 = vrot.slane %v1813_v46, 2 }
 0x620   : > { %v4536_v20 = vpop.eup %4535  ;;  %v2029_v3 = vrot.slane %v2028_v7, 1  ;;  %v2037_v1 = vrot.slane %v2036_v61, 2  ;;  %v2045_v63 = vadd.f32 %v2044_v30, %v2043_v58  ;;  %v2054_v0 = vadd.f32 %v2053_v49, %v2052_v39 }
 0x621   : > { %v2111_v34 = vsel %vm1703_vm7, %v2110_v52, %v2023_v55  ;;  %v2060_v4 = vrot.slane %v2059_v12, 4  ;;  %v2069_v53 = vsel %vm1014_vm0, %v2067_v17, 0.0  ;;  %v2076_v8 = vrot.slane %v1813_v46, 4  ;;  %2159 = vperm.xlu1 %4256, %v4536_v20  }
 0x622   : > { %v2123_v5 = vmul.f32 0.03125, %v2111_v34  ;;  %v2030_v31 = vadd.f32 %v2029_v3, %v2028_v7  ;;  %v2038_v18 = vadd.f32 %v2037_v1, %v2036_v61  ;;  %v2046_v44 = vrot.slane %v2045_v63, 2 }
 0x623   : > { %v2055_v37 = vrot.slane %v2054_v0, 2  ;;  %v2061_v32 = vadd.f32 %v2060_v4, %v2059_v12  ;;  %v2070_v29 = vrot.slane %v2069_v53, 4  ;;  %v2078_v41 = vsel %vm1014_vm0, %v2076_v8, 0.0  ;;  %v1153_v4 = vld [vmem:[%s6660_s2 + $0x30] sm:$0xff]  ;;  %v1154_v8 = vld [vmem:[%s6660_s2 + $0x38] sm:$0xff] }
 0x624   : > { %v2131_v47 = vadd.f32 1e-05, %v2123_v5  ;;  %v2039_v62 = vrot.slane %v2038_v18, 1  ;;  %v2047_v54 = vadd.f32 %v2046_v44, %v2045_v63  ;;  %v2079_v14 = vrot.slane %v2078_v41, 4  ;;  %v2193_v5 = vpop.permute.xlu1 %2192  ;;  %v2241_v44 = vpop.permute.xlu0 %2240 }
 0x625   : > { %v2056_v56 = vadd.f32 %v2055_v37, %v2054_v0  ;;  %v2062_v13 = vrot.slane %v2061_v32, 2  ;;  %v2071_v15 = vadd.f32 %v2070_v29, %v2069_v53  ;;  %v2085_v16 = vrot.slane %v1813_v46, 6 }
 0x626   : > { %4539 = vrsqrt.f32 %v2131_v47  ;;  %v2040_v57 = vadd.f32 %v2039_v62, %v2038_v18  ;;  %v2048_v19 = vrot.slane %v2047_v54, 1  ;;  %v2080_v2 = vadd.f32 %v2079_v14, %v2078_v41 }
 0x627   : > { %v4538_v25 = vpop.eup %4537  ;;  %v2057_v22 = vrot.slane %v2056_v56, 1  ;;  %v2063_v21 = vadd.f32 %v2062_v13, %v2061_v32  ;;  %v2072_v6 = vrot.slane %v2071_v15, 2  ;;  %v2087_v33 = vsel %vm1014_vm0, %v2085_v16, 0.0 }
 0x628   : > { %v2049_v42 = vadd.f32 %v2048_v19, %v2047_v54  ;;  %v2112_v40 = vsel %vm1014_vm0, %v2030_v31, %v2040_v57  ;;  %v2081_v50 = vrot.slane %v2080_v2, 2  ;;  %v2088_v26 = vrot.slane %v2087_v33, 4  ;;  %2164 = vperm.xlu0 %4255, %v4538_v25   ;;  %v2198_v31 = vpop.permute.xlu1 %2197  ;;  %v2203_v32 = vpop.permute.xlu0 %2202 }
 0x629   : > { %v2058_v23 = vadd.f32 %v2057_v22, %v2056_v56  ;;  %v2064_v24 = vrot.slane %v2063_v21, 1  ;;  %v2073_v28 = vadd.f32 %v2072_v6, %v2071_v15 }
 0x62a   : > { %v2113_v35 = vsel %vm1701_vm6, %v2112_v40, %v2049_v42  ;;  %v2082_v36 = vadd.f32 %v2081_v50, %v2080_v2  ;;  %v2089_v58 = vadd.f32 %v2088_v26, %v2087_v33 }
 0x62b   : > { %v2114_v39 = vsel %vm1703_vm7, %v2113_v35, %v2058_v23  ;;  %v2074_v46 = vrot.slane %v2073_v28, 1  ;;  %v2065_v7 = vadd.f32 %v2064_v24, %v2063_v21 }
 0x62c   : > { %v2124_v59 = vmul.f32 0.03125, %v2114_v39  ;;  %v2083_v38 = vrot.slane %v2082_v36, 1  ;;  %v2090_v60 = vrot.slane %v2089_v58, 2  ;;  %v2246_v18 = vpop.permute.xlu1 %2245  ;;  %v2251_v41 = vpop.permute.xlu0 %2250 }
 0x62d   : > { %v2075_v61 = vadd.f32 %v2074_v46, %v2073_v28 }
 0x62e   : > { %v2132_v30 = vadd.f32 1e-05, %v2124_v59  ;;  %v2084_v49 = vadd.f32 %v2083_v38, %v2082_v36  ;;  %v2091_v55 = vadd.f32 %v2090_v60, %v2089_v58 }
 0x62f   : > { %v2115_v52 = vsel %vm1014_vm0, %v2065_v7, %v2075_v61 }
 0x630   : > { %v4540_v12 = vpop.eup %4539  ;;  %4541 = vrsqrt.f32 %v2132_v30  ;;  %v2092_v17 = vrot.slane %v2091_v55, 1  ;;  %v2116_v20 = vsel %vm1701_vm6, %v2115_v52, %v2084_v49  ;;  %v2208_v37 = vpop.permute.xlu1 %2207 }
 0x631   : > { %2169 = vperm.xlu1 %4256, %v4540_v12   ;;  %v2213_v62 = vpop.permute.xlu0 %2212 }
 0x632   : > { %v2093_v3 = vadd.f32 %v2092_v17, %v2091_v55 }
 0x634   : > { %v2117_v1 = vsel %vm1703_vm7, %v2116_v20, %v2093_v3  ;;  %v2256_v29 = vpop.permute.xlu1 %2255 }
 0x635   : > { %v2125_v63 = vmul.f32 0.03125, %v2117_v1  ;;  %v2261_v14 = vpop.permute.xlu0 %2260 }
 0x637   : > { %v2133_v0 = vadd.f32 1e-05, %v2125_v63 }
 0x638   : > { %v2218_v47 = vpop.permute.xlu1 %2217 }
 0x639   : > { %4543 = vrsqrt.f32 %v2133_v0  ;;  %v6237_v15 = vpop.permute.xlu0 %2222 }
 0x63a   : > { %v4542_v34 = vpop.eup %4541 }
 0x63b   : > { %2174 = vperm.xlu0 %4255, %v4542_v34  }
 0x63c   : > { %v2266_v54 = vpop.permute.xlu1 %2265 }
 0x63f   : > { %2270 = vperm.xlu0 %4255, %v1153_v4  }
 0x640   : > { %v6235_v56 = vpop.permute.xlu1 %2227 }
 0x643   : > { %v4544_v53 = vpop.eup %4543 }
 0x644   : > { %2179 = vperm.xlu1 %4256, %v4544_v53  }
 0x648   : > { %2275 = vperm.xlu1 %4256, %v1154_v8  }
 0x683   : > { %v2145_v13 = vpop.permute.xlu1 %2144 }
 0x684   : > { %v2182_v16 = vmul.f32 %v2145_v13, %v6084_v45 }
 0x686   : > { %v2230_v57 = vmul.f32 %v2193_v5, %v2182_v16 }
 0x688   : > { %v2278_v19 = vadd.f32 %v2241_v44, %v2230_v57  ;;  %v2150_v2 = vpop.permute.xlu0 %2149 }
 0x689   : > { %v2183_v25 = vmul.f32 %v2150_v2, %v6089_v43 }
 0x68a   : > { %v2294_v22 = vmul.f32 0.70710677, %v2278_v19  ;;  %v2286_v28 = vmul.f32 0.5, %v2278_v19 }
 0x68b   : > { %v2231_v21 = vmul.f32 %v2198_v31, %v2183_v25 }
 0x68c   : > { %4545 = verf.f32 %v2294_v22 }
 0x68d   : > { %v2279_v6 = vadd.f32 %v2246_v18, %v2231_v21 }
 0x68f   : > { %v2295_v33 = vmul.f32 0.70710677, %v2279_v6  ;;  %v2287_v45 = vmul.f32 0.5, %v2279_v6 }
 0x691   : > { %4547 = verf.f32 %v2295_v33 }
 0x696   : > { %v2155_v42 = vpop.permute.xlu0 %2154  ;;  %v4546_v40 = vpop.eup %4545 }
 0x697   : > { %v2184_v50 = vmul.f32 %v2155_v42, %v6096_v27  ;;  %v2310_v23 = vadd.f32 1.0, %v4546_v40 }
 0x699   : > { %v2232_v26 = vmul.f32 %v2203_v32, %v2184_v50  ;;  %v2318_v58 = vmul.f32 %v2310_v23, %v2286_v28  ;;  %v4503_v50 = vld [vmem:[%s6661_s5] sm:$0xff]  }
 0x69a   : > { %v2336_v28 = vld [vmem:[#allocation6 + $0x10] sm:$0xff]  ;;  %4000 = vmatprep.mubr.bf16.mxu0 %v4503_v50 }
 0x69b   : > { %v4548_v24 = vpop.eup %4547  ;;  %v2280_v36 = vadd.f32 %v2251_v41, %v2232_v26 }
 0x69c   : > { %v2311_v35 = vadd.f32 1.0, %v4548_v24 }
 0x69d   : > { %v2296_v38 = vmul.f32 0.70710677, %v2280_v36  ;;  %v2288_v0 = vmul.f32 0.5, %v2280_v36 }
 0x69e   : > { %v2319_v39 = vmul.f32 %v2311_v35, %v2287_v45 }
 0x69f   : > { %4549 = verf.f32 %v2296_v38 }
 0x6a0   : > { %v2160_v43 = vpop.permute.xlu1 %2159  ;;  %v6242_v46 = vpack.i.bf16 %v2319_v39, %v2318_v58  ;;  %v6244_v59 = vpack.c.bf16 %v2319_v39, %v2318_v58  ;;  %v2335_v39 = vld [vmem:[#allocation6 + $0x8] sm:$0xff] }
 0x6a1   : > { %v2185_v60 = vmul.f32 %v2160_v43, %v6102_v10  ;;  %v2337_v43 = vld [vmem:[#allocation6 + $0x18] sm:$0xff] }
 0x6a2   : > { %4298 = vrot.lane.b32.xlu0 %v6242_v46, %s5089_s29  ;;  %3984 = vmatprep.subr.bf16.mxu0 %v6244_v59 }
 0x6a3   : > { %v2233_v27 = vmul.f32 %v2208_v37, %v2185_v60  ;;  %3985 = vmatpush3.bf16.msra.mxu0 %v6244_v59 }
 0x6a5   : > { %v2281_v7 = vadd.f32 %v2256_v29, %v2233_v27 }
 0x6a7   : > { %v2297_v61 = vmul.f32 0.70710677, %v2281_v7  ;;  %v2165_v30 = vpop.permute.xlu0 %2164  ;;  %v2289_v34 = vmul.f32 0.5, %v2281_v7 }
 0x6a8   : > { %v2186_v49 = vmul.f32 %v2165_v30, %v6105_v48 }
 0x6a9   : > { %4551 = verf.f32 %v2297_v61  ;;  %v4550_v12 = vpop.eup %4549 }
 0x6aa   : > { %v2234_v55 = vmul.f32 %v2213_v62, %v2186_v49  ;;  %v2312_v3 = vadd.f32 1.0, %v4550_v12 }
 0x6ac   : > { %v2282_v52 = vadd.f32 %v2261_v14, %v2234_v55  ;;  %v2320_v8 = vmul.f32 %v2312_v3, %v2288_v0 }
 0x6ae   : > { %v2298_v10 = vmul.f32 0.70710677, %v2282_v52 }
 0x6b0   : > { %v2170_v17 = vpop.permute.xlu1 %2169  ;;  %4553 = verf.f32 %v2298_v10 }
 0x6b1   : > { %v2187_v20 = vmul.f32 %v2170_v17, %v6113_v11 }
 0x6b3   : > { %v4552_v1 = vpop.eup %4551  ;;  %v2235_v63 = vmul.f32 %v2218_v47, %v2187_v20 }
 0x6b4   : > { %v2313_v4 = vadd.f32 1.0, %v4552_v1 }
 0x6b5   : > { %v2283_v53 = vadd.f32 %v2266_v54, %v2235_v63  ;;  %v2290_v54 = vmul.f32 0.5, %v2282_v52 }
 0x6b6   : > { %v2321_v5 = vmul.f32 %v2313_v4, %v2289_v34 }
 0x6b7   : > { %v2299_v31 = vmul.f32 0.70710677, %v2283_v53  ;;  %v2291_v13 = vmul.f32 0.5, %v2283_v53 }
 0x6b8   : > { %v4302_v48 = vpack.i.bf16 %v2321_v5, %v2320_v8  ;;  %v6253_v18 = vpack.c.bf16 %v2321_v5, %v2320_v8 }
 0x6b9   : > { %4555 = verf.f32 %v2299_v31 }
 0x6ba   : > { %v2175_v44 = vpop.permute.xlu0 %2174  ;;  %4303 = vrot.lane.b32.xlu1 %v4302_v48, %s5089_s29  ;;  %3986 = vmatprep.subr.bf16.mxu0 %v6253_v18  ;;  %v4554_v29 = vpop.eup %4553 }
 0x6bb   : > { %v2188_v11 = vmul.f32 %v2175_v44, %v6120_v9  ;;  %3987 = vmatpush3.bf16.msra.mxu0 %v6253_v18  ;;  %v2314_v47 = vadd.f32 1.0, %v4554_v29  ;;  %v4504_v44 = vld [vmem:[%s6661_s5 + $0x8] sm:$0xff]  }
 0x6bd   : > { %v2236_v37 = vmul.f32 %v6237_v15, %v2188_v11  ;;  %v2322_v25 = vmul.f32 %v2314_v47, %v2290_v54 }
 0x6be   : > { %v2271_v32 = vpop.permute.xlu0 %2270 }
 0x6bf   : > { %v2284_v41 = vadd.f32 %v2271_v32, %v2236_v37  ;;  %v4505_v37 = vld [vmem:[#allocation4] sm:$0xff]  }
 0x6c1   : > { %v2300_v57 = vmul.f32 0.70710677, %v2284_v41  ;;  %v2292_v26 = vmul.f32 0.5, %v2284_v41 }
 0x6c3   : > { %v4556_v62 = vpop.eup %4555  ;;  %v2180_v14 = vpop.permute.xlu1 %2179  ;;  %4557 = verf.f32 %v2300_v57 }
 0x6c4   : > { %v2189_v16 = vmul.f32 %v2180_v14, %v6125_v51  ;;  %v2315_v19 = vadd.f32 1.0, %v4556_v62 }
 0x6c6   : > { %v2237_v2 = vmul.f32 %v6235_v56, %v2189_v16  ;;  %v2323_v9 = vmul.f32 %v2315_v19, %v2291_v13  ;;  %v2334_v56 = vld [vmem:[#allocation6] sm:$0xff]  ;;  %v4506_v16 = vld [vmem:[#allocation4 + $0x8] sm:$0xff]  }
 0x6c7   : > { %v2276_v22 = vpop.permute.xlu1 %2275 }
 0x6c8   : > { %v2285_v21 = vadd.f32 %v2276_v22, %v2237_v2  ;;  %v4307_v15 = vpack.i.bf16 %v2323_v9, %v2322_v25  ;;  %v6262_v6 = vpack.c.bf16 %v2323_v9, %v2322_v25 }
 0x6ca   : > { %v2301_v33 = vmul.f32 0.70710677, %v2285_v21  ;;  %4308 = vrot.lane.b32.xlu0 %v4307_v15, %s5089_s29  ;;  %3988 = vmatprep.subr.bf16.mxu0 %v6262_v6  ;;  %v2293_v23 = vmul.f32 0.5, %v2285_v21 }
 0x6cb   : > { %3989 = vmatpush3.bf16.msra.mxu0 %v6262_v6 }
 0x6cc   : > { %4559 = verf.f32 %v2301_v33 }
 0x6cd   : > { %v4558_v51 = vpop.eup %4557 }
 0x6ce   : > { %4318 = vrot.lane.b32.xlu0 %v6242_v46, %s5090_s26  ;;  %v2316_v42 = vadd.f32 1.0, %v4558_v51 }
 0x6d0   : > { %v2324_v45 = vmul.f32 %v2316_v42, %v2292_v26 }
 0x6d2   : > { %4328 = vrot.lane.b32.xlu0 %v4307_v15, %s5090_s26 }
 0x6d6   : > { %v4560_v40 = vpop.eup %4559  ;;  %2428 = vperm.xlu0 %4255, %v2334_v56  }
 0x6d7   : > { %v2317_v24 = vadd.f32 1.0, %v4560_v40 }
 0x6d9   : > { %v2325_v35 = vmul.f32 %v2317_v24, %v2293_v23 }
 0x6da   : > { %2438 = vperm.xlu0 %4255, %v2336_v28  }
 0x6db   : > { %v4312_v36 = vpack.i.bf16 %v2325_v35, %v2324_v45  ;;  %v6273_v58 = vpack.c.bf16 %v2325_v35, %v2324_v45 }
 0x6dd   : > { %4313 = vrot.lane.b32.xlu1 %v4312_v36, %s5089_s29  ;;  %3990 = vmatprep.subr.bf16.mxu0 %v6273_v58 }
 0x6de   : > { %3991 = vmatpush3.bf16.msra.mxu0 %v6273_v58 }
 0x6e1   : > { %4323 = vrot.lane.b32.xlu1 %v4302_v48, %s5090_s26 }
 0x6e5   : > { %4333 = vrot.lane.b32.xlu1 %v4312_v36, %s5090_s26 }
 0x6e9   : > { %2433 = vperm.xlu1 %4256, %v2335_v39  }
 0x6ed   : > { %2443 = vperm.xlu1 %4256, %v2337_v43  }
 0x714   : > { %v4299_v46 = vpop.permute.xlu0 %4298 }
 0x715   : > { %v4301_v38 = vunpack.i.h.bf16 %v4299_v46  ;;  %v4300_v60 = vunpack.i.l.bf16 %v4299_v46 }
 0x717   : > { %v3876_v7 = vpack.c.bf16 %v4301_v38, %v4300_v60 }
 0x719   : > { %3992 = vmatprep.subr.msk.bf16.mxu0 %vm6281_vm9, %v3876_v7 }
 0x71a   : > { %3993 = vmatpush3.bf16.msk.msra.mxu0 %vm6281_vm9, %v3876_v7 }
 0x72c   : > { %v4304_v61 = vpop.permute.xlu1 %4303 }
 0x72d   : > { %v4306_v30 = vunpack.i.h.bf16 %v4304_v61  ;;  %v4305_v49 = vunpack.i.l.bf16 %v4304_v61  ;;  %v2338_v61 = vld [vmem:[#allocation7] sm:$0xff] }
 0x72f   : > { %v3881_v55 = vpack.c.bf16 %v4306_v30, %v4305_v49  ;;  %v2342_v30 = vld [vmem:[#allocation9] sm:$0xff]  ;;  %v2343_v49 = vld [vmem:[#allocation9 + $0x8] sm:$0xff] }
 0x731   : > { %3994 = vmatprep.subr.msk.bf16.mxu0 %vm6281_vm9, %v3881_v55 }
 0x732   : > { %3995 = vmatpush3.bf16.msk.msra.mxu0 %vm6281_vm9, %v3881_v55  ;;  %v2339_v55 = vld [vmem:[#allocation7 + $0x8] sm:$0xff] }
 0x73c   : > { %v4309_v52 = vpop.permute.xlu0 %4308 }
 0x73d   : > { %v4311_v12 = vunpack.i.h.bf16 %v4309_v52  ;;  %v4310_v17 = vunpack.i.l.bf16 %v4309_v52  ;;  %v2341_v52 = vld [vmem:[#allocation7 + $0x18] sm:$0xff] }
 0x73f   : > { %v3886_v10 = vpack.c.bf16 %v4311_v12, %v4310_v17  ;;  %v2340_v12 = vld [vmem:[#allocation7 + $0x10] sm:$0xff] }
 0x740   : > { %v4319_v20 = vpop.permute.xlu0 %4318 }
 0x741   : > { %3996 = vmatprep.subr.msk.bf16.mxu0 %vm6281_vm9, %v3886_v10  ;;  %v4321_v1 = vunpack.i.h.bf16 %v4319_v20  ;;  %v4320_v63 = vunpack.i.l.bf16 %v4319_v20 }
 0x742   : > { %3997 = vmatpush3.bf16.msk.msra.mxu0 %vm6281_vm9, %v3886_v10 }
 0x743   : > { %v3896_v5 = vpack.c.bf16 %v4321_v1, %v4320_v63 }
 0x744   : > { %v4329_v11 = vpop.permute.xlu0 %4328 }
 0x745   : > { %v4331_v32 = vunpack.i.h.bf16 %v4329_v11  ;;  %v4330_v29 = vunpack.i.l.bf16 %v4329_v11 }
 0x747   : > { %v3902_v62 = vpack.c.bf16 %v4331_v32, %v4330_v29 }
 0x74f   : > { %v4314_v3 = vpop.permute.xlu1 %4313 }
 0x750   : > { %v4316_v0 = vunpack.i.h.bf16 %v4314_v3  ;;  %v4315_v34 = vunpack.i.l.bf16 %v4314_v3 }
 0x752   : > { %v3891_v4 = vpack.c.bf16 %v4316_v0, %v4315_v34 }
 0x753   : > { %v4324_v53 = vpop.permute.xlu1 %4323 }
 0x754   : > { %v4326_v31 = vunpack.i.h.bf16 %v4324_v53  ;;  %v4325_v48 = vunpack.i.l.bf16 %v4324_v53  ;;  %3998 = vmatprep.subr.msk.bf16.mxu0 %vm6281_vm9, %v3891_v4 }
 0x755   : > { %3999 = vmatpush3.bf16.msk.msra.mxu0 %vm6281_vm9, %v3891_v4  ;;  %v2429_v9 = vpop.permute.xlu0 %2428 }
 0x756   : > { %4004 = vmatprep.subr.msk.bf16.mxu0 %vm6299_vm10, %v3896_v5  ;;  %v3899_v41 = vpack.c.bf16 %v4326_v31, %v4325_v48 }
 0x757   : > { %v4334_v47 = vpop.permute.xlu1 %4333 }
 0x758   : > { %4001 = vmatmul.mubr.bf16.vlgmr.msra.gmra.mrb[0].mxu0 %v4504_v44  ;;  %v4336_v54 = vunpack.i.h.bf16 %v4334_v47  ;;  %v4335_v14 = vunpack.i.l.bf16 %v4334_v47  ;;  %v2345_v47 = vld [vmem:[#allocation9 + $0x18] sm:$0xff] }
 0x759   : > { %4005 = vmatpush3.bf16.msk.msra.mxu0 %vm6299_vm10, %v3896_v5  ;;  %4020 = vmatprep.mubr.bf16.mxu0 %v4505_v37 }
 0x75a   : > { %4006 = vmatprep.subr.msk.bf16.mxu0 %vm6299_vm10, %v3899_v41  ;;  %v3905_v13 = vpack.c.bf16 %v4336_v54, %v4335_v14 }
 0x75d   : > { %4007 = vmatpush3.bf16.msk.msra.mxu0 %vm6299_vm10, %v3899_v41 }
 0x75e   : > { %4008 = vmatprep.subr.msk.bf16.mxu0 %vm6299_vm10, %v3902_v62 }
 0x761   : > { %4009 = vmatpush3.bf16.msk.msra.mxu0 %vm6299_vm10, %v3902_v62  ;;  %v2344_v62 = vld [vmem:[#allocation9 + $0x10] sm:$0xff] }
 0x762   : > { %4010 = vmatprep.subr.msk.bf16.mxu0 %vm6299_vm10, %v3905_v13 }
 0x765   : > { %4011 = vmatpush3.bf16.msk.msra.mxu0 %vm6299_vm10, %v3905_v13 }
 0x766   : > { %4012 = vmatprep.subr.bf16.mxu0 %v6244_v59 }
 0x768   : > { %v2434_v22 = vpop.permute.xlu1 %2433 }
 0x769   : > { %4013 = vmatpush3.bf16.msra.mxu0 %v6244_v59 }
 0x76a   : > { %4014 = vmatprep.subr.bf16.mxu0 %v6253_v18 }
 0x76c   : > { %v2444_v42 = vpop.permute.xlu1 %2443 }
 0x76d   : > { %4015 = vmatpush3.bf16.msra.mxu0 %v6253_v18 }
 0x76e   : > { %4016 = vmatprep.subr.bf16.mxu0 %v6262_v6 }
 0x771   : > { %4017 = vmatpush3.bf16.msra.mxu0 %v6262_v6  ;;  %v2439_v6 = vpop.permute.xlu0 %2438 }
 0x772   : > { %4018 = vmatprep.subr.bf16.mxu0 %v6273_v58 }
 0x775   : > { %4019 = vmatpush3.bf16.msra.mxu0 %v6273_v58 }
 0x778   : > { %4021 = vmatmul.mubr.bf16.vlgmr.msra.gmra.mrb[4].mxu0 %v4506_v16 }
 0x82b   : > { %v4002_v57 = vpop.f32.mrb[0].mxu0 }
 0x82c   : > { %v2492_v19 = vpop.f32.mrb[1].mxu0  ;;  %v2501_v35 = vadd.f32 %v4002_v57, %v2439_v6 }
 0x82d   : > { %v4003_v2 = vpop.f32.mrb[2].mxu0  ;;  %v2493_v50 = vadd.f32 %v2492_v19, %v2429_v9 }
 0x82e   : > { %v2495_v25 = vpop.f32.mrb[3].mxu0  ;;  %v2504_v43 = vadd.f32 %v4003_v2, %v2444_v42 }
 0x82f   : > { %v2496_v23 = vadd.f32 %v2495_v25, %v2434_v22 }
 0x84b   : > { %v4022_v59 = vpop.f32.mrb[4].mxu0 }
 0x84c   : > { %v2557_v21 = vpop.f32.mrb[5].mxu0  ;;  %v2566_v56 = vadd.f32 %v4022_v59, %v2439_v6 }
 0x84d   : > { %v2558_v15 = vadd.f32 %v2557_v21, %v2429_v9  ;;  %v4023_v18 = vpop.f32.mrb[6].mxu0 }
 0x84e   : > { %v2560_v33 = vpop.f32.mrb[7].mxu0  ;;  %v2569_v40 = vadd.f32 %v4023_v18, %v2444_v42 }
 0x84f   : > { %v2561_v51 = vadd.f32 %v2560_v33, %v2434_v22  ;;  %2576 = vrot.lane.b32.xlu0 %v2558_v15, %s5091_s12 }
 0x851   : > { %2578 = vrot.lane.b32.xlu1 %v2561_v51, %s5091_s12 }
 0x853   : > { %2580 = vrot.lane.b32.xlu0 %v2566_v56, %s5091_s12 }
 0x855   : > { %2582 = vrot.lane.b32.xlu1 %v2569_v40, %s5091_s12 }
 0x8c1   : > { %v2577_v26 = vpop.permute.xlu0 %2576 }
 0x8c2   : > { %v2588_v24 = vsel %vm1395_vm5, %v2493_v50, %v2577_v26 }
 0x8c3   : > { %v2579_v28 = vpop.permute.xlu1 %2578  ;;  %v2593_v45 = vsel %vm2592_vm11, %v2588_v24, 0.0 }
 0x8c4   : > { %2594 = vadd.xlane.f32.xlu0 %v2593_v45  ;;  %v2589_v36 = vsel %vm1395_vm5, %v2496_v23, %v2579_v28 }
 0x8c5   : > { %v2581_v58 = vpop.permute.xlu0 %2580  ;;  %v2596_v39 = vsel %vm2592_vm11, %v2589_v36, 0.0 }
 0x8c6   : > { %2597 = vadd.xlane.f32.xlu1 %v2596_v39  ;;  %v2590_v46 = vsel %vm1395_vm5, %v2501_v35, %v2581_v58 }
 0x8c7   : > { %v2583_v38 = vpop.permute.xlu1 %2582  ;;  %v2599_v60 = vsel %vm2592_vm11, %v2590_v46, 0.0 }
 0x8c8   : > { %2600 = vadd.xlane.f32.xlu0 %v2599_v60  ;;  %v2591_v27 = vsel %vm1395_vm5, %v2504_v43, %v2583_v38 }
 0x8c9   : > { %v2602_v7 = vsel %vm2592_vm11, %v2591_v27, 0.0 }
 0x8cc   : > { %2603 = vadd.xlane.f32.xlu0 %v2602_v7 }
 0x8d7   : > { %2647 = vperm.xlu1 %4256, %v2338_v61  }
 0x8db   : > { %2671 = vperm.xlu1 %4256, %v2342_v30  }
 0x8df   : > { %2676 = vperm.xlu1 %4256, %v2343_v49  }
 0x8e2   : > { %2652 = vperm.xlu0 %4255, %v2339_v55  }
 0x8e3   : > { %2662 = vperm.xlu1 %4256, %v2341_v52  }
 0x8e6   : > { %2657 = vperm.xlu0 %4255, %v2340_v12  }
 0x951   : > { %v2595_v17 = vpop.xlane.xlu0 %2594 }
 0x952   : > { %v2605_v10 = vmul.f32 0.03125, %v2595_v17 }
 0x953   : > { %v2598_v20 = vpop.xlane.xlu1 %2597 }
 0x954   : > { %v2609_v63 = vsub.f32 %v2588_v24, %v2605_v10  ;;  %v2606_v0 = vmul.f32 0.03125, %v2598_v20 }
 0x955   : > { %v2601_v3 = vpop.xlane.xlu0 %2600 }
 0x956   : > { %v2607_v1 = vmul.f32 0.03125, %v2601_v3  ;;  %v2610_v5 = vsub.f32 %v2589_v36, %v2606_v0  ;;  %v2613_v44 = vmul.f32 %v2609_v63, %v2609_v63 }
 0x957   : > { %v2648_v54 = vpop.permute.xlu1 %2647 }
 0x958   : > { %v2611_v34 = vsub.f32 %v2590_v46, %v2607_v1  ;;  %v2617_v37 = vsel %vm2592_vm11, %v2613_v44, 0.0  ;;  %v2614_v29 = vmul.f32 %v2610_v5, %v2610_v5 }
 0x959   : > { %v2604_v4 = vpop.xlane.xlu0 %2603 }
 0x95a   : > { %v2608_v53 = vmul.f32 0.03125, %v2604_v4  ;;  %v2615_v8 = vmul.f32 %v2611_v34, %v2611_v34  ;;  %v2620_v41 = vsel %vm2592_vm11, %v2614_v29, 0.0 }
 0x95b   : > { %v2672_v14 = vpop.permute.xlu1 %2671 }
 0x95c   : > { %v2612_v31 = vsub.f32 %v2591_v27, %v2608_v53  ;;  %v2623_v48 = vsel %vm2592_vm11, %v2615_v8, 0.0 }
 0x95d   : > { %2624 = vadd.xlane.f32.xlu1 %v2623_v48 }
 0x95e   : > { %v2616_v11 = vmul.f32 %v2612_v31, %v2612_v31 }
 0x95f   : > { %v2677_v13 = vpop.permute.xlu1 %2676 }
 0x960   : > { %v2626_v32 = vsel %vm2592_vm11, %v2616_v11, 0.0 }
 0x961   : > { %2618 = vadd.xlane.f32.xlu1 %v2617_v37  ;;  %2627 = vadd.xlane.f32.xlu0 %v2626_v32  ;;  %v2653_v16 = vpop.permute.xlu0 %2652 }
 0x963   : > { %v2663_v57 = vpop.permute.xlu1 %2662 }
 0x965   : > { %2621 = vadd.xlane.f32.xlu0 %v2620_v41  ;;  %v2658_v19 = vpop.permute.xlu0 %2657 }
 0x972   : > { %2686 = vperm.xlu1 %4256, %v2345_v47  }
 0x97b   : > { %2681 = vperm.xlu0 %4255, %v2344_v62  }
 0x9ea   : > { %v2625_v2 = vpop.xlane.xlu1 %2624 }
 0x9eb   : > { %v2631_v25 = vmul.f32 0.03125, %v2625_v2 }
 0x9ed   : > { %v2635_v9 = vadd.f32 1e-05, %v2631_v25 }
 0x9ee   : > { %v2619_v59 = vpop.xlane.xlu1 %2618  ;;  %v2628_v22 = vpop.xlane.xlu0 %2627 }
 0x9ef   : > { %4561 = vrsqrt.f32 %v2635_v9  ;;  %v2629_v21 = vmul.f32 0.03125, %v2619_v59  ;;  %v2632_v15 = vmul.f32 0.03125, %v2628_v22 }
 0x9f1   : > { %v2633_v18 = vadd.f32 1e-05, %v2629_v21  ;;  %v2636_v33 = vadd.f32 1e-05, %v2632_v15  ;;  %v2717_v15 = vld [vmem:[#allocation12] sm:$0xff] }
 0x9f2   : > { %v2622_v51 = vpop.xlane.xlu0 %2621  ;;  %v2687_v46 = vpop.permute.xlu1 %2686 }
 0x9f3   : > { %4563 = vrsqrt.f32 %v2633_v18  ;;  %v2630_v6 = vmul.f32 0.03125, %v2622_v51 }
 0x9f4   : > { %4565 = vrsqrt.f32 %v2636_v33 }
 0x9f5   : > { %v2634_v56 = vadd.f32 1e-05, %v2630_v6 }
 0x9f7   : > { %4567 = vrsqrt.f32 %v2634_v56 }
 0x9f9   : > { %v4562_v42 = vpop.eup %4561 }
 0x9fa   : > { %v2643_v40 = vmul.f32 %v4562_v42, %v2611_v34  ;;  %v2682_v35 = vpop.permute.xlu0 %2681 }
 0x9fc   : > { %v2667_v26 = vmul.f32 %v2658_v19, %v2643_v40 }
 0x9fd   : > { %v4564_v50 = vpop.eup %4563 }
 0x9fe   : > { %v4566_v23 = vpop.eup %4565  ;;  %v2641_v24 = vmul.f32 %v4564_v50, %v2609_v63  ;;  %v2691_v39 = vadd.f32 %v2682_v35, %v2667_v26 }
 0x9ff   : > { %v2644_v28 = vmul.f32 %v4566_v23, %v2612_v31  ;;  %v2718_v23 = vld [vmem:[#allocation12 + $0x8] sm:$0xff] }
 0xa00   : > { %v2665_v45 = vmul.f32 %v2648_v54, %v2641_v24  ;;  %v2699_v30 = vmul.f32 0.70710677, %v2691_v39  ;;  %v2695_v31 = vmul.f32 0.5, %v2691_v39  ;;  %v2719_v24 = vld [vmem:[#allocation12 + $0x10] sm:$0xff] }
 0xa01   : > { %v4568_v36 = vpop.eup %4567  ;;  %v2668_v58 = vmul.f32 %v2663_v57, %v2644_v28 }
 0xa02   : > { %v2689_v43 = vadd.f32 %v2672_v14, %v2665_v45  ;;  %v2642_v38 = vmul.f32 %v4568_v36, %v2610_v5 }
 0xa03   : > { %v2692_v60 = vadd.f32 %v2687_v46, %v2668_v58 }
 0xa04   : > { %v2697_v27 = vmul.f32 0.70710677, %v2689_v43  ;;  %v2666_v7 = vmul.f32 %v2653_v16, %v2642_v38  ;;  %v2693_v3 = vmul.f32 0.5, %v2689_v43 }
 0xa05   : > { %v2700_v61 = vmul.f32 0.70710677, %v2692_v60  ;;  %v2696_v4 = vmul.f32 0.5, %v2692_v60 }
 0xa06   : > { %4569 = verf.f32 %v2697_v27  ;;  %v2690_v49 = vadd.f32 %v2677_v13, %v2666_v7  ;;  %v4507_v13 = vld [vmem:[#allocation10] sm:$0xff]   ;;  %v2720_v7 = vld [vmem:[#allocation12 + $0x18] sm:$0xff] }
 0xa07   : > { %4571 = verf.f32 %v2700_v61  ;;  %4036 = vmatprep.mubr.msk.bf16.mxu1 %vm2849_vm12, %v4507_v13 }
 0xa08   : > { %v2698_v55 = vmul.f32 0.70710677, %v2690_v49  ;;  %4573 = verf.f32 %v2699_v30  ;;  %v2694_v63 = vmul.f32 0.5, %v2690_v49 }
 0xa0a   : > { %4575 = verf.f32 %v2698_v55 }
 0xa10   : > { %v4570_v52 = vpop.eup %4569 }
 0xa11   : > { %v4572_v12 = vpop.eup %4571  ;;  %v2705_v10 = vadd.f32 1.0, %v4570_v52 }
 0xa12   : > { %v4574_v17 = vpop.eup %4573  ;;  %v2708_v1 = vadd.f32 1.0, %v4572_v12 }
 0xa13   : > { %v6350_v34 = vmul.f32 %v2705_v10, %v2693_v3  ;;  %v2707_v8 = vadd.f32 1.0, %v4574_v17 }
 0xa14   : > { %v4576_v20 = vpop.eup %4575  ;;  %v6354_v5 = vmul.f32 %v2708_v1, %v2696_v4 }
 0xa15   : > { %v2706_v0 = vadd.f32 1.0, %v4576_v20  ;;  %v6358_v44 = vmul.f32 %v2707_v8, %v2695_v31 }
 0xa17   : > { %v6352_v53 = vmul.f32 %v2706_v0, %v2694_v63  ;;  %v4352_v11 = vpack.i.bf16 %v6354_v5, %v6358_v44  ;;  %v2816_v52 = vpack.c.bf16 %v6354_v5, %v6358_v44 }
 0xa19   : > { %v4347_v48 = vpack.i.bf16 %v6352_v53, %v6350_v34  ;;  %v2815_v55 = vpack.c.bf16 %v6352_v53, %v6350_v34 }
 0xa1b   : > { %4348 = vrot.lane.b32.xlu1 %v4347_v48, %s5092_s0  ;;  %4338 = vrot.lane.b32.xlu0 %v4347_v48, %s5090_s26 }
 0xa1f   : > { %4353 = vrot.lane.b32.xlu1 %v4352_v11, %s5092_s0  ;;  %4343 = vrot.lane.b32.xlu0 %v4352_v11, %s5090_s26 }
 0xa23   : > { %4368 = vrot.lane.b32.xlu1 %v4347_v48, %s5091_s12  ;;  %4358 = vrot.lane.b32.xlu0 %v4347_v48, %s5093_s23 }
 0xa27   : > { %4373 = vrot.lane.b32.xlu1 %v4352_v11, %s5091_s12  ;;  %4363 = vrot.lane.b32.xlu0 %v4352_v11, %s5093_s23 }
 0xa8d   : > { %v6370_v37 = vpop.permute.xlu1 %4348  ;;  %v4339_v32 = vpop.permute.xlu0 %4338 }
 0xa8e   : > { %v4351_v29 = vunpack.i.h.bf16 %v6370_v37  ;;  %v4350_v41 = vunpack.i.l.bf16 %v6370_v37  ;;  %v4341_v47 = vunpack.i.h.bf16 %v4339_v32  ;;  %v4340_v62 = vunpack.i.l.bf16 %v4339_v32 }
 0xa90   : > { %v2774_v54 = vsel %vm1220_vm4, %v4341_v47, %v4351_v29  ;;  %v2773_v14 = vsel %vm1220_vm4, %v4340_v62, %v4350_v41 }
 0xa91   : > { %v4377_v16 = vpack.i.bf16 %v2774_v54, %v2773_v14  ;;  %v6380_v57 = vpop.permute.xlu1 %4353  ;;  %v4344_v19 = vpop.permute.xlu0 %4343 }
 0xa92   : > { %v4356_v2 = vunpack.i.h.bf16 %v6380_v57  ;;  %v4355_v25 = vunpack.i.l.bf16 %v6380_v57  ;;  %v4346_v9 = vunpack.i.h.bf16 %v4344_v19  ;;  %v4345_v59 = vunpack.i.l.bf16 %v4344_v19 }
 0xa93   : > { %4378 = vrot.lane.b32.xlu0 %v4377_v16, %s5091_s12 }
 0xa94   : > { %v2776_v22 = vsel %vm1220_vm4, %v4346_v9, %v4356_v2  ;;  %v2775_v21 = vsel %vm1220_vm4, %v4345_v59, %v4355_v25  ;;  %v2726_v9 = vld [vmem:[#allocation15 + $0x8] sm:$0xff] }
 0xa95   : > { %v4382_v18 = vpack.i.bf16 %v2776_v22, %v2775_v21  ;;  %v4369_v33 = vpop.permute.xlu1 %4368  ;;  %v4359_v51 = vpop.permute.xlu0 %4358  ;;  %v2722_v59 = vld [vmem:[#allocation13 + $0x8] sm:$0xff]  ;;  %v2724_v22 = vld [vmem:[#allocation13 + $0x18] sm:$0xff]  ;;  %v2723_v21 = vld [vmem:[#allocation13 + $0x10] sm:$0xff] }
 0xa96   : > { %v4371_v6 = vunpack.i.h.bf16 %v4369_v33  ;;  %v4370_v56 = vunpack.i.l.bf16 %v4369_v33  ;;  %v4361_v42 = vunpack.i.h.bf16 %v4359_v51  ;;  %v4360_v40 = vunpack.i.l.bf16 %v4359_v51 }
 0xa97   : > { %4383 = vrot.lane.b32.xlu1 %v4382_v18, %s5091_s12  ;;  %2821 = vperm.xlu0 %4255, %v2717_v15  }
 0xa98   : > { %v2746_v50 = vsel %vm1187_vm3, %v6352_v53, %v4361_v42  ;;  %v2745_v26 = vsel %vm1187_vm3, %v6350_v34, %v4360_v40 }
 0xa99   : > { %v4374_v28 = vpop.permute.xlu1 %4373  ;;  %v4364_v45 = vpop.permute.xlu0 %4363  ;;  %v2789_v35 = vsel %vm1395_vm5, %v2745_v26, %v4370_v56  ;;  %v2790_v36 = vsel %vm1395_vm5, %v2746_v50, %v4371_v6 }
 0xa9a   : > { %v4376_v58 = vunpack.i.h.bf16 %v4374_v28  ;;  %v4375_v39 = vunpack.i.l.bf16 %v4374_v28  ;;  %v4366_v43 = vunpack.i.h.bf16 %v4364_v45  ;;  %v4365_v46 = vunpack.i.l.bf16 %v4364_v45 }
 0xa9b   : > { %2826 = vperm.xlu1 %4256, %v2718_v23   ;;  %2831 = vperm.xlu0 %4255, %v2719_v24   ;;  %v2813_v38 = vpack.c.bf16 %v2790_v36, %v2789_v35 }
 0xa9c   : > { %v2748_v60 = vsel %vm1187_vm3, %v6354_v5, %v4366_v43  ;;  %v2747_v27 = vsel %vm1187_vm3, %v6358_v44, %v4365_v46  ;;  %v4508_v5 = vld [vmem:[#allocation10 + $0x8] sm:$0xff]  }
 0xa9d   : > { %4024 = vmatprep.subr.bf16.mxu1 %v2813_v38  ;;  %v2791_v61 = vsel %vm1395_vm5, %v2747_v27, %v4375_v39  ;;  %v2792_v30 = vsel %vm1395_vm5, %v2748_v60, %v4376_v58  ;;  %v2727_v60 = vld [vmem:[#allocation15 + $0x10] sm:$0xff] }
 0xa9e   : > { %4025 = vmatpush3.bf16.msra.mxu1 %v2813_v38  ;;  %v2814_v49 = vpack.c.bf16 %v2792_v30, %v2791_v61  ;;  %v2728_v38 = vld [vmem:[#allocation15 + $0x18] sm:$0xff] }
 0xa9f   : > { %2836 = vperm.xlu1 %4256, %v2720_v7  }
 0xaa0   : > { %4026 = vmatprep.subr.bf16.mxu1 %v2814_v49 }
 0xaa2   : > { %4027 = vmatpush3.bf16.msra.mxu1 %v2814_v49 }
 0xaa3   : > { %4028 = vmatprep.subr.bf16.mxu1 %v2815_v55 }
 0xaa6   : > { %4029 = vmatpush3.bf16.msra.mxu1 %v2815_v55 }
 0xaa7   : > { %4030 = vmatprep.subr.bf16.mxu1 %v2816_v52 }
 0xaaa   : > { %4031 = vmatpush3.bf16.msra.mxu1 %v2816_v52 }
 0xb05   : > { %v4379_v12 = vpop.permute.xlu0 %4378 }
 0xb06   : > { %v4381_v17 = vunpack.i.h.bf16 %v4379_v12  ;;  %v4380_v10 = vunpack.i.l.bf16 %v4379_v12 }
 0xb08   : > { %v2809_v20 = vsel %vm1395_vm5, %v4350_v41, %v4380_v10  ;;  %v2810_v3 = vsel %vm1395_vm5, %v4351_v29, %v4381_v17 }
 0xb09   : > { %v4384_v1 = vpop.permute.xlu1 %4383  ;;  %v2817_v63 = vpack.c.bf16 %v2810_v3, %v2809_v20 }
 0xb0a   : > { %v4386_v0 = vunpack.i.h.bf16 %v4384_v1  ;;  %v4385_v34 = vunpack.i.l.bf16 %v4384_v1 }
 0xb0b   : > { %4032 = vmatprep.subr.bf16.mxu1 %v2817_v63 }
 0xb0c   : > { %4033 = vmatpush3.bf16.msra.mxu1 %v2817_v63  ;;  %v2811_v4 = vsel %vm1395_vm5, %v4355_v25, %v4385_v34  ;;  %v2812_v53 = vsel %vm1395_vm5, %v4356_v2, %v4386_v0  ;;  %v2721_v2 = vld [vmem:[#allocation13] sm:$0xff] }
 0xb0d   : > { %v2818_v8 = vpack.c.bf16 %v2812_v53, %v2811_v4  ;;  %v2725_v25 = vld [vmem:[#allocation15] sm:$0xff] }
 0xb0f   : > { %4034 = vmatprep.subr.bf16.mxu1 %v2818_v8 }
 0xb10   : > { %4035 = vmatpush3.bf16.msra.mxu1 %v2818_v8 }
 0xb13   : > { %4037 = vmatmul.mubr.msk.bf16.vlgmr.msra.gmra.mrb[24].mxu1 %vm2849_vm12, %v4508_v5 }
 0xb16   : > { %v2822_v31 = vpop.permute.xlu0 %2821 }
 0xb1a   : > { %v2827_v44 = vpop.permute.xlu1 %2826  ;;  %v2832_v29 = vpop.permute.xlu0 %2831 }
 0xb1e   : > { %v2837_v13 = vpop.permute.xlu1 %2836 }
 0xbe6   : > { %v4038_v48 = vpop.f32.mrb[24].mxu1 }
 0xbe7   : > { %v2890_v11 = vpop.f32.mrb[25].mxu1  ;;  %v2899_v47 = vadd.f32 %v4038_v48, %v2832_v29 }
 0xbe8   : > { %v2891_v37 = vadd.f32 %v2890_v11, %v2822_v31  ;;  %v4039_v32 = vpop.f32.mrb[26].mxu1 }
 0xbe9   : > { %v2893_v41 = vpop.f32.mrb[27].mxu1  ;;  %v2902_v16 = vadd.f32 %v4039_v32, %v2837_v13  ;;  %v2911_v57 = vsel %vm2592_vm11, %v2899_v47, 0.0 }
 0xbea   : > { %v2894_v62 = vadd.f32 %v2893_v41, %v2827_v44  ;;  %v2905_v54 = vsel %vm2592_vm11, %v2891_v37, 0.0 }
 0xbeb   : > { %2906 = vadd.xlane.f32.xlu0 %v2905_v54  ;;  %v2914_v19 = vsel %vm2592_vm11, %v2902_v16, 0.0 }
 0xbec   : > { %v2908_v14 = vsel %vm2592_vm11, %v2894_v62, 0.0 }
 0xbed   : > { %2909 = vadd.xlane.f32.xlu1 %v2908_v14 }
 0xbef   : > { %2912 = vadd.xlane.f32.xlu0 %v2911_v57 }
 0xbf3   : > { %2915 = vadd.xlane.f32.xlu0 %v2914_v19 }
 0xbfe   : > { %2959 = vperm.xlu1 %4256, %v2721_v2  }
 0xc02   : > { %2983 = vperm.xlu1 %4256, %v2725_v25  }
 0xc06   : > { %2988 = vperm.xlu1 %4256, %v2726_v9  }
 0xc09   : > { %2964 = vperm.xlu0 %4255, %v2722_v59  }
 0xc0a   : > { %2974 = vperm.xlu1 %4256, %v2724_v22  }
 0xc0d   : > { %2969 = vperm.xlu0 %4255, %v2723_v21  }
 0xc78   : > { %v2907_v15 = vpop.xlane.xlu0 %2906 }
 0xc79   : > { %v2917_v18 = vmul.f32 0.03125, %v2907_v15 }
 0xc7a   : > { %v2910_v33 = vpop.xlane.xlu1 %2909 }
 0xc7b   : > { %v2921_v56 = vsub.f32 %v2891_v37, %v2917_v18  ;;  %v2918_v42 = vmul.f32 0.03125, %v2910_v33 }
 0xc7c   : > { %v2913_v51 = vpop.xlane.xlu0 %2912 }
 0xc7d   : > { %v2919_v6 = vmul.f32 0.03125, %v2913_v51  ;;  %v2922_v24 = vsub.f32 %v2894_v62, %v2918_v42  ;;  %v2925_v35 = vmul.f32 %v2921_v56, %v2921_v56 }
 0xc7e   : > { %v2960_v27 = vpop.permute.xlu1 %2959 }
 0xc7f   : > { %v2923_v40 = vsub.f32 %v2899_v47, %v2919_v6  ;;  %v2929_v58 = vsel %vm2592_vm11, %v2925_v35, 0.0  ;;  %v2926_v43 = vmul.f32 %v2922_v24, %v2922_v24 }
 0xc80   : > { %v2916_v50 = vpop.xlane.xlu0 %2915 }
 0xc81   : > { %v2920_v26 = vmul.f32 0.03125, %v2916_v50  ;;  %v2927_v23 = vmul.f32 %v2923_v40, %v2923_v40  ;;  %v2932_v46 = vsel %vm2592_vm11, %v2926_v43, 0.0  ;;  %v3033_v43 = vld [vmem:[#allocation19] sm:$0xff] }
 0xc82   : > { %v2984_v7 = vpop.permute.xlu1 %2983 }
 0xc83   : > { %v2924_v28 = vsub.f32 %v2902_v16, %v2920_v26  ;;  %v2935_v45 = vsel %vm2592_vm11, %v2927_v23, 0.0 }
 0xc84   : > { %2936 = vadd.xlane.f32.xlu1 %v2935_v45 }
 0xc85   : > { %v2928_v36 = vmul.f32 %v2924_v28, %v2924_v28 }
 0xc86   : > { %v2989_v61 = vpop.permute.xlu1 %2988 }
 0xc87   : > { %v2938_v39 = vsel %vm2592_vm11, %v2928_v36, 0.0 }
 0xc88   : > { %2930 = vadd.xlane.f32.xlu1 %v2929_v58  ;;  %2939 = vadd.xlane.f32.xlu0 %v2938_v39  ;;  %v2965_v30 = vpop.permute.xlu0 %2964 }
 0xc8a   : > { %v2975_v49 = vpop.permute.xlu1 %2974 }
 0xc8c   : > { %2933 = vadd.xlane.f32.xlu0 %v2932_v46  ;;  %v2970_v55 = vpop.permute.xlu0 %2969  ;;  %v3035_v46 = vld [vmem:[#allocation19 + $0x10] sm:$0xff] }
 0xc99   : > { %2998 = vperm.xlu1 %4256, %v2728_v38  }
 0xca2   : > { %2993 = vperm.xlu0 %4255, %v2727_v60  }
 0xd11   : > { %v2937_v52 = vpop.xlane.xlu1 %2936 }
 0xd12   : > { %v2943_v12 = vmul.f32 0.03125, %v2937_v52 }
 0xd14   : > { %v2947_v17 = vadd.f32 1e-05, %v2943_v12 }
 0xd15   : > { %v2931_v10 = vpop.xlane.xlu1 %2930  ;;  %v2940_v20 = vpop.xlane.xlu0 %2939 }
 0xd16   : > { %4577 = vrsqrt.f32 %v2947_v17  ;;  %v2941_v3 = vmul.f32 0.03125, %v2931_v10  ;;  %v2944_v1 = vmul.f32 0.03125, %v2940_v20  ;;  %v4509_v20 = vld [vmem:[#allocation16] sm:$0xff]  }
 0xd17   : > { %4048 = vmatprep.mubr.msk.bf16.mxu0 %vm1317_vm2, %v4509_v20 }
 0xd18   : > { %v2945_v63 = vadd.f32 1e-05, %v2941_v3  ;;  %v2948_v0 = vadd.f32 1e-05, %v2944_v1  ;;  %v4510_v3 = vld [vmem:[#allocation18] sm:$0xff]   ;;  %v3034_v1 = vld [vmem:[#allocation19 + $0x8] sm:$0xff] }
 0xd19   : > { %v2934_v34 = vpop.xlane.xlu0 %2933  ;;  %v2999_v13 = vpop.permute.xlu1 %2998  ;;  %4060 = vmatprep.mubr.msk.bf16.mxu1 %vm1317_vm2, %v4510_v3 }
 0xd1a   : > { %4579 = vrsqrt.f32 %v2945_v63  ;;  %v2942_v4 = vmul.f32 0.03125, %v2934_v34  ;;  %v3036_v63 = vld [vmem:[#allocation19 + $0x18] sm:$0xff] }
 0xd1b   : > { %4581 = vrsqrt.f32 %v2948_v0 }
 0xd1c   : > { %v2946_v53 = vadd.f32 1e-05, %v2942_v4 }
 0xd1e   : > { %4583 = vrsqrt.f32 %v2946_v53 }
 0xd20   : > { %v4578_v8 = vpop.eup %4577 }
 0xd21   : > { %v2955_v5 = vmul.f32 %v4578_v8, %v2923_v40  ;;  %v2994_v44 = vpop.permute.xlu0 %2993 }
 0xd23   : > { %v2979_v31 = vmul.f32 %v2970_v55, %v2955_v5 }
 0xd24   : > { %v4580_v48 = vpop.eup %4579 }
 0xd25   : > { %v4582_v11 = vpop.eup %4581  ;;  %v2953_v37 = vmul.f32 %v4580_v48, %v2921_v56  ;;  %v3003_v32 = vadd.f32 %v2994_v44, %v2979_v31 }
 0xd26   : > { %v2956_v29 = vmul.f32 %v4582_v11, %v2924_v28 }
 0xd27   : > { %v2977_v41 = vmul.f32 %v2960_v27, %v2953_v37  ;;  %v3011_v47 = vmul.f32 0.70710677, %v3003_v32  ;;  %v3007_v6 = vmul.f32 0.5, %v3003_v32 }
 0xd28   : > { %v4584_v62 = vpop.eup %4583  ;;  %v2980_v54 = vmul.f32 %v2975_v49, %v2956_v29 }
 0xd29   : > { %v3001_v14 = vadd.f32 %v2984_v7, %v2977_v41  ;;  %v2954_v16 = vmul.f32 %v4584_v62, %v2922_v24  ;;  %4585 = verf.f32 %v3011_v47 }
 0xd2a   : > { %v3004_v57 = vadd.f32 %v2999_v13, %v2980_v54 }
 0xd2b   : > { %v3009_v19 = vmul.f32 0.70710677, %v3001_v14  ;;  %v2978_v2 = vmul.f32 %v2965_v30, %v2954_v16  ;;  %v3005_v26 = vmul.f32 0.5, %v3001_v14 }
 0xd2c   : > { %v3012_v25 = vmul.f32 0.70710677, %v3004_v57  ;;  %v3008_v33 = vmul.f32 0.5, %v3004_v57 }
 0xd2d   : > { %4587 = verf.f32 %v3009_v19  ;;  %v3002_v9 = vadd.f32 %v2989_v61, %v2978_v2 }
 0xd2e   : > { %4589 = verf.f32 %v3012_v25 }
 0xd2f   : > { %v3010_v59 = vmul.f32 0.70710677, %v3002_v9  ;;  %v3006_v23 = vmul.f32 0.5, %v3002_v9 }
 0xd31   : > { %4591 = verf.f32 %v3010_v59 }
 0xd33   : > { %v4586_v22 = vpop.eup %4585 }
 0xd34   : > { %v3019_v15 = vadd.f32 1.0, %v4586_v22 }
 0xd36   : > { %v3023_v50 = vmul.f32 %v3019_v15, %v3007_v6 }
 0xd37   : > { %v4588_v21 = vpop.eup %4587 }
 0xd38   : > { %v4590_v18 = vpop.eup %4589  ;;  %v3017_v56 = vadd.f32 1.0, %v4588_v21 }
 0xd39   : > { %v3020_v51 = vadd.f32 1.0, %v4590_v18 }
 0xd3a   : > { %v3021_v45 = vmul.f32 %v3017_v56, %v3005_v26 }
 0xd3b   : > { %v4592_v42 = vpop.eup %4591  ;;  %v3024_v40 = vmul.f32 %v3020_v51, %v3008_v33 }
 0xd3c   : > { %v3018_v24 = vadd.f32 1.0, %v4592_v42 }
 0xd3d   : > { %v4392_v28 = vpack.i.bf16 %v3024_v40, %v3023_v50  ;;  %v6431_v39 = vpack.c.bf16 %v3024_v40, %v3023_v50 }
 0xd3e   : > { %v3022_v35 = vmul.f32 %v3018_v24, %v3006_v23 }
 0xd3f   : > { %4393 = vrot.lane.b32.xlu1 %v4392_v28, %s5090_s26 }
 0xd40   : > { %v4387_v36 = vpack.i.bf16 %v3022_v35, %v3021_v45  ;;  %v6427_v58 = vpack.c.bf16 %v3022_v35, %v3021_v45  ;;  %v4512_v45 = vld [vmem:[#allocation18 + $0x8] sm:$0xff]  }
 0xd42   : > { %4388 = vrot.lane.b32.xlu0 %v4387_v36, %s5090_s26  ;;  %4040 = vmatprep.subr.bf16.mxu0 %v6427_v58 }
 0xd43   : > { %4041 = vmatpush3.bf16.msra.mxu0 %v6427_v58 }
 0xd44   : > { %4042 = vmatprep.subr.bf16.mxu0 %v6431_v39 }
 0xd46   : > { %4398 = vrot.lane.b32.xlu0 %v4387_v36, %s5092_s0 }
 0xd47   : > { %4043 = vmatpush3.bf16.msra.mxu0 %v6431_v39 }
 0xd4a   : > { %4403 = vrot.lane.b32.xlu0 %v4392_v28, %s5092_s0 }
 0xd4e   : > { %4418 = vrot.lane.b32.xlu0 %v4387_v36, %s5093_s23 }
 0xd52   : > { %4428 = vrot.lane.b32.xlu0 %v4392_v28, %s5093_s23 }
 0xd56   : > { %3135 = vperm.xlu0 %4255, %v3033_v43  }
 0xd5a   : > { %3145 = vperm.xlu0 %4255, %v3035_v46  }
 0xdb1   : > { %v4394_v38 = vpop.permute.xlu1 %4393 }
 0xdb2   : > { %v4396_v27 = vunpack.i.h.bf16 %v4394_v38  ;;  %v4395_v7 = vunpack.i.l.bf16 %v4394_v38 }
 0xdb4   : > { %v4389_v60 = vpop.permute.xlu0 %4388  ;;  %v3080_v12 = vsel %vm1220_vm4, %v4396_v27, 0.0  ;;  %v3079_v17 = vsel %vm1220_vm4, %v4395_v7, 0.0 }
 0xdb5   : > { %v4391_v61 = vunpack.i.h.bf16 %v4389_v60  ;;  %v4390_v30 = vunpack.i.l.bf16 %v4389_v60  ;;  %v4412_v10 = vpack.i.bf16 %v3080_v12, %v3079_v17 }
 0xdb7   : > { %v3078_v49 = vsel %vm1220_vm4, %v4391_v61, 0.0  ;;  %v3077_v55 = vsel %vm1220_vm4, %v4390_v30, 0.0 }
 0xdb8   : > { %v4407_v52 = vpack.i.bf16 %v3078_v49, %v3077_v55  ;;  %v4399_v0 = vpop.permute.xlu0 %4398 }
 0xdb9   : > { %v4401_v53 = vunpack.i.h.bf16 %v4399_v0  ;;  %v4400_v8 = vunpack.i.l.bf16 %v4399_v0 }
 0xdba   : > { %4408 = vrot.lane.b32.xlu1 %v4407_v52, %s5091_s12 }
 0xdbc   : > { %v4404_v34 = vpop.permute.xlu0 %4403 }
 0xdbd   : > { %v4406_v29 = vunpack.i.h.bf16 %v4404_v34  ;;  %v4405_v41 = vunpack.i.l.bf16 %v4404_v34 }
 0xdbe   : > { %4413 = vrot.lane.b32.xlu1 %v4412_v10, %s5091_s12 }
 0xdc0   : > { %v4419_v5 = vpop.permute.xlu0 %4418 }
 0xdc1   : > { %v4421_v54 = vunpack.i.h.bf16 %v4419_v5  ;;  %v4420_v14 = vunpack.i.l.bf16 %v4419_v5 }
 0xdc2   : > { %4423 = vrot.lane.b32.xlu1 %v4387_v36, %s5091_s12 }
 0xdc3   : > { %v3062_v59 = vsel %vm1187_vm3, 0.0, %v4421_v54  ;;  %v3061_v22 = vsel %vm1187_vm3, 0.0, %v4420_v14 }
 0xdc4   : > { %v4429_v13 = vpop.permute.xlu0 %4428 }
 0xdc5   : > { %v4431_v21 = vunpack.i.h.bf16 %v4429_v13  ;;  %v4430_v15 = vunpack.i.l.bf16 %v4429_v13 }
 0xdc6   : > { %4433 = vrot.lane.b32.xlu1 %v4392_v28, %s5091_s12  ;;  %v4511_v28 = vld [vmem:[#allocation16 + $0x8] sm:$0xff]  }
 0xdc7   : > { %v3064_v40 = vsel %vm1187_vm3, 0.0, %v4431_v21  ;;  %v3063_v50 = vsel %vm1187_vm3, 0.0, %v4430_v15  ;;  %v3041_v21 = vld [vmem:[#allocation22] sm:$0xff]  ;;  %v3042_v15 = vld [vmem:[#allocation22 + $0x8] sm:$0xff] }
 0xdca   : > { %3140 = vperm.xlu1 %4256, %v3034_v1  }
 0xdce   : > { %3150 = vperm.xlu1 %4256, %v3036_v63  }
 0xdd5   : > { %v3136_v35 = vpop.permute.xlu0 %3135 }
 0xe2c   : > { %v4409_v4 = vpop.permute.xlu1 %4408 }
 0xe2d   : > { %v4411_v31 = vunpack.i.h.bf16 %v4409_v4  ;;  %v4410_v48 = vunpack.i.l.bf16 %v4409_v4 }
 0xe2f   : > { %v3125_v44 = vsel %vm1395_vm5, %v4400_v8, %v4410_v48  ;;  %v3126_v11 = vsel %vm1395_vm5, %v4401_v53, %v4411_v31 }
 0xe30   : > { %v4414_v37 = vpop.permute.xlu1 %4413  ;;  %v3218_v32 = vpack.c.bf16 %v3126_v11, %v3125_v44 }
 0xe31   : > { %v4416_v47 = vunpack.i.h.bf16 %v4414_v37  ;;  %v4415_v62 = vunpack.i.l.bf16 %v4414_v37 }
 0xe32   : > { %4052 = vmatprep.subr.bf16.mxu1 %v3218_v32 }
 0xe33   : > { %4053 = vmatpush3.bf16.msra.mxu1 %v3218_v32  ;;  %v3127_v16 = vsel %vm1395_vm5, %v4405_v41, %v4415_v62  ;;  %v3128_v57 = vsel %vm1395_vm5, %v4406_v29, %v4416_v47 }
 0xe34   : > { %v4424_v19 = vpop.permute.xlu1 %4423  ;;  %v3219_v2 = vpack.c.bf16 %v3128_v57, %v3127_v16 }
 0xe35   : > { %v4426_v25 = vunpack.i.h.bf16 %v4424_v19  ;;  %v4425_v9 = vunpack.i.l.bf16 %v4424_v19 }
 0xe36   : > { %4054 = vmatprep.subr.bf16.mxu1 %v3219_v2 }
 0xe37   : > { %4055 = vmatpush3.bf16.msra.mxu1 %v3219_v2  ;;  %v3093_v18 = vsel %vm1395_vm5, %v3061_v22, %v4425_v9  ;;  %v3094_v33 = vsel %vm1395_vm5, %v3062_v59, %v4426_v25  ;;  %v3037_v22 = vld [vmem:[#allocation21] sm:$0xff] }
 0xe38   : > { %v4434_v51 = vpop.permute.xlu1 %4433  ;;  %4056 = vmatprep.subr.bf16.mxu1 %v6427_v58  ;;  %v3131_v6 = vpack.c.bf16 %v3094_v33, %v3093_v18  ;;  %v3038_v18 = vld [vmem:[#allocation21 + $0x8] sm:$0xff]  ;;  %v3040_v33 = vld [vmem:[#allocation21 + $0x18] sm:$0xff] }
 0xe39   : > { %v4436_v56 = vunpack.i.h.bf16 %v4434_v51  ;;  %v4435_v42 = vunpack.i.l.bf16 %v4434_v51  ;;  %v3039_v51 = vld [vmem:[#allocation21 + $0x10] sm:$0xff] }
 0xe3a   : > { %4044 = vmatprep.subr.bf16.mxu0 %v3131_v6 }
 0xe3b   : > { %4045 = vmatpush3.bf16.msra.mxu0 %v3131_v6  ;;  %4057 = vmatpush3.bf16.msra.mxu1 %v6427_v58  ;;  %v3095_v26 = vsel %vm1395_vm5, %v3063_v50, %v4435_v42  ;;  %v3096_v23 = vsel %vm1395_vm5, %v3064_v40, %v4436_v56  ;;  %v3146_v58 = vpop.permute.xlu0 %3145 }
 0xe3c   : > { %4058 = vmatprep.subr.bf16.mxu1 %v6431_v39  ;;  %v3132_v24 = vpack.c.bf16 %v3096_v23, %v3095_v26 }
 0xe3e   : > { %4046 = vmatprep.subr.bf16.mxu0 %v3132_v24 }
 0xe3f   : > { %4047 = vmatpush3.bf16.msra.mxu0 %v3132_v24  ;;  %4059 = vmatpush3.bf16.msra.mxu1 %v6431_v39 }
 0xe42   : > { %4049 = vmatmul.mubr.msk.bf16.vlgmr.msra.gmra.mrb[8].mxu0 %vm1317_vm2, %v4511_v28  ;;  %4061 = vmatmul.mubr.msk.bf16.vlgmr.msra.gmra.mrb[28].mxu1 %vm1317_vm2, %v4512_v45 }
 0xe49   : > { %v3141_v36 = vpop.permute.xlu1 %3140 }
 0xe4d   : > { %v3151_v43 = vpop.permute.xlu1 %3150 }
 0xf15   : > { %v4050_v46 = vpop.f32.mrb[8].mxu0  ;;  %v4062_v38 = vpop.f32.mrb[28].mxu1 }
 0xf16   : > { %v3212_v60 = vadd.f32 %v4050_v46, %v3146_v58  ;;  %v3203_v27 = vpop.f32.mrb[9].mxu0  ;;  %v3270_v7 = vpop.f32.mrb[29].mxu1  ;;  %v3279_v17 = vadd.f32 %v4062_v38, %v3146_v58 }
 0xf17   : > { %v4051_v61 = vpop.f32.mrb[10].mxu0  ;;  %v4063_v30 = vpop.f32.mrb[30].mxu1  ;;  %v3204_v52 = vadd.f32 %v3203_v27, %v3136_v35  ;;  %v3271_v20 = vadd.f32 %v3270_v7, %v3136_v35 }
 0xf18   : > { %v3215_v49 = vadd.f32 %v4051_v61, %v3151_v43  ;;  %3309 = vrot.lane.b32.xlu0 %v3212_v60, %s5091_s12  ;;  %v3206_v55 = vpop.f32.mrb[11].mxu0  ;;  %v3273_v39 = vpop.f32.mrb[31].mxu1  ;;  %v3282_v10 = vadd.f32 %v4063_v30, %v3151_v43  ;;  %v3044_v30 = vld [vmem:[#allocation22 + $0x18] sm:$0xff] }
 0xf19   : > { %v3207_v12 = vadd.f32 %v3206_v55, %v3141_v36  ;;  %v3274_v3 = vadd.f32 %v3273_v39, %v3141_v36 }
 0xf1a   : > { %3311 = vrot.lane.b32.xlu1 %v3215_v49, %s5091_s12 }
 0xf1c   : > { %3305 = vrot.lane.b32.xlu0 %v3204_v52, %s5091_s12 }
 0xf1e   : > { %3307 = vrot.lane.b32.xlu1 %v3207_v12, %s5091_s12 }
 0xf20   : > { %3293 = vrot.lane.b32.xlu0 %v3279_v17, %s5091_s12 }
 0xf22   : > { %3295 = vrot.lane.b32.xlu1 %v3282_v10, %s5091_s12 }
 0xf24   : > { %3289 = vrot.lane.b32.xlu0 %v3271_v20, %s5091_s12 }
 0xf26   : > { %3291 = vrot.lane.b32.xlu1 %v3274_v3, %s5091_s12 }
 0xf28   : > { %3317 = vrot.lane.b32.xlu0 %v3271_v20, %s5094_s21 }
 0xf2a   : > { %3319 = vrot.lane.b32.xlu1 %v3274_v3, %s5094_s21 }
 0xf2c   : > { %3321 = vrot.lane.b32.xlu0 %v3279_v17, %s5094_s21 }
 0xf2e   : > { %3323 = vrot.lane.b32.xlu1 %v3282_v10, %s5094_s21 }
 0xf8a   : > { %v3310_v1 = vpop.permute.xlu0 %3309 }
 0xf8c   : > { %v3312_v63 = vpop.permute.xlu1 %3311 }
 0xf8e   : > { %v3306_v0 = vpop.permute.xlu0 %3305 }
 0xf90   : > { %v3308_v34 = vpop.permute.xlu1 %3307 }
 0xf92   : > { %v3294_v4 = vpop.permute.xlu0 %3293 }
 0xf93   : > { %v3331_v37 = vsel %vm1395_vm5, %v3212_v60, %v3294_v4 }
 0xf94   : > { %v3296_v53 = vpop.permute.xlu1 %3295  ;;  %v3335_v14 = vsel %vm2592_vm11, %v3331_v37, %v3310_v1 }
 0xf95   : > { %v3332_v62 = vsel %vm1395_vm5, %v3215_v49, %v3296_v53  ;;  %v3043_v49 = vld [vmem:[#allocation22 + $0x10] sm:$0xff] }
 0xf96   : > { %v3290_v8 = vpop.permute.xlu0 %3289  ;;  %v3336_v19 = vsel %vm2592_vm11, %v3332_v62, %v3312_v63 }
 0xf97   : > { %v3329_v5 = vsel %vm1395_vm5, %v3204_v52, %v3290_v8 }
 0xf98   : > { %v3292_v31 = vpop.permute.xlu1 %3291  ;;  %v3333_v44 = vsel %vm2592_vm11, %v3329_v5, %v3306_v0 }
 0xf99   : > { %v3330_v48 = vsel %vm1395_vm5, %v3207_v12, %v3292_v31 }
 0xf9a   : > { %v3318_v11 = vpop.permute.xlu0 %3317  ;;  %v3334_v29 = vsel %vm2592_vm11, %v3330_v48, %v3308_v34 }
 0xf9b   : > { %v3338_v32 = vsel %vm3337_vm13, %v3333_v44, %v3318_v11 }
 0xf9c   : > { %v3320_v41 = vpop.permute.xlu1 %3319  ;;  %v3342_v47 = vsel %vm1317_vm2, %v3338_v32, 0.0 }
 0xf9d   : > { %v3339_v54 = vsel %vm3337_vm13, %v3334_v29, %v3320_v41  ;;  %3343 = vadd.xlane.f32.xlu0 %v3342_v47 }
 0xf9e   : > { %v3322_v13 = vpop.permute.xlu0 %3321  ;;  %v3345_v16 = vsel %vm1317_vm2, %v3339_v54, 0.0 }
 0xf9f   : > { %v3340_v57 = vsel %vm3337_vm13, %v3335_v14, %v3322_v13  ;;  %3346 = vadd.xlane.f32.xlu1 %v3345_v16 }
 0xfa0   : > { %v3324_v2 = vpop.permute.xlu1 %3323  ;;  %v3348_v25 = vsel %vm1317_vm2, %v3340_v57, 0.0 }
 0xfa1   : > { %v3341_v9 = vsel %vm3337_vm13, %v3336_v19, %v3324_v2  ;;  %3349 = vadd.xlane.f32.xlu0 %v3348_v25 }
 0xfa2   : > { %v3351_v59 = vsel %vm1317_vm2, %v3341_v9, 0.0 }
 0xfa5   : > { %3352 = vadd.xlane.f32.xlu0 %v3351_v59 }
 0xfb0   : > { %3396 = vperm.xlu1 %4256, %v3037_v22  }
 0xfb4   : > { %3420 = vperm.xlu1 %4256, %v3041_v21  }
 0xfb8   : > { %3425 = vperm.xlu1 %4256, %v3042_v15  }
 0xfbb   : > { %3401 = vperm.xlu0 %4255, %v3038_v18  }
 0xfbc   : > { %3411 = vperm.xlu1 %4256, %v3040_v33  }
 0xfbf   : > { %3406 = vperm.xlu0 %4255, %v3039_v51  }
0x102a   : > { %v3344_v6 = vpop.xlane.xlu0 %3343 }
0x102b   : > { %v3354_v56 = vmul.f32 0.015625, %v3344_v6 }
0x102c   : > { %v3347_v42 = vpop.xlane.xlu1 %3346 }
0x102d   : > { %v3358_v26 = vsub.f32 %v3338_v32, %v3354_v56  ;;  %v3355_v23 = vmul.f32 0.015625, %v3347_v42 }
0x102e   : > { %v3350_v40 = vpop.xlane.xlu0 %3349 }
0x102f   : > { %v3356_v50 = vmul.f32 0.015625, %v3350_v40  ;;  %v3359_v36 = vsub.f32 %v3339_v54, %v3355_v23  ;;  %v3362_v46 = vmul.f32 %v3358_v26, %v3358_v26 }
0x1030   : > { %v3397_v55 = vpop.permute.xlu1 %3396 }
0x1031   : > { %v3360_v24 = vsub.f32 %v3340_v57, %v3356_v50  ;;  %v3366_v60 = vsel %vm1317_vm2, %v3362_v46, 0.0  ;;  %v3363_v7 = vmul.f32 %v3359_v36, %v3359_v36 }
0x1032   : > { %v3353_v28 = vpop.xlane.xlu0 %3352 }
0x1033   : > { %v3357_v45 = vmul.f32 0.015625, %v3353_v28  ;;  %v3364_v35 = vmul.f32 %v3360_v24, %v3360_v24  ;;  %v3369_v61 = vsel %vm1317_vm2, %v3363_v7, 0.0  ;;  %v5095_v7 = vmov 0.0  }
0x1034   : > { %v3421_v39 = vpop.permute.xlu1 %3420  ;;  %4064 = vmatprep.subr.bf16.mxu0 %v5095_v7  ;;  %4076 = vmatprep.mubr.msk.bf16.mxu0 %vm5097_vm14, %v5095_v7 }
0x1035   : > { %v3361_v58 = vsub.f32 %v3341_v9, %v3357_v45  ;;  %v3372_v43 = vsel %vm1317_vm2, %v3364_v35, 0.0 }
0x1036   : > { %3373 = vadd.xlane.f32.xlu1 %v3372_v43 }
0x1037   : > { %v3365_v38 = vmul.f32 %v3361_v58, %v3361_v58 }
0x1038   : > { %v3426_v52 = vpop.permute.xlu1 %3425 }
0x1039   : > { %v3375_v27 = vsel %vm1317_vm2, %v3365_v38, 0.0 }
0x103a   : > { %3367 = vadd.xlane.f32.xlu1 %v3366_v60  ;;  %3376 = vadd.xlane.f32.xlu0 %v3375_v27  ;;  %v3402_v12 = vpop.permute.xlu0 %3401 }
0x103c   : > { %v3412_v17 = vpop.permute.xlu1 %3411 }
0x103e   : > { %3370 = vadd.xlane.f32.xlu0 %v3369_v61  ;;  %v3407_v10 = vpop.permute.xlu0 %3406  ;;  %v3463_v61 = vld [vmem:[#allocation24] sm:$0x7] }
0x104b   : > { %3435 = vperm.xlu1 %4256, %v3044_v30  }
0x1054   : > { %3430 = vperm.xlu0 %4255, %v3043_v49  }
0x10c3   : > { %v3374_v20 = vpop.xlane.xlu1 %3373 }
0x10c4   : > { %v3380_v3 = vmul.f32 0.015625, %v3374_v20 }
0x10c6   : > { %v3384_v1 = vadd.f32 1e-05, %v3380_v3 }
0x10c7   : > { %v3368_v63 = vpop.xlane.xlu1 %3367  ;;  %v3377_v0 = vpop.xlane.xlu0 %3376 }
0x10c8   : > { %4593 = vrsqrt.f32 %v3384_v1  ;;  %v3378_v34 = vmul.f32 0.015625, %v3368_v63  ;;  %v3381_v4 = vmul.f32 0.015625, %v3377_v0 }
0x10ca   : > { %v3382_v53 = vadd.f32 1e-05, %v3378_v34  ;;  %v3385_v8 = vadd.f32 1e-05, %v3381_v4 }
0x10cb   : > { %v3371_v5 = vpop.xlane.xlu0 %3370  ;;  %v3436_v2 = vpop.permute.xlu1 %3435 }
0x10cc   : > { %4595 = vrsqrt.f32 %v3382_v53  ;;  %v3379_v31 = vmul.f32 0.015625, %v3371_v5 }
0x10cd   : > { %4597 = vrsqrt.f32 %v3385_v8 }
0x10ce   : > { %v3383_v48 = vadd.f32 1e-05, %v3379_v31 }
0x10d0   : > { %4599 = vrsqrt.f32 %v3383_v48 }
0x10d2   : > { %v4594_v44 = vpop.eup %4593 }
0x10d3   : > { %v3392_v11 = vmul.f32 %v4594_v44, %v3360_v24  ;;  %v3431_v29 = vpop.permute.xlu0 %3430 }
0x10d5   : > { %v3416_v37 = vmul.f32 %v3407_v10, %v3392_v11 }
0x10d6   : > { %v4596_v32 = vpop.eup %4595 }
0x10d7   : > { %v4598_v41 = vpop.eup %4597  ;;  %v3390_v47 = vmul.f32 %v4596_v32, %v3358_v26  ;;  %v3440_v62 = vadd.f32 %v3431_v29, %v3416_v37 }
0x10d8   : > { %v3393_v54 = vmul.f32 %v4598_v41, %v3361_v58 }
0x10d9   : > { %v3414_v14 = vmul.f32 %v3397_v55, %v3390_v47  ;;  %v3448_v13 = vmul.f32 0.70710677, %v3440_v62  ;;  %v3444_v50 = vmul.f32 0.5, %v3440_v62 }
0x10da   : > { %v4600_v16 = vpop.eup %4599  ;;  %v3417_v57 = vmul.f32 %v3412_v17, %v3393_v54 }
0x10db   : > { %v3438_v19 = vadd.f32 %v3421_v39, %v3414_v14  ;;  %v3391_v25 = vmul.f32 %v4600_v16, %v3359_v36  ;;  %4601 = verf.f32 %v3448_v13 }
0x10dc   : > { %v3441_v9 = vadd.f32 %v3436_v2, %v3417_v57 }
0x10dd   : > { %v3446_v59 = vmul.f32 0.70710677, %v3438_v19  ;;  %v3415_v22 = vmul.f32 %v3402_v12, %v3391_v25  ;;  %v3442_v45 = vmul.f32 0.5, %v3438_v19 }
0x10de   : > { %v3449_v21 = vmul.f32 0.70710677, %v3441_v9  ;;  %v3445_v42 = vmul.f32 0.5, %v3441_v9 }
0x10df   : > { %4603 = verf.f32 %v3446_v59  ;;  %v3439_v15 = vadd.f32 %v3426_v52, %v3415_v22 }
0x10e0   : > { %4605 = verf.f32 %v3449_v21 }
0x10e1   : > { %v3447_v18 = vmul.f32 0.70710677, %v3439_v15  ;;  %v3443_v35 = vmul.f32 0.5, %v3439_v15 }
0x10e3   : > { %4607 = verf.f32 %v3447_v18 }
0x10e5   : > { %v4602_v33 = vpop.eup %4601 }
0x10e6   : > { %v3456_v6 = vadd.f32 1.0, %v4602_v33 }
0x10e8   : > { %v6498_v28 = vmul.f32 %v3456_v6, %v3444_v50 }
0x10e9   : > { %v4604_v51 = vpop.eup %4603 }
0x10ea   : > { %v4606_v56 = vpop.eup %4605  ;;  %v3454_v26 = vadd.f32 1.0, %v4604_v51 }
0x10eb   : > { %v3457_v40 = vadd.f32 1.0, %v4606_v56 }
0x10ec   : > { %v6502_v43 = vmul.f32 %v3454_v26, %v3442_v45 }
0x10ed   : > { %v4608_v23 = vpop.eup %4607  ;;  %v6496_v24 = vmul.f32 %v3457_v40, %v3445_v42 }
0x10ee   : > { %v3455_v36 = vadd.f32 1.0, %v4608_v23 }
0x10ef   : > { %v4442_v58 = vpack.i.bf16 %v6496_v24, %v6498_v28  ;;  %v3563_v38 = vpack.c.bf16 %v6496_v24, %v6498_v28 }
0x10f0   : > { %v6504_v46 = vmul.f32 %v3455_v36, %v3443_v35 }
0x10f1   : > { %4443 = vrot.lane.b32.xlu1 %v4442_v58, %s5090_s26 }
0x10f2   : > { %v4437_v60 = vpack.i.bf16 %v6504_v46, %v6502_v43  ;;  %v3562_v27 = vpack.c.bf16 %v6504_v46, %v6502_v43 }
0x10f4   : > { %4438 = vrot.lane.b32.xlu0 %v4437_v60, %s5090_s26  ;;  %s5098_s26 = smov 48  }
0x10f5   : > { %4458 = vrot.lane.b32.xlu1 %v4437_v60, %s5091_s12 }
0x10f8   : > { %4448 = vrot.lane.b32.xlu0 %v4437_v60, %s5096_s4 }
0x10f9   : > { %4463 = vrot.lane.b32.xlu1 %v4442_v58, %s5091_s12  ;;  %s6667_s12 = sld [smem:[#allocation47_spill]] }
0x10fc   : > { %4453 = vrot.lane.b32.xlu0 %v4442_v58, %s5096_s4 }
0x1100   : > { %4468 = vrot.lane.b32.xlu0 %v4437_v60, %s5092_s0  ;;  %v3462_v60 = vld [vmem:[%s6666_s28] sm:$0x3] }
0x1104   : > { %4473 = vrot.lane.b32.xlu0 %v4442_v58, %s5092_s0  ;;  %s921_s0 = scalar_lea.vmem %s6667_s12, %s3849_s24 }
0x1108   : > { %3568 = vperm.xlu0 %4255, %v3463_v61  }
0x1163   : > { %v4444_v30 = vpop.permute.xlu1 %4443 }
0x1164   : > { %v4446_v55 = vunpack.i.h.bf16 %v4444_v30  ;;  %v4445_v39 = vunpack.i.l.bf16 %v4444_v30 }
0x1166   : > { %v4439_v49 = vpop.permute.xlu0 %4438  ;;  %v3499_v63 = vsel %vm1220_vm4, %v4446_v55, 0.0  ;;  %v3498_v0 = vsel %vm1220_vm4, %v4445_v39, 0.0 }
0x1167   : > { %v4459_v52 = vpop.permute.xlu1 %4458  ;;  %v4441_v12 = vunpack.i.h.bf16 %v4439_v49  ;;  %v4440_v17 = vunpack.i.l.bf16 %v4439_v49  ;;  %v4482_v44 = vpack.i.bf16 %v3499_v63, %v3498_v0 }
0x1168   : > { %v4461_v53 = vunpack.i.h.bf16 %v4459_v52  ;;  %v4460_v8 = vunpack.i.l.bf16 %v4459_v52 }
0x1169   : > { %v3497_v10 = vsel %vm1220_vm4, %v4441_v12, 0.0  ;;  %v3496_v20 = vsel %vm1220_vm4, %v4440_v17, 0.0 }
0x116a   : > { %v4477_v3 = vpack.i.bf16 %v3497_v10, %v3496_v20  ;;  %v4449_v1 = vpop.permute.xlu0 %4448 }
0x116b   : > { %v4451_v34 = vunpack.i.h.bf16 %v4449_v1  ;;  %v4450_v4 = vunpack.i.l.bf16 %v4449_v1  ;;  %v4464_v5 = vpop.permute.xlu1 %4463 }
0x116c   : > { %4478 = vrot.lane.b32.xlu1 %v4477_v3, %s5098_s26  ;;  %v4466_v54 = vunpack.i.h.bf16 %v4464_v5  ;;  %v4465_v14 = vunpack.i.l.bf16 %v4464_v5 }
0x116d   : > { %v3481_v31 = vsel %vm1187_vm3, 0.0, %v4451_v34  ;;  %v3480_v48 = vsel %vm1187_vm3, 0.0, %v4450_v4 }
0x116e   : > { %v3513_v11 = vsel %vm1395_vm5, %v3481_v31, %v4461_v53  ;;  %v3512_v37 = vsel %vm1395_vm5, %v3480_v48, %v4460_v8  ;;  %v4454_v32 = vpop.permute.xlu0 %4453 }
0x116f   : > { %v3517_v29 = vsel %vm2592_vm11, %v3513_v11, %v4461_v53  ;;  %v3516_v41 = vsel %vm2592_vm11, %v3512_v37, %v4460_v8  ;;  %v4456_v47 = vunpack.i.h.bf16 %v4454_v32  ;;  %v4455_v62 = vunpack.i.l.bf16 %v4454_v32 }
0x1170   : > { %4483 = vrot.lane.b32.xlu1 %v4482_v44, %s5098_s26  ;;  %v3520_v13 = vsel %vm3337_vm13, %v3516_v41, %v4460_v8  ;;  %v3521_v16 = vsel %vm3337_vm13, %v3517_v29, %v4461_v53 }
0x1171   : > { %v3483_v57 = vsel %vm1187_vm3, 0.0, %v4456_v47  ;;  %v3482_v19 = vsel %vm1187_vm3, 0.0, %v4455_v62  ;;  %v3560_v2 = vpack.c.bf16 %v3521_v16, %v3520_v13 }
0x1172   : > { %v3515_v25 = vsel %vm1395_vm5, %v3483_v57, %v4466_v54  ;;  %v3514_v9 = vsel %vm1395_vm5, %v3482_v19, %v4465_v14  ;;  %v4469_v33 = vpop.permute.xlu0 %4468 }
0x1173   : > { %v3519_v59 = vsel %vm2592_vm11, %v3515_v25, %v4466_v54  ;;  %v3518_v22 = vsel %vm2592_vm11, %v3514_v9, %v4465_v14  ;;  %4065 = vmatpush3.bf16.msra.mxu0 %v3560_v2  ;;  %v4471_v6 = vunpack.i.h.bf16 %v4469_v33  ;;  %v4470_v56 = vunpack.i.l.bf16 %v4469_v33 }
0x1174   : > { %4066 = vmatprep.subr.bf16.mxu0 %v5095_v7  ;;  %v3522_v21 = vsel %vm3337_vm13, %v3518_v22, %v4465_v14  ;;  %v3523_v15 = vsel %vm3337_vm13, %v3519_v59, %v4466_v54 }
0x1175   : > { %v3561_v18 = vpack.c.bf16 %v3523_v15, %v3522_v21 }
0x1176   : > { %v4474_v50 = vpop.permute.xlu0 %4473 }
0x1177   : > { %4067 = vmatpush3.bf16.msra.mxu0 %v3561_v18  ;;  %v4476_v36 = vunpack.i.h.bf16 %v4474_v50  ;;  %v4475_v58 = vunpack.i.l.bf16 %v4474_v50 }
0x1178   : > { %4068 = vmatprep.subr.bf16.mxu0 %v5095_v7 }
0x117b   : > { %4069 = vmatpush3.bf16.msra.mxu0 %v3562_v27 }
0x117c   : > { %4070 = vmatprep.subr.bf16.mxu0 %v5095_v7 }
0x117f   : > { %4071 = vmatpush3.bf16.msra.mxu0 %v3563_v38 }
0x1180   : > { %4072 = vmatprep.subr.bf16.mxu0 %v5095_v7 }
0x1187   : > { %v3569_v27 = vpop.permute.xlu0 %3568 }
0x11de   : > { %v4479_v51 = vpop.permute.xlu1 %4478 }
0x11df   : > { %v4481_v42 = vunpack.i.h.bf16 %v4479_v51  ;;  %v4480_v40 = vunpack.i.l.bf16 %v4479_v51 }
0x11e1   : > { %v3557_v26 = vsel %vm3337_vm13, %v4471_v6, %v4481_v42  ;;  %v3556_v23 = vsel %vm3337_vm13, %v4470_v56, %v4480_v40 }
0x11e2   : > { %v3564_v45 = vpack.c.bf16 %v3557_v26, %v3556_v23  ;;  %v4484_v35 = vpop.permute.xlu1 %4483 }
0x11e3   : > { %v4486_v24 = vunpack.i.h.bf16 %v4484_v35  ;;  %v4485_v28 = vunpack.i.l.bf16 %v4484_v35 }
0x11e4   : > { %4073 = vmatpush3.bf16.msra.mxu0 %v3564_v45 }
0x11e5   : > { %v3559_v43 = vsel %vm3337_vm13, %v4476_v36, %v4486_v24  ;;  %v3558_v46 = vsel %vm3337_vm13, %v4475_v58, %v4485_v28  ;;  %4074 = vmatprep.subr.bf16.mxu0 %v5095_v7 }
0x11e6   : > { %v3565_v38 = vpack.c.bf16 %v3559_v43, %v3558_v46 }
0x11e8   : > { %4075 = vmatpush3.bf16.msra.mxu0 %v3565_v38 }
0x11eb   : > { %4077 = vmatmul.mubr.msk.bf16.vlgmr.msra.gmra.mrb[12].mxu0 %vm2849_vm12, %v3462_v60 }
0x12be   : > { %v3608_v61 = vpop.f32.mrb[12].mxu0 }
0x12bf   : > { %v3609_v30 = vadd.f32 %v3608_v61, %v3569_v27  ;;  %v4078_v49 = vpop.f32.mrb[13].mxu0 }
0x12c0   : > { %v3611_v55 = vpop.f32.mrb[14].mxu0 }
0x12c1   : > { %3615 = vst.msk [vmem:[%s921_s0] sm:$0x7] %vm3614_vm15, %v3609_v30  ;;  %v4079_v7 = vpop.f32.mrb[15].mxu0 }
0x12c2 PF: > { %s6668_s23 = sld [smem:[#allocation33_spill]] }
0x12c8   : > { %s41_s4 = sadd.s32 1, %s6668_s23  }
0x12c9   : > { %p38_p0 = scmp.ge.s32.totalorder %s41_s4, 4  }
0x12cb   :  { %40 = sbr.rel (!%p38_p0) target bundleno = 22 (0x16), region = 203 }
0x12d2   :  { %3635 = vsyncpa [#allocation3], 1 }
0x12d3   :  { %3637 = vsyncpa [#allocation3 + $0x1], 1 }
0x12d4   :  { %3638 = vsyncpa [#allocation5], 1 }
0x12d5   :  { %3639 = vsyncpa [#allocation8], 1 }
0x12d6   :  { %3640 = vsyncpa [#allocation11], 1 }
0x12d7   :  { %3641 = vsyncpa [#allocation14], 1 }
0x12d8   :  { %3642 = vsyncpa [#allocation17], 1 }
0x12d9   :  { %3643 = vsyncpa [#allocation20], 1 }
0x12da   :  { %3644 = vsyncpa [#allocation23], 1 }

</bundles_post_ra>
